<compile_context>
chip_gen: v5e
topology: v5e:2x2
jax: 0.10.0
libtpu: 0.0.40
codegen_flags: <defaults>
</compile_context>

<pallas_src>
import functools
import math

import jax
import jax.numpy as jnp
from jax.experimental import pallas as pl
from jax.experimental.pallas import tpu as pltpu


# ----------------------------------------------------------------------------
# Fused decoder-layer kernel
# ----------------------------------------------------------------------------
def _decoder_layer_kernel(x_ref, enc_ref, lam_ref, pm_ref,
                          wq1_ref, bq1_ref, wkv1_ref, bkv1_ref, wo1_ref, bo1_ref,
                          g1_ref, be1_ref,
                          wq2_ref, bq2_ref, wkv2_ref, bkv2_ref, wo2_ref, bo2_ref,
                          g2_ref, be2_ref,
                          w1_ref, b1_ref, w2_ref, b2_ref, g3_ref, be3_ref,
                          out_ref, attn1_ref, attn2_ref,
                          ctx_acc,
                          *, num_heads, eps):
    """One full decoder layer for a single batch element.

    x_ref:     (Sq, D)    decoder-stream input (also residual)
    enc_ref:   (Senc, D)  encoder output (cross-attention keys/values)
    lam_ref:   (S0a, Sq)  look-ahead mask (1.0 => masked), S0a in {1, Sq}
    pm_ref:    (S0b, Senc) padding mask  (1.0 => masked), S0b in {1, Sq}
    out_ref:   (Sq, D)
    attn1_ref: (Sq, H*Sq)    self-attention probs (head-major lane slabs)
    attn2_ref: (Sq, H*Senc)  cross-attention probs
    ctx_acc:   (Sq, D) f32 VMEM scratch for concatenated head contexts
    """
    f32 = jnp.float32
    bf16 = jnp.bfloat16
    Sq, D = x_ref.shape
    dh = D // num_heads
    scale = 1.0 / math.sqrt(dh)

    def layer_norm(y, g_ref, b_ref):
        mu = jnp.mean(y, axis=-1, keepdims=True)
        var = jnp.mean((y - mu) ** 2, axis=-1, keepdims=True)
        return (y - mu) * jax.lax.rsqrt(var + eps) * g_ref[...] + b_ref[...]

    def mha(xq, xkv, neg_mask, wq_ref, bq_ref, wkv_ref, bkv_ref,
            wo_ref, bo_ref, attn_ref):
        Skv = xkv.shape[0]
        # Fused projections (bf16 operands, f32 accumulation on the MXU).
        q = jnp.dot(xq.astype(bf16), wq_ref[...],
                    preferred_element_type=f32) + bq_ref[...]        # (Sq, D)
        kv = jnp.dot(xkv.astype(bf16), wkv_ref[...],
                     preferred_element_type=f32) + bkv_ref[...]      # (Skv, 2D)
        k = kv[:, :D]
        v = kv[:, D:]
        # Per-head scaled dot-product attention; head contexts are written into
        # the (Sq, D) scratch so the output projection is ONE (Sq,D)@(D,D) op.
        for h in range(num_heads):
            sl = slice(h * dh, (h + 1) * dh)
            logits = jax.lax.dot_general(
                q[:, sl].astype(bf16), k[:, sl].astype(bf16),
                (((1,), (1,)), ((), ())),
                preferred_element_type=f32) * scale                  # (Sq, Skv)
            logits = logits + neg_mask
            logits = logits - jnp.max(logits, axis=-1, keepdims=True)
            e = jnp.exp(logits)
            p = e / jnp.sum(e, axis=-1, keepdims=True)                # exact softmax
            attn_ref[:, h * Skv:(h + 1) * Skv] = p
            ctx_acc[:, sl] = jnp.dot(p.astype(bf16), v[:, sl].astype(bf16),
                                     preferred_element_type=f32)      # (Sq, dh)
        return jnp.dot(ctx_acc[...].astype(bf16), wo_ref[...],
                       preferred_element_type=f32) + bo_ref[...]      # (Sq, D)

    x = x_ref[...]                                                    # f32
    la_neg = lam_ref[...] * (-1e9)
    pm_neg = pm_ref[...] * (-1e9)

    # Block 1: masked self-attention + residual + LayerNorm
    a1 = mha(x, x, la_neg,
             wq1_ref, bq1_ref, wkv1_ref, bkv1_ref, wo1_ref, bo1_ref, attn1_ref)
    out1 = layer_norm(a1 + x, g1_ref, be1_ref)

    # Block 2: cross-attention (q = decoder state, k/v = encoder) + res + LN
    enc = enc_ref[...]
    a2 = mha(out1, enc, pm_neg,
             wq2_ref, bq2_ref, wkv2_ref, bkv2_ref, wo2_ref, bo2_ref, attn2_ref)
    out2 = layer_norm(a2 + out1, g2_ref, be2_ref)

    # Block 3: position-wise FFN + residual + LayerNorm
    hdn = jnp.dot(out2.astype(bf16), w1_ref[...],
                  preferred_element_type=f32) + b1_ref[...]
    hdn = jnp.maximum(hdn, 0.0)
    y3 = jnp.dot(hdn.astype(bf16), w2_ref[...],
                 preferred_element_type=f32) + b2_ref[...] + out2
    out_ref[...] = layer_norm(y3, g3_ref, be3_ref)


def _prep_mask(mask, Skv):
    """(B0,1,S0,Skv) additive mask -> ((B0,S0,Skv) array, BlockSpec)."""
    m = jnp.asarray(mask, jnp.float32)
    assert m.ndim == 4 and m.shape[1] == 1 and m.shape[3] == Skv
    B0, _, S0, _ = m.shape
    m = m.reshape(B0, S0, Skv)
    if B0 == 1:
        spec = pl.BlockSpec((None, S0, Skv), lambda b: (0, 0, 0))
    else:
        spec = pl.BlockSpec((None, S0, Skv), lambda b: (b, 0, 0))
    return m, spec


def decoder_layer_fused(x, enc_output, look_ahead_mask, padding_mask, p, *,
                        num_heads, eps):
    """One decoder layer = one pallas_call. Returns (out, block1, block2)."""
    B, Sq, D = x.shape
    Senc = enc_output.shape[1]
    H = num_heads
    dff = p["ffn_w1"].shape[1]

    la, la_spec = _prep_mask(look_ahead_mask, Sq)
    pm, pm_spec = _prep_mask(padding_mask, Senc)

    const2 = lambda b: (0, 0)
    p1, p2 = p["mha1"], p["mha2"]

    out, attn1, attn2 = pl.pallas_call(
        functools.partial(_decoder_layer_kernel, num_heads=num_heads, eps=eps),
        out_shape=(
            jax.ShapeDtypeStruct((B, Sq, D), jnp.float32),
            jax.ShapeDtypeStruct((B, Sq, H * Sq), jnp.float32),
            jax.ShapeDtypeStruct((B, Sq, H * Senc), jnp.float32),
        ),
        grid=(B,),
        in_specs=[
            pl.BlockSpec((None, Sq, D), lambda b: (b, 0, 0)),        # x
            pl.BlockSpec((None, Senc, D), lambda b: (b, 0, 0)),      # enc_output
            la_spec,                                                 # look-ahead
            pm_spec,                                                 # padding
            # self-attention weights (bf16) / biases (f32) / LN params (f32)
            pl.BlockSpec((D, D), const2), pl.BlockSpec((1, D), const2),
            pl.BlockSpec((D, 2 * D), const2), pl.BlockSpec((1, 2 * D), const2),
            pl.BlockSpec((D, D), const2), pl.BlockSpec((1, D), const2),
            pl.BlockSpec((1, D), const2), pl.BlockSpec((1, D), const2),
            # cross-attention weights / biases / LN params
            pl.BlockSpec((D, D), const2), pl.BlockSpec((1, D), const2),
            pl.BlockSpec((D, 2 * D), const2), pl.BlockSpec((1, 2 * D), const2),
            pl.BlockSpec((D, D), const2), pl.BlockSpec((1, D), const2),
            pl.BlockSpec((1, D), const2), pl.BlockSpec((1, D), const2),
            # FFN weights / biases / LN params
            pl.BlockSpec((D, dff), const2), pl.BlockSpec((1, dff), const2),
            pl.BlockSpec((dff, D), const2), pl.BlockSpec((1, D), const2),
            pl.BlockSpec((1, D), const2), pl.BlockSpec((1, D), const2),
        ],
        out_specs=(
            pl.BlockSpec((None, Sq, D), lambda b: (b, 0, 0)),
            pl.BlockSpec((None, Sq, H * Sq), lambda b: (b, 0, 0)),
            pl.BlockSpec((None, Sq, H * Senc), lambda b: (b, 0, 0)),
        ),
        scratch_shapes=[pltpu.VMEM((Sq, D), jnp.float32)],
        compiler_params=pltpu.CompilerParams(
            dimension_semantics=("parallel",)),   # B=2 -> both v7x TCs busy
    )(x, enc_output, la, pm,
      p1["wq"], p1["bq"], p1["wkv"], p1["bkv"], p1["wo"], p1["bo"],
      p["ln1_g"], p["ln1_b"],
      p2["wq"], p2["bq"], p2["wkv"], p2["bkv"], p2["wo"], p2["bo"],
      p["ln2_g"], p["ln2_b"],
      p["ffn_w1"], p["ffn_b1"], p["ffn_w2"], p["ffn_b2"],
      p["ln3_g"], p["ln3_b"])

    # Lane-dense slabs -> reference (B, H, Sq, Skv) layout (glue-side plumbing).
    block1 = attn1.reshape(B, Sq, H, Sq).transpose(0, 2, 1, 3)
    block2 = attn2.reshape(B, Sq, H, Senc).transpose(0, 2, 1, 3)
    return out, block1, block2


# ----------------------------------------------------------------------------
# Model composition (plain JAX glue)
# ----------------------------------------------------------------------------
def positional_encoding(max_pos, d_model):
    pos = jnp.arange(max_pos, dtype=jnp.float32)[:, None]
    i = jnp.arange(d_model, dtype=jnp.float32)[None, :]
    angle_rates = 1.0 / jnp.power(10000.0, (2.0 * jnp.floor(i / 2.0)) / d_model)
    angle_rads = pos * angle_rates
    pe = jnp.zeros((max_pos, d_model), jnp.float32)
    pe = pe.at[:, 0::2].set(jnp.sin(angle_rads[:, 0::2]))
    pe = pe.at[:, 1::2].set(jnp.cos(angle_rads[:, 1::2]))
    return pe[None, :, :]                              # (1, max_pos, d_model)


def decoder_forward(tokens, enc_output, look_ahead_mask, padding_mask,
                    params, *, num_heads, d_model, eps):
    B, S = tokens.shape
    # Embedding gather + sqrt(d_model) scale + positional encoding: tiny
    # elementwise work, left to XLA (fuses with the gather) — no pallas_call.
    x = params["embedding"][tokens] * math.sqrt(float(d_model)) \
        + params["pos_encoding"][:, :S, :]
    # TODO(synk): nn.Dropout treated as identity (eval mode).
    attention_weights = {}
    for i, lp in enumerate(params["layers"]):
        x, b1, b2 = decoder_layer_fused(x, enc_output, look_ahead_mask,
                                        padding_mask, lp,
                                        num_heads=num_heads, eps=eps)
        attention_weights[f"decoder_layer{i}_block1"] = b1
        attention_weights[f"decoder_layer{i}_block2"] = b2
    return x, attention_weights


# ----------------------------------------------------------------------------
# Deterministic parameter init (matmul weights stored in bf16; biases/LN f32)
# ----------------------------------------------------------------------------
def _dense_init(key, din, dout):
    lim = 1.0 / math.sqrt(din)
    kw, kb = jax.random.split(key)
    w = jax.random.uniform(kw, (din, dout), jnp.float32, -lim, lim)
    b = jax.random.uniform(kb, (dout,), jnp.float32, -lim, lim)
    return w, b


def init_params(key, *, n_layer, d_model, num_heads, dff, vocab, max_pos):
    keys = jax.random.split(key, 1 + n_layer)
    params = {
        "embedding": jax.random.normal(keys[0], (vocab, d_model), jnp.float32),
        "pos_encoding": positional_encoding(max_pos, d_model),
        "layers": [],
    }
    bf16 = jnp.bfloat16
    for li in range(n_layer):
        lk = jax.random.split(keys[1 + li], 4)

        def mha_params(k):
            ks = jax.random.split(k, 4)
            wq, bq = _dense_init(ks[0], d_model, d_model)
            wk, bk = _dense_init(ks[1], d_model, d_model)
            wv, bv = _dense_init(ks[2], d_model, d_model)
            wo, bo = _dense_init(ks[3], d_model, d_model)
            # Stack K/V projections -> one (D, 2D) matmul; weights in bf16.
            return {"wq": wq.astype(bf16), "bq": bq.reshape(1, d_model),
                    "wkv": jnp.concatenate([wk, wv], axis=1).astype(bf16),
                    "bkv": jnp.concatenate([bk, bv], axis=0).reshape(1, 2 * d_model),
                    "wo": wo.astype(bf16), "bo": bo.reshape(1, d_model)}

        w1, b1 = _dense_init(lk[2], d_model, dff)
        w2, b2 = _dense_init(lk[3], dff, d_model)
        params["layers"].append({
            "mha1": mha_params(lk[0]),
            "mha2": mha_params(lk[1]),
            "ffn_w1": w1.astype(bf16), "ffn_b1": b1.reshape(1, dff),
            "ffn_w2": w2.astype(bf16), "ffn_b2": b2.reshape(1, d_model),
            "ln1_g": jnp.ones((1, d_model), jnp.float32),
            "ln1_b": jnp.zeros((1, d_model), jnp.float32),
            "ln2_g": jnp.ones((1, d_model), jnp.float32),
            "ln2_b": jnp.zeros((1, d_model), jnp.float32),
            "ln3_g": jnp.ones((1, d_model), jnp.float32),
            "ln3_b": jnp.zeros((1, d_model), jnp.float32),
        })
    return params


# ----------------------------------------------------------------------------
# Main
# ----------------------------------------------------------------------------
if __name__ == "__main__":
    N_LAYER = 2
    D_MODEL = 32
    NUM_HEADS = 4
    DFF = 64
    VOCAB = 50
    MAX_POS = 16
    EPS = 1e-6

    B, S_DEC, S_ENC = 2, 8, 8

    key = jax.random.PRNGKey(0)
    kp, kt, ke = jax.random.split(key, 3)

    params = init_params(kp, n_layer=N_LAYER, d_model=D_MODEL,
                         num_heads=NUM_HEADS, dff=DFF,
                         vocab=VOCAB, max_pos=MAX_POS)

    tokens = jax.random.randint(kt, (B, S_DEC), 0, VOCAB, dtype=jnp.int32)
    enc_output = jax.random.normal(ke, (B, S_ENC, D_MODEL), jnp.float32)

    # look-ahead (causal) mask: 1.0 above the diagonal => masked
    look_ahead_mask = (1.0 - jnp.tril(jnp.ones((S_DEC, S_DEC), jnp.float32)))
    look_ahead_mask = look_ahead_mask[None, None, :, :]          # (1,1,S,S)
    # padding mask over encoder positions: mask last 2 positions of batch 1
    pad = jnp.zeros((B, S_ENC), jnp.float32).at[1, -2:].set(1.0)
    padding_mask = pad[:, None, None, :]                         # (B,1,1,S_enc)

    fwd = jax.jit(functools.partial(decoder_forward,
                                    num_heads=NUM_HEADS,
                                    d_model=D_MODEL,
                                    eps=EPS))

    out, attn_weights = fwd(tokens, enc_output, look_ahead_mask, padding_mask,
                            params)
    out = jax.block_until_ready(out)
    jax.block_until_ready(attn_weights)

    assert out.shape == (B, S_DEC, D_MODEL)
    assert attn_weights["decoder_layer0_block1"].shape == (B, NUM_HEADS, S_DEC, S_DEC)
    assert attn_weights["decoder_layer0_block2"].shape == (B, NUM_HEADS, S_DEC, S_ENC)
    assert jnp.all(jnp.isfinite(out))
    # attention rows must sum to ~1
    assert jnp.allclose(
        jnp.sum(attn_weights["decoder_layer0_block1"], axis=-1), 1.0, atol=1e-3)

    print("KERNEL_OK")
</pallas_src>

<mosaic_0001>
module attributes {stable_mosaic.version = 11 : i64} {
  func.func @_decoder_layer_kernel(%arg0: i32, %arg1: memref<1x8x32xf32, #tpu.memory_space<vmem>>, %arg2: memref<1x8x32xf32, #tpu.memory_space<vmem>>, %arg3: memref<1x8x8xf32, #tpu.memory_space<vmem>>, %arg4: memref<1x1x8xf32, #tpu.memory_space<vmem>>, %arg5: memref<32x32xbf16, #tpu.memory_space<vmem>>, %arg6: memref<1x32xf32, #tpu.memory_space<vmem>>, %arg7: memref<32x64xbf16, #tpu.memory_space<vmem>>, %arg8: memref<1x64xf32, #tpu.memory_space<vmem>>, %arg9: memref<32x32xbf16, #tpu.memory_space<vmem>>, %arg10: memref<1x32xf32, #tpu.memory_space<vmem>>, %arg11: memref<1x32xf32, #tpu.memory_space<vmem>>, %arg12: memref<1x32xf32, #tpu.memory_space<vmem>>, %arg13: memref<32x32xbf16, #tpu.memory_space<vmem>>, %arg14: memref<1x32xf32, #tpu.memory_space<vmem>>, %arg15: memref<32x64xbf16, #tpu.memory_space<vmem>>, %arg16: memref<1x64xf32, #tpu.memory_space<vmem>>, %arg17: memref<32x32xbf16, #tpu.memory_space<vmem>>, %arg18: memref<1x32xf32, #tpu.memory_space<vmem>>, %arg19: memref<1x32xf32, #tpu.memory_space<vmem>>, %arg20: memref<1x32xf32, #tpu.memory_space<vmem>>, %arg21: memref<32x64xbf16, #tpu.memory_space<vmem>>, %arg22: memref<1x64xf32, #tpu.memory_space<vmem>>, %arg23: memref<64x32xbf16, #tpu.memory_space<vmem>>, %arg24: memref<1x32xf32, #tpu.memory_space<vmem>>, %arg25: memref<1x32xf32, #tpu.memory_space<vmem>>, %arg26: memref<1x32xf32, #tpu.memory_space<vmem>>, %arg27: memref<1x8x32xf32, #tpu.memory_space<vmem>>, %arg28: memref<1x8x32xf32, #tpu.memory_space<vmem>>, %arg29: memref<1x8x32xf32, #tpu.memory_space<vmem>>, %arg30: memref<8x32xf32, #tpu.memory_space<vmem>>) attributes {dimension_semantics = [#tpu.dimension_semantics<parallel>], iteration_bounds = array<i64: 2>, scalar_prefetch = 0 : i64, scratch_operands = 1 : i64, tpu.core_type = #tpu.core_type<tc>, window_params = [{transform_indices = @transform_0, window_bounds = array<i64: 1, 8, 32>}, {transform_indices = @transform_1, window_bounds = array<i64: 1, 8, 32>}, {pipeline_mode = #tpu.pipeline_mode<synchronous>, transform_indices = @transform_2, window_bounds = array<i64: 1, 8, 8>}, {transform_indices = @transform_3, window_bounds = array<i64: 1, 1, 8>}, {pipeline_mode = #tpu.pipeline_mode<synchronous>, transform_indices = @transform_4, window_bounds = array<i64: 32, 32>}, {pipeline_mode = #tpu.pipeline_mode<synchronous>, transform_indices = @transform_5, window_bounds = array<i64: 1, 32>}, {pipeline_mode = #tpu.pipeline_mode<synchronous>, transform_indices = @transform_6, window_bounds = array<i64: 32, 64>}, {pipeline_mode = #tpu.pipeline_mode<synchronous>, transform_indices = @transform_7, window_bounds = array<i64: 1, 64>}, {pipeline_mode = #tpu.pipeline_mode<synchronous>, transform_indices = @transform_8, window_bounds = array<i64: 32, 32>}, {pipeline_mode = #tpu.pipeline_mode<synchronous>, transform_indices = @transform_9, window_bounds = array<i64: 1, 32>}, {pipeline_mode = #tpu.pipeline_mode<synchronous>, transform_indices = @transform_10, window_bounds = array<i64: 1, 32>}, {pipeline_mode = #tpu.pipeline_mode<synchronous>, transform_indices = @transform_11, window_bounds = array<i64: 1, 32>}, {pipeline_mode = #tpu.pipeline_mode<synchronous>, transform_indices = @transform_12, window_bounds = array<i64: 32, 32>}, {pipeline_mode = #tpu.pipeline_mode<synchronous>, transform_indices = @transform_13, window_bounds = array<i64: 1, 32>}, {pipeline_mode = #tpu.pipeline_mode<synchronous>, transform_indices = @transform_14, window_bounds = array<i64: 32, 64>}, {pipeline_mode = #tpu.pipeline_mode<synchronous>, transform_indices = @transform_15, window_bounds = array<i64: 1, 64>}, {pipeline_mode = #tpu.pipeline_mode<synchronous>, transform_indices = @transform_16, window_bounds = array<i64: 32, 32>}, {pipeline_mode = #tpu.pipeline_mode<synchronous>, transform_indices = @transform_17, window_bounds = array<i64: 1, 32>}, {pipeline_mode = #tpu.pipeline_mode<synchronous>, transform_indices = @transform_18, window_bounds = array<i64: 1, 32>}, {pipeline_mode = #tpu.pipeline_mode<synchronous>, transform_indices = @transform_19, window_bounds = array<i64: 1, 32>}, {pipeline_mode = #tpu.pipeline_mode<synchronous>, transform_indices = @transform_20, window_bounds = array<i64: 32, 64>}, {pipeline_mode = #tpu.pipeline_mode<synchronous>, transform_indices = @transform_21, window_bounds = array<i64: 1, 64>}, {pipeline_mode = #tpu.pipeline_mode<synchronous>, transform_indices = @transform_22, window_bounds = array<i64: 64, 32>}, {pipeline_mode = #tpu.pipeline_mode<synchronous>, transform_indices = @transform_23, window_bounds = array<i64: 1, 32>}, {pipeline_mode = #tpu.pipeline_mode<synchronous>, transform_indices = @transform_24, window_bounds = array<i64: 1, 32>}, {pipeline_mode = #tpu.pipeline_mode<synchronous>, transform_indices = @transform_25, window_bounds = array<i64: 1, 32>}, {transform_indices = @transform_26, window_bounds = array<i64: 1, 8, 32>}, {transform_indices = @transform_27, window_bounds = array<i64: 1, 8, 32>}, {transform_indices = @transform_28, window_bounds = array<i64: 1, 8, 32>}]} {
    %c0 = arith.constant 0 : index
    %c0_0 = arith.constant 0 : index
    %c0_1 = arith.constant 0 : index
    %0 = vector.load %arg1[%c0, %c0_0, %c0_1] : memref<1x8x32xf32, #tpu.memory_space<vmem>>, vector<1x8x32xf32>
    %1 = vector.shape_cast %0 : vector<1x8x32xf32> to vector<8x32xf32>
    %c0_2 = arith.constant 0 : index
    %c0_3 = arith.constant 0 : index
    %c0_4 = arith.constant 0 : index
    %2 = vector.load %arg3[%c0_2, %c0_3, %c0_4] : memref<1x8x8xf32, #tpu.memory_space<vmem>>, vector<1x8x8xf32>
    %3 = vector.shape_cast %2 : vector<1x8x8xf32> to vector<8x8xf32>
    %cst = arith.constant -1.000000e+09 : f32
    %4 = vector.broadcast %cst : f32 to vector<8x8xf32>
    %5 = arith.mulf %3, %4 : vector<8x8xf32>
    %c0_5 = arith.constant 0 : index
    %c0_6 = arith.constant 0 : index
    %c0_7 = arith.constant 0 : index
    %6 = vector.load %arg4[%c0_5, %c0_6, %c0_7] : memref<1x1x8xf32, #tpu.memory_space<vmem>>, vector<1x1x8xf32>
    %7 = vector.shape_cast %6 : vector<1x1x8xf32> to vector<1x8xf32>
    %cst_8 = arith.constant -1.000000e+09 : f32
    %8 = vector.broadcast %cst_8 : f32 to vector<1x8xf32>
    %9 = arith.mulf %7, %8 : vector<1x8xf32>
    %10 = arith.truncf %1 : vector<8x32xf32> to vector<8x32xbf16>
    %c0_9 = arith.constant 0 : index
    %c0_10 = arith.constant 0 : index
    %11 = vector.load %arg5[%c0_9, %c0_10] : memref<32x32xbf16, #tpu.memory_space<vmem>>, vector<32x32xbf16>
    %cst_11 = arith.constant dense<0.000000e+00> : vector<8x32xf32>
    %12 = tpu.matmul %10, %11, %cst_11 {dimension_numbers = #tpu.dot_dimension_numbers<[1], [0], [0], [1], [0, 0, 1, 1], [], []>} : vector<8x32xbf16>, vector<32x32xbf16>, vector<8x32xf32> -> vector<8x32xf32>
    %c0_12 = arith.constant 0 : index
    %c0_13 = arith.constant 0 : index
    %13 = vector.load %arg6[%c0_12, %c0_13] : memref<1x32xf32, #tpu.memory_space<vmem>>, vector<1x32xf32>
    %14 = vector.broadcast %13 : vector<1x32xf32> to vector<8x32xf32>
    %15 = arith.addf %12, %14 : vector<8x32xf32>
    %16 = arith.truncf %1 : vector<8x32xf32> to vector<8x32xbf16>
    %c0_14 = arith.constant 0 : index
    %c0_15 = arith.constant 0 : index
    %17 = vector.load %arg7[%c0_14, %c0_15] : memref<32x64xbf16, #tpu.memory_space<vmem>>, vector<32x64xbf16>
    %cst_16 = arith.constant dense<0.000000e+00> : vector<8x64xf32>
    %18 = tpu.matmul %16, %17, %cst_16 {dimension_numbers = #tpu.dot_dimension_numbers<[1], [0], [0], [1], [0, 0, 1, 1], [], []>} : vector<8x32xbf16>, vector<32x64xbf16>, vector<8x64xf32> -> vector<8x64xf32>
    %c0_17 = arith.constant 0 : index
    %c0_18 = arith.constant 0 : index
    %19 = vector.load %arg8[%c0_17, %c0_18] : memref<1x64xf32, #tpu.memory_space<vmem>>, vector<1x64xf32>
    %20 = vector.broadcast %19 : vector<1x64xf32> to vector<8x64xf32>
    %21 = arith.addf %18, %20 : vector<8x64xf32>
    %22 = vector.extract_strided_slice %21 {offsets = [0, 0], sizes = [8, 32], strides = [1, 1]} : vector<8x64xf32> to vector<8x32xf32>
    %23 = vector.extract_strided_slice %21 {offsets = [0, 32], sizes = [8, 32], strides = [1, 1]} : vector<8x64xf32> to vector<8x32xf32>
    %24 = vector.extract_strided_slice %15 {offsets = [0, 0], sizes = [8, 8], strides = [1, 1]} : vector<8x32xf32> to vector<8x8xf32>
    %25 = arith.truncf %24 : vector<8x8xf32> to vector<8x8xbf16>
    %26 = vector.extract_strided_slice %22 {offsets = [0, 0], sizes = [8, 8], strides = [1, 1]} : vector<8x32xf32> to vector<8x8xf32>
    %27 = arith.truncf %26 : vector<8x8xf32> to vector<8x8xbf16>
    %cst_19 = arith.constant dense<0.000000e+00> : vector<8x8xf32>
    %28 = tpu.matmul %25, %27, %cst_19 {dimension_numbers = #tpu.dot_dimension_numbers<[1], [1], [0], [0], [0, 0, 1, 0], [], []>} : vector<8x8xbf16>, vector<8x8xbf16>, vector<8x8xf32> -> vector<8x8xf32>
    %cst_20 = arith.constant 0.353553385 : f32
    %29 = vector.broadcast %cst_20 : f32 to vector<8x8xf32>
    %30 = arith.mulf %28, %29 : vector<8x8xf32>
    %31 = arith.addf %30, %5 : vector<8x8xf32>
    %cst_21 = arith.constant dense<0xFF800000> : vector<8xf32>
    %32 = vector.multi_reduction <maximumf>, %31, %cst_21 [1] : vector<8x8xf32> to vector<8xf32>
    %33 = vector.shape_cast %32 : vector<8xf32> to vector<8x1xf32>
    %34 = vector.broadcast %33 : vector<8x1xf32> to vector<8x8xf32>
    %35 = arith.subf %31, %34 : vector<8x8xf32>
    %36 = math.exp %35 : vector<8x8xf32>
    %cst_22 = arith.constant dense<0.000000e+00> : vector<8xf32>
    %37 = vector.multi_reduction <add>, %36, %cst_22 [1] : vector<8x8xf32> to vector<8xf32>
    %38 = vector.shape_cast %37 : vector<8xf32> to vector<8x1xf32>
    %39 = vector.broadcast %38 : vector<8x1xf32> to vector<8x8xf32>
    %40 = arith.divf %36, %39 : vector<8x8xf32>
    %c0_23 = arith.constant 0 : index
    %c0_24 = arith.constant 0 : index
    %c0_25 = arith.constant 0 : index
    %41 = vector.load %arg28[%c0_23, %c0_24, %c0_25] : memref<1x8x32xf32, #tpu.memory_space<vmem>>, vector<1x8x8xf32>
    %42 = vector.shape_cast %41 : vector<1x8x8xf32> to vector<8x8xf32>
    %43 = vector.shape_cast %40 : vector<8x8xf32> to vector<1x8x8xf32>
    tpu.vector_store %arg28[%c0_23, %c0_24, %c0_25], %43 {strides = array<i32>} : memref<1x8x32xf32, #tpu.memory_space<vmem>>, vector<1x8x8xf32>,
    %44 = arith.truncf %40 : vector<8x8xf32> to vector<8x8xbf16>
    %45 = vector.extract_strided_slice %23 {offsets = [0, 0], sizes = [8, 8], strides = [1, 1]} : vector<8x32xf32> to vector<8x8xf32>
    %46 = arith.truncf %45 : vector<8x8xf32> to vector<8x8xbf16>
    %cst_26 = arith.constant dense<0.000000e+00> : vector<8x8xf32>
    %47 = tpu.matmul %44, %46, %cst_26 {dimension_numbers = #tpu.dot_dimension_numbers<[1], [0], [0], [1], [0, 0, 1, 1], [], []>} : vector<8x8xbf16>, vector<8x8xbf16>, vector<8x8xf32> -> vector<8x8xf32>
    %c0_27 = arith.constant 0 : index
    %c0_28 = arith.constant 0 : index
    %48 = vector.load %arg30[%c0_27, %c0_28] : memref<8x32xf32, #tpu.memory_space<vmem>>, vector<8x8xf32>
    tpu.vector_store %arg30[%c0_27, %c0_28], %47 {strides = array<i32>} : memref<8x32xf32, #tpu.memory_space<vmem>>, vector<8x8xf32>,
    %49 = vector.extract_strided_slice %15 {offsets = [0, 8], sizes = [8, 8], strides = [1, 1]} : vector<8x32xf32> to vector<8x8xf32>
    %50 = arith.truncf %49 : vector<8x8xf32> to vector<8x8xbf16>
    %51 = vector.extract_strided_slice %22 {offsets = [0, 8], sizes = [8, 8], strides = [1, 1]} : vector<8x32xf32> to vector<8x8xf32>
    %52 = arith.truncf %51 : vector<8x8xf32> to vector<8x8xbf16>
    %cst_29 = arith.constant dense<0.000000e+00> : vector<8x8xf32>
    %53 = tpu.matmul %50, %52, %cst_29 {dimension_numbers = #tpu.dot_dimension_numbers<[1], [1], [0], [0], [0, 0, 1, 0], [], []>} : vector<8x8xbf16>, vector<8x8xbf16>, vector<8x8xf32> -> vector<8x8xf32>
    %cst_30 = arith.constant 0.353553385 : f32
    %54 = vector.broadcast %cst_30 : f32 to vector<8x8xf32>
    %55 = arith.mulf %53, %54 : vector<8x8xf32>
    %56 = arith.addf %55, %5 : vector<8x8xf32>
    %cst_31 = arith.constant dense<0xFF800000> : vector<8xf32>
    %57 = vector.multi_reduction <maximumf>, %56, %cst_31 [1] : vector<8x8xf32> to vector<8xf32>
    %58 = vector.shape_cast %57 : vector<8xf32> to vector<8x1xf32>
    %59 = vector.broadcast %58 : vector<8x1xf32> to vector<8x8xf32>
    %60 = arith.subf %56, %59 : vector<8x8xf32>
    %61 = math.exp %60 : vector<8x8xf32>
    %cst_32 = arith.constant dense<0.000000e+00> : vector<8xf32>
    %62 = vector.multi_reduction <add>, %61, %cst_32 [1] : vector<8x8xf32> to vector<8xf32>
    %63 = vector.shape_cast %62 : vector<8xf32> to vector<8x1xf32>
    %64 = vector.broadcast %63 : vector<8x1xf32> to vector<8x8xf32>
    %65 = arith.divf %61, %64 : vector<8x8xf32>
    %c0_33 = arith.constant 0 : index
    %c0_34 = arith.constant 0 : index
    %c8 = arith.constant 8 : index
    %66 = vector.load %arg28[%c0_33, %c0_34, %c8] : memref<1x8x32xf32, #tpu.memory_space<vmem>>, vector<1x8x8xf32>
    %67 = vector.shape_cast %66 : vector<1x8x8xf32> to vector<8x8xf32>
    %68 = vector.shape_cast %65 : vector<8x8xf32> to vector<1x8x8xf32>
    tpu.vector_store %arg28[%c0_33, %c0_34, %c8], %68 {strides = array<i32>} : memref<1x8x32xf32, #tpu.memory_space<vmem>>, vector<1x8x8xf32>,
    %69 = arith.truncf %65 : vector<8x8xf32> to vector<8x8xbf16>
    %70 = vector.extract_strided_slice %23 {offsets = [0, 8], sizes = [8, 8], strides = [1, 1]} : vector<8x32xf32> to vector<8x8xf32>
    %71 = arith.truncf %70 : vector<8x8xf32> to vector<8x8xbf16>
    %cst_35 = arith.constant dense<0.000000e+00> : vector<8x8xf32>
    %72 = tpu.matmul %69, %71, %cst_35 {dimension_numbers = #tpu.dot_dimension_numbers<[1], [0], [0], [1], [0, 0, 1, 1], [], []>} : vector<8x8xbf16>, vector<8x8xbf16>, vector<8x8xf32> -> vector<8x8xf32>
    %c0_36 = arith.constant 0 : index
    %c8_37 = arith.constant 8 : index
    %73 = vector.load %arg30[%c0_36, %c8_37] : memref<8x32xf32, #tpu.memory_space<vmem>>, vector<8x8xf32>
    tpu.vector_store %arg30[%c0_36, %c8_37], %72 {strides = array<i32>} : memref<8x32xf32, #tpu.memory_space<vmem>>, vector<8x8xf32>,
    %74 = vector.extract_strided_slice %15 {offsets = [0, 16], sizes = [8, 8], strides = [1, 1]} : vector<8x32xf32> to vector<8x8xf32>
    %75 = arith.truncf %74 : vector<8x8xf32> to vector<8x8xbf16>
    %76 = vector.extract_strided_slice %22 {offsets = [0, 16], sizes = [8, 8], strides = [1, 1]} : vector<8x32xf32> to vector<8x8xf32>
    %77 = arith.truncf %76 : vector<8x8xf32> to vector<8x8xbf16>
    %cst_38 = arith.constant dense<0.000000e+00> : vector<8x8xf32>
    %78 = tpu.matmul %75, %77, %cst_38 {dimension_numbers = #tpu.dot_dimension_numbers<[1], [1], [0], [0], [0, 0, 1, 0], [], []>} : vector<8x8xbf16>, vector<8x8xbf16>, vector<8x8xf32> -> vector<8x8xf32>
    %cst_39 = arith.constant 0.353553385 : f32
    %79 = vector.broadcast %cst_39 : f32 to vector<8x8xf32>
    %80 = arith.mulf %78, %79 : vector<8x8xf32>
    %81 = arith.addf %80, %5 : vector<8x8xf32>
    %cst_40 = arith.constant dense<0xFF800000> : vector<8xf32>
    %82 = vector.multi_reduction <maximumf>, %81, %cst_40 [1] : vector<8x8xf32> to vector<8xf32>
    %83 = vector.shape_cast %82 : vector<8xf32> to vector<8x1xf32>
    %84 = vector.broadcast %83 : vector<8x1xf32> to vector<8x8xf32>
    %85 = arith.subf %81, %84 : vector<8x8xf32>
    %86 = math.exp %85 : vector<8x8xf32>
    %cst_41 = arith.constant dense<0.000000e+00> : vector<8xf32>
    %87 = vector.multi_reduction <add>, %86, %cst_41 [1] : vector<8x8xf32> to vector<8xf32>
    %88 = vector.shape_cast %87 : vector<8xf32> to vector<8x1xf32>
    %89 = vector.broadcast %88 : vector<8x1xf32> to vector<8x8xf32>
    %90 = arith.divf %86, %89 : vector<8x8xf32>
    %c0_42 = arith.constant 0 : index
    %c0_43 = arith.constant 0 : index
    %c16 = arith.constant 16 : index
    %91 = vector.load %arg28[%c0_42, %c0_43, %c16] : memref<1x8x32xf32, #tpu.memory_space<vmem>>, vector<1x8x8xf32>
    %92 = vector.shape_cast %91 : vector<1x8x8xf32> to vector<8x8xf32>
    %93 = vector.shape_cast %90 : vector<8x8xf32> to vector<1x8x8xf32>
    tpu.vector_store %arg28[%c0_42, %c0_43, %c16], %93 {strides = array<i32>} : memref<1x8x32xf32, #tpu.memory_space<vmem>>, vector<1x8x8xf32>,
    %94 = arith.truncf %90 : vector<8x8xf32> to vector<8x8xbf16>
    %95 = vector.extract_strided_slice %23 {offsets = [0, 16], sizes = [8, 8], strides = [1, 1]} : vector<8x32xf32> to vector<8x8xf32>
    %96 = arith.truncf %95 : vector<8x8xf32> to vector<8x8xbf16>
    %cst_44 = arith.constant dense<0.000000e+00> : vector<8x8xf32>
    %97 = tpu.matmul %94, %96, %cst_44 {dimension_numbers = #tpu.dot_dimension_numbers<[1], [0], [0], [1], [0, 0, 1, 1], [], []>} : vector<8x8xbf16>, vector<8x8xbf16>, vector<8x8xf32> -> vector<8x8xf32>
    %c0_45 = arith.constant 0 : index
    %c16_46 = arith.constant 16 : index
    %98 = vector.load %arg30[%c0_45, %c16_46] : memref<8x32xf32, #tpu.memory_space<vmem>>, vector<8x8xf32>
    tpu.vector_store %arg30[%c0_45, %c16_46], %97 {strides = array<i32>} : memref<8x32xf32, #tpu.memory_space<vmem>>, vector<8x8xf32>,
    %99 = vector.extract_strided_slice %15 {offsets = [0, 24], sizes = [8, 8], strides = [1, 1]} : vector<8x32xf32> to vector<8x8xf32>
    %100 = arith.truncf %99 : vector<8x8xf32> to vector<8x8xbf16>
    %101 = vector.extract_strided_slice %22 {offsets = [0, 24], sizes = [8, 8], strides = [1, 1]} : vector<8x32xf32> to vector<8x8xf32>
    %102 = arith.truncf %101 : vector<8x8xf32> to vector<8x8xbf16>
    %cst_47 = arith.constant dense<0.000000e+00> : vector<8x8xf32>
    %103 = tpu.matmul %100, %102, %cst_47 {dimension_numbers = #tpu.dot_dimension_numbers<[1], [1], [0], [0], [0, 0, 1, 0], [], []>} : vector<8x8xbf16>, vector<8x8xbf16>, vector<8x8xf32> -> vector<8x8xf32>
    %cst_48 = arith.constant 0.353553385 : f32
    %104 = vector.broadcast %cst_48 : f32 to vector<8x8xf32>
    %105 = arith.mulf %103, %104 : vector<8x8xf32>
    %106 = arith.addf %105, %5 : vector<8x8xf32>
    %cst_49 = arith.constant dense<0xFF800000> : vector<8xf32>
    %107 = vector.multi_reduction <maximumf>, %106, %cst_49 [1] : vector<8x8xf32> to vector<8xf32>
    %108 = vector.shape_cast %107 : vector<8xf32> to vector<8x1xf32>
    %109 = vector.broadcast %108 : vector<8x1xf32> to vector<8x8xf32>
    %110 = arith.subf %106, %109 : vector<8x8xf32>
    %111 = math.exp %110 : vector<8x8xf32>
    %cst_50 = arith.constant dense<0.000000e+00> : vector<8xf32>
    %112 = vector.multi_reduction <add>, %111, %cst_50 [1] : vector<8x8xf32> to vector<8xf32>
    %113 = vector.shape_cast %112 : vector<8xf32> to vector<8x1xf32>
    %114 = vector.broadcast %113 : vector<8x1xf32> to vector<8x8xf32>
    %115 = arith.divf %111, %114 : vector<8x8xf32>
    %c0_51 = arith.constant 0 : index
    %c0_52 = arith.constant 0 : index
    %c24 = arith.constant 24 : index
    %116 = vector.load %arg28[%c0_51, %c0_52, %c24] : memref<1x8x32xf32, #tpu.memory_space<vmem>>, vector<1x8x8xf32>
    %117 = vector.shape_cast %116 : vector<1x8x8xf32> to vector<8x8xf32>
    %118 = vector.shape_cast %115 : vector<8x8xf32> to vector<1x8x8xf32>
    tpu.vector_store %arg28[%c0_51, %c0_52, %c24], %118 {strides = array<i32>} : memref<1x8x32xf32, #tpu.memory_space<vmem>>, vector<1x8x8xf32>,
    %119 = arith.truncf %115 : vector<8x8xf32> to vector<8x8xbf16>
    %120 = vector.extract_strided_slice %23 {offsets = [0, 24], sizes = [8, 8], strides = [1, 1]} : vector<8x32xf32> to vector<8x8xf32>
    %121 = arith.truncf %120 : vector<8x8xf32> to vector<8x8xbf16>
    %cst_53 = arith.constant dense<0.000000e+00> : vector<8x8xf32>
    %122 = tpu.matmul %119, %121, %cst_53 {dimension_numbers = #tpu.dot_dimension_numbers<[1], [0], [0], [1], [0, 0, 1, 1], [], []>} : vector<8x8xbf16>, vector<8x8xbf16>, vector<8x8xf32> -> vector<8x8xf32>
    %c0_54 = arith.constant 0 : index
    %c24_55 = arith.constant 24 : index
    %123 = vector.load %arg30[%c0_54, %c24_55] : memref<8x32xf32, #tpu.memory_space<vmem>>, vector<8x8xf32>
    tpu.vector_store %arg30[%c0_54, %c24_55], %122 {strides = array<i32>} : memref<8x32xf32, #tpu.memory_space<vmem>>, vector<8x8xf32>,
    %c0_56 = arith.constant 0 : index
    %c0_57 = arith.constant 0 : index
    %124 = vector.load %arg30[%c0_56, %c0_57] : memref<8x32xf32, #tpu.memory_space<vmem>>, vector<8x32xf32>
    %125 = arith.truncf %124 : vector<8x32xf32> to vector<8x32xbf16>
    %c0_58 = arith.constant 0 : index
    %c0_59 = arith.constant 0 : index
    %126 = vector.load %arg9[%c0_58, %c0_59] : memref<32x32xbf16, #tpu.memory_space<vmem>>, vector<32x32xbf16>
    %cst_60 = arith.constant dense<0.000000e+00> : vector<8x32xf32>
    %127 = tpu.matmul %125, %126, %cst_60 {dimension_numbers = #tpu.dot_dimension_numbers<[1], [0], [0], [1], [0, 0, 1, 1], [], []>} : vector<8x32xbf16>, vector<32x32xbf16>, vector<8x32xf32> -> vector<8x32xf32>
    %c0_61 = arith.constant 0 : index
    %c0_62 = arith.constant 0 : index
    %128 = vector.load %arg10[%c0_61, %c0_62] : memref<1x32xf32, #tpu.memory_space<vmem>>, vector<1x32xf32>
    %129 = vector.broadcast %128 : vector<1x32xf32> to vector<8x32xf32>
    %130 = arith.addf %127, %129 : vector<8x32xf32>
    %131 = arith.addf %130, %1 : vector<8x32xf32>
    %cst_63 = arith.constant dense<0.000000e+00> : vector<8xf32>
    %132 = vector.multi_reduction <add>, %131, %cst_63 [1] : vector<8x32xf32> to vector<8xf32>
    %133 = vector.shape_cast %132 : vector<8xf32> to vector<8x1xf32>
    %cst_64 = arith.constant 3.200000e+01 : f32
    %134 = vector.broadcast %cst_64 : f32 to vector<8x1xf32>
    %135 = arith.divf %133, %134 : vector<8x1xf32>
    %136 = vector.broadcast %135 : vector<8x1xf32> to vector<8x32xf32>
    %137 = arith.subf %131, %136 : vector<8x32xf32>
    %138 = arith.mulf %137, %137 : vector<8x32xf32>
    %cst_65 = arith.constant dense<0.000000e+00> : vector<8xf32>
    %139 = vector.multi_reduction <add>, %138, %cst_65 [1] : vector<8x32xf32> to vector<8xf32>
    %140 = vector.shape_cast %139 : vector<8xf32> to vector<8x1xf32>
    %cst_66 = arith.constant 3.200000e+01 : f32
    %141 = vector.broadcast %cst_66 : f32 to vector<8x1xf32>
    %142 = arith.divf %140, %141 : vector<8x1xf32>
    %143 = vector.broadcast %135 : vector<8x1xf32> to vector<8x32xf32>
    %144 = arith.subf %131, %143 : vector<8x32xf32>
    %cst_67 = arith.constant 9.99999997E-7 : f32
    %145 = vector.broadcast %cst_67 : f32 to vector<8x1xf32>
    %146 = arith.addf %142, %145 : vector<8x1xf32>
    %147 = math.rsqrt %146 : vector<8x1xf32>
    %148 = vector.broadcast %147 : vector<8x1xf32> to vector<8x32xf32>
    %149 = arith.mulf %144, %148 : vector<8x32xf32>
    %c0_68 = arith.constant 0 : index
    %c0_69 = arith.constant 0 : index
    %150 = vector.load %arg11[%c0_68, %c0_69] : memref<1x32xf32, #tpu.memory_space<vmem>>, vector<1x32xf32>
    %151 = vector.broadcast %150 : vector<1x32xf32> to vector<8x32xf32>
    %152 = arith.mulf %149, %151 : vector<8x32xf32>
    %c0_70 = arith.constant 0 : index
    %c0_71 = arith.constant 0 : index
    %153 = vector.load %arg12[%c0_70, %c0_71] : memref<1x32xf32, #tpu.memory_space<vmem>>, vector<1x32xf32>
    %154 = vector.broadcast %153 : vector<1x32xf32> to vector<8x32xf32>
    %155 = arith.addf %152, %154 : vector<8x32xf32>
    %c0_72 = arith.constant 0 : index
    %c0_73 = arith.constant 0 : index
    %c0_74 = arith.constant 0 : index
    %156 = vector.load %arg2[%c0_72, %c0_73, %c0_74] : memref<1x8x32xf32, #tpu.memory_space<vmem>>, vector<1x8x32xf32>
    %157 = vector.shape_cast %156 : vector<1x8x32xf32> to vector<8x32xf32>
    %158 = arith.truncf %155 : vector<8x32xf32> to vector<8x32xbf16>
    %c0_75 = arith.constant 0 : index
    %c0_76 = arith.constant 0 : index
    %159 = vector.load %arg13[%c0_75, %c0_76] : memref<32x32xbf16, #tpu.memory_space<vmem>>, vector<32x32xbf16>
    %cst_77 = arith.constant dense<0.000000e+00> : vector<8x32xf32>
    %160 = tpu.matmul %158, %159, %cst_77 {dimension_numbers = #tpu.dot_dimension_numbers<[1], [0], [0], [1], [0, 0, 1, 1], [], []>} : vector<8x32xbf16>, vector<32x32xbf16>, vector<8x32xf32> -> vector<8x32xf32>
    %c0_78 = arith.constant 0 : index
    %c0_79 = arith.constant 0 : index
    %161 = vector.load %arg14[%c0_78, %c0_79] : memref<1x32xf32, #tpu.memory_space<vmem>>, vector<1x32xf32>
    %162 = vector.broadcast %161 : vector<1x32xf32> to vector<8x32xf32>
    %163 = arith.addf %160, %162 : vector<8x32xf32>
    %164 = arith.truncf %157 : vector<8x32xf32> to vector<8x32xbf16>
    %c0_80 = arith.constant 0 : index
    %c0_81 = arith.constant 0 : index
    %165 = vector.load %arg15[%c0_80, %c0_81] : memref<32x64xbf16, #tpu.memory_space<vmem>>, vector<32x64xbf16>
    %cst_82 = arith.constant dense<0.000000e+00> : vector<8x64xf32>
    %166 = tpu.matmul %164, %165, %cst_82 {dimension_numbers = #tpu.dot_dimension_numbers<[1], [0], [0], [1], [0, 0, 1, 1], [], []>} : vector<8x32xbf16>, vector<32x64xbf16>, vector<8x64xf32> -> vector<8x64xf32>
    %c0_83 = arith.constant 0 : index
    %c0_84 = arith.constant 0 : index
    %167 = vector.load %arg16[%c0_83, %c0_84] : memref<1x64xf32, #tpu.memory_space<vmem>>, vector<1x64xf32>
    %168 = vector.broadcast %167 : vector<1x64xf32> to vector<8x64xf32>
    %169 = arith.addf %166, %168 : vector<8x64xf32>
    %170 = vector.extract_strided_slice %169 {offsets = [0, 0], sizes = [8, 32], strides = [1, 1]} : vector<8x64xf32> to vector<8x32xf32>
    %171 = vector.extract_strided_slice %169 {offsets = [0, 32], sizes = [8, 32], strides = [1, 1]} : vector<8x64xf32> to vector<8x32xf32>
    %172 = vector.extract_strided_slice %163 {offsets = [0, 0], sizes = [8, 8], strides = [1, 1]} : vector<8x32xf32> to vector<8x8xf32>
    %173 = arith.truncf %172 : vector<8x8xf32> to vector<8x8xbf16>
    %174 = vector.extract_strided_slice %170 {offsets = [0, 0], sizes = [8, 8], strides = [1, 1]} : vector<8x32xf32> to vector<8x8xf32>
    %175 = arith.truncf %174 : vector<8x8xf32> to vector<8x8xbf16>
    %cst_85 = arith.constant dense<0.000000e+00> : vector<8x8xf32>
    %176 = tpu.matmul %173, %175, %cst_85 {dimension_numbers = #tpu.dot_dimension_numbers<[1], [1], [0], [0], [0, 0, 1, 0], [], []>} : vector<8x8xbf16>, vector<8x8xbf16>, vector<8x8xf32> -> vector<8x8xf32>
    %cst_86 = arith.constant 0.353553385 : f32
    %177 = vector.broadcast %cst_86 : f32 to vector<8x8xf32>
    %178 = arith.mulf %176, %177 : vector<8x8xf32>
    %179 = vector.broadcast %9 : vector<1x8xf32> to vector<8x8xf32>
    %180 = arith.addf %178, %179 : vector<8x8xf32>
    %cst_87 = arith.constant dense<0xFF800000> : vector<8xf32>
    %181 = vector.multi_reduction <maximumf>, %180, %cst_87 [1] : vector<8x8xf32> to vector<8xf32>
    %182 = vector.shape_cast %181 : vector<8xf32> to vector<8x1xf32>
    %183 = vector.broadcast %182 : vector<8x1xf32> to vector<8x8xf32>
    %184 = arith.subf %180, %183 : vector<8x8xf32>
    %185 = math.exp %184 : vector<8x8xf32>
    %cst_88 = arith.constant dense<0.000000e+00> : vector<8xf32>
    %186 = vector.multi_reduction <add>, %185, %cst_88 [1] : vector<8x8xf32> to vector<8xf32>
    %187 = vector.shape_cast %186 : vector<8xf32> to vector<8x1xf32>
    %188 = vector.broadcast %187 : vector<8x1xf32> to vector<8x8xf32>
    %189 = arith.divf %185, %188 : vector<8x8xf32>
    %c0_89 = arith.constant 0 : index
    %c0_90 = arith.constant 0 : index
    %c0_91 = arith.constant 0 : index
    %190 = vector.load %arg29[%c0_89, %c0_90, %c0_91] : memref<1x8x32xf32, #tpu.memory_space<vmem>>, vector<1x8x8xf32>
    %191 = vector.shape_cast %190 : vector<1x8x8xf32> to vector<8x8xf32>
    %192 = vector.shape_cast %189 : vector<8x8xf32> to vector<1x8x8xf32>
    tpu.vector_store %arg29[%c0_89, %c0_90, %c0_91], %192 {strides = array<i32>} : memref<1x8x32xf32, #tpu.memory_space<vmem>>, vector<1x8x8xf32>,
    %193 = arith.truncf %189 : vector<8x8xf32> to vector<8x8xbf16>
    %194 = vector.extract_strided_slice %171 {offsets = [0, 0], sizes = [8, 8], strides = [1, 1]} : vector<8x32xf32> to vector<8x8xf32>
    %195 = arith.truncf %194 : vector<8x8xf32> to vector<8x8xbf16>
    %cst_92 = arith.constant dense<0.000000e+00> : vector<8x8xf32>
    %196 = tpu.matmul %193, %195, %cst_92 {dimension_numbers = #tpu.dot_dimension_numbers<[1], [0], [0], [1], [0, 0, 1, 1], [], []>} : vector<8x8xbf16>, vector<8x8xbf16>, vector<8x8xf32> -> vector<8x8xf32>
    %c0_93 = arith.constant 0 : index
    %c0_94 = arith.constant 0 : index
    %197 = vector.load %arg30[%c0_93, %c0_94] : memref<8x32xf32, #tpu.memory_space<vmem>>, vector<8x8xf32>
    tpu.vector_store %arg30[%c0_93, %c0_94], %196 {strides = array<i32>} : memref<8x32xf32, #tpu.memory_space<vmem>>, vector<8x8xf32>,
    %198 = vector.extract_strided_slice %163 {offsets = [0, 8], sizes = [8, 8], strides = [1, 1]} : vector<8x32xf32> to vector<8x8xf32>
    %199 = arith.truncf %198 : vector<8x8xf32> to vector<8x8xbf16>
    %200 = vector.extract_strided_slice %170 {offsets = [0, 8], sizes = [8, 8], strides = [1, 1]} : vector<8x32xf32> to vector<8x8xf32>
    %201 = arith.truncf %200 : vector<8x8xf32> to vector<8x8xbf16>
    %cst_95 = arith.constant dense<0.000000e+00> : vector<8x8xf32>
    %202 = tpu.matmul %199, %201, %cst_95 {dimension_numbers = #tpu.dot_dimension_numbers<[1], [1], [0], [0], [0, 0, 1, 0], [], []>} : vector<8x8xbf16>, vector<8x8xbf16>, vector<8x8xf32> -> vector<8x8xf32>
    %cst_96 = arith.constant 0.353553385 : f32
    %203 = vector.broadcast %cst_96 : f32 to vector<8x8xf32>
    %204 = arith.mulf %202, %203 : vector<8x8xf32>
    %205 = vector.broadcast %9 : vector<1x8xf32> to vector<8x8xf32>
    %206 = arith.addf %204, %205 : vector<8x8xf32>
    %cst_97 = arith.constant dense<0xFF800000> : vector<8xf32>
    %207 = vector.multi_reduction <maximumf>, %206, %cst_97 [1] : vector<8x8xf32> to vector<8xf32>
    %208 = vector.shape_cast %207 : vector<8xf32> to vector<8x1xf32>
    %209 = vector.broadcast %208 : vector<8x1xf32> to vector<8x8xf32>
    %210 = arith.subf %206, %209 : vector<8x8xf32>
    %211 = math.exp %210 : vector<8x8xf32>
    %cst_98 = arith.constant dense<0.000000e+00> : vector<8xf32>
    %212 = vector.multi_reduction <add>, %211, %cst_98 [1] : vector<8x8xf32> to vector<8xf32>
    %213 = vector.shape_cast %212 : vector<8xf32> to vector<8x1xf32>
    %214 = vector.broadcast %213 : vector<8x1xf32> to vector<8x8xf32>
    %215 = arith.divf %211, %214 : vector<8x8xf32>
    %c0_99 = arith.constant 0 : index
    %c0_100 = arith.constant 0 : index
    %c8_101 = arith.constant 8 : index
    %216 = vector.load %arg29[%c0_99, %c0_100, %c8_101] : memref<1x8x32xf32, #tpu.memory_space<vmem>>, vector<1x8x8xf32>
    %217 = vector.shape_cast %216 : vector<1x8x8xf32> to vector<8x8xf32>
    %218 = vector.shape_cast %215 : vector<8x8xf32> to vector<1x8x8xf32>
    tpu.vector_store %arg29[%c0_99, %c0_100, %c8_101], %218 {strides = array<i32>} : memref<1x8x32xf32, #tpu.memory_space<vmem>>, vector<1x8x8xf32>,
    %219 = arith.truncf %215 : vector<8x8xf32> to vector<8x8xbf16>
    %220 = vector.extract_strided_slice %171 {offsets = [0, 8], sizes = [8, 8], strides = [1, 1]} : vector<8x32xf32> to vector<8x8xf32>
    %221 = arith.truncf %220 : vector<8x8xf32> to vector<8x8xbf16>
    %cst_102 = arith.constant dense<0.000000e+00> : vector<8x8xf32>
    %222 = tpu.matmul %219, %221, %cst_102 {dimension_numbers = #tpu.dot_dimension_numbers<[1], [0], [0], [1], [0, 0, 1, 1], [], []>} : vector<8x8xbf16>, vector<8x8xbf16>, vector<8x8xf32> -> vector<8x8xf32>
    %c0_103 = arith.constant 0 : index
    %c8_104 = arith.constant 8 : index
    %223 = vector.load %arg30[%c0_103, %c8_104] : memref<8x32xf32, #tpu.memory_space<vmem>>, vector<8x8xf32>
    tpu.vector_store %arg30[%c0_103, %c8_104], %222 {strides = array<i32>} : memref<8x32xf32, #tpu.memory_space<vmem>>, vector<8x8xf32>,
    %224 = vector.extract_strided_slice %163 {offsets = [0, 16], sizes = [8, 8], strides = [1, 1]} : vector<8x32xf32> to vector<8x8xf32>
    %225 = arith.truncf %224 : vector<8x8xf32> to vector<8x8xbf16>
    %226 = vector.extract_strided_slice %170 {offsets = [0, 16], sizes = [8, 8], strides = [1, 1]} : vector<8x32xf32> to vector<8x8xf32>
    %227 = arith.truncf %226 : vector<8x8xf32> to vector<8x8xbf16>
    %cst_105 = arith.constant dense<0.000000e+00> : vector<8x8xf32>
    %228 = tpu.matmul %225, %227, %cst_105 {dimension_numbers = #tpu.dot_dimension_numbers<[1], [1], [0], [0], [0, 0, 1, 0], [], []>} : vector<8x8xbf16>, vector<8x8xbf16>, vector<8x8xf32> -> vector<8x8xf32>
    %cst_106 = arith.constant 0.353553385 : f32
    %229 = vector.broadcast %cst_106 : f32 to vector<8x8xf32>
    %230 = arith.mulf %228, %229 : vector<8x8xf32>
    %231 = vector.broadcast %9 : vector<1x8xf32> to vector<8x8xf32>
    %232 = arith.addf %230, %231 : vector<8x8xf32>
    %cst_107 = arith.constant dense<0xFF800000> : vector<8xf32>
    %233 = vector.multi_reduction <maximumf>, %232, %cst_107 [1] : vector<8x8xf32> to vector<8xf32>
    %234 = vector.shape_cast %233 : vector<8xf32> to vector<8x1xf32>
    %235 = vector.broadcast %234 : vector<8x1xf32> to vector<8x8xf32>
    %236 = arith.subf %232, %235 : vector<8x8xf32>
    %237 = math.exp %236 : vector<8x8xf32>
    %cst_108 = arith.constant dense<0.000000e+00> : vector<8xf32>
    %238 = vector.multi_reduction <add>, %237, %cst_108 [1] : vector<8x8xf32> to vector<8xf32>
    %239 = vector.shape_cast %238 : vector<8xf32> to vector<8x1xf32>
    %240 = vector.broadcast %239 : vector<8x1xf32> to vector<8x8xf32>
    %241 = arith.divf %237, %240 : vector<8x8xf32>
    %c0_109 = arith.constant 0 : index
    %c0_110 = arith.constant 0 : index
    %c16_111 = arith.constant 16 : index
    %242 = vector.load %arg29[%c0_109, %c0_110, %c16_111] : memref<1x8x32xf32, #tpu.memory_space<vmem>>, vector<1x8x8xf32>
    %243 = vector.shape_cast %242 : vector<1x8x8xf32> to vector<8x8xf32>
    %244 = vector.shape_cast %241 : vector<8x8xf32> to vector<1x8x8xf32>
    tpu.vector_store %arg29[%c0_109, %c0_110, %c16_111], %244 {strides = array<i32>} : memref<1x8x32xf32, #tpu.memory_space<vmem>>, vector<1x8x8xf32>,
    %245 = arith.truncf %241 : vector<8x8xf32> to vector<8x8xbf16>
    %246 = vector.extract_strided_slice %171 {offsets = [0, 16], sizes = [8, 8], strides = [1, 1]} : vector<8x32xf32> to vector<8x8xf32>
    %247 = arith.truncf %246 : vector<8x8xf32> to vector<8x8xbf16>
    %cst_112 = arith.constant dense<0.000000e+00> : vector<8x8xf32>
    %248 = tpu.matmul %245, %247, %cst_112 {dimension_numbers = #tpu.dot_dimension_numbers<[1], [0], [0], [1], [0, 0, 1, 1], [], []>} : vector<8x8xbf16>, vector<8x8xbf16>, vector<8x8xf32> -> vector<8x8xf32>
    %c0_113 = arith.constant 0 : index
    %c16_114 = arith.constant 16 : index
    %249 = vector.load %arg30[%c0_113, %c16_114] : memref<8x32xf32, #tpu.memory_space<vmem>>, vector<8x8xf32>
    tpu.vector_store %arg30[%c0_113, %c16_114], %248 {strides = array<i32>} : memref<8x32xf32, #tpu.memory_space<vmem>>, vector<8x8xf32>,
    %250 = vector.extract_strided_slice %163 {offsets = [0, 24], sizes = [8, 8], strides = [1, 1]} : vector<8x32xf32> to vector<8x8xf32>
    %251 = arith.truncf %250 : vector<8x8xf32> to vector<8x8xbf16>
    %252 = vector.extract_strided_slice %170 {offsets = [0, 24], sizes = [8, 8], strides = [1, 1]} : vector<8x32xf32> to vector<8x8xf32>
    %253 = arith.truncf %252 : vector<8x8xf32> to vector<8x8xbf16>
    %cst_115 = arith.constant dense<0.000000e+00> : vector<8x8xf32>
    %254 = tpu.matmul %251, %253, %cst_115 {dimension_numbers = #tpu.dot_dimension_numbers<[1], [1], [0], [0], [0, 0, 1, 0], [], []>} : vector<8x8xbf16>, vector<8x8xbf16>, vector<8x8xf32> -> vector<8x8xf32>
    %cst_116 = arith.constant 0.353553385 : f32
    %255 = vector.broadcast %cst_116 : f32 to vector<8x8xf32>
    %256 = arith.mulf %254, %255 : vector<8x8xf32>
    %257 = vector.broadcast %9 : vector<1x8xf32> to vector<8x8xf32>
    %258 = arith.addf %256, %257 : vector<8x8xf32>
    %cst_117 = arith.constant dense<0xFF800000> : vector<8xf32>
    %259 = vector.multi_reduction <maximumf>, %258, %cst_117 [1] : vector<8x8xf32> to vector<8xf32>
    %260 = vector.shape_cast %259 : vector<8xf32> to vector<8x1xf32>
    %261 = vector.broadcast %260 : vector<8x1xf32> to vector<8x8xf32>
    %262 = arith.subf %258, %261 : vector<8x8xf32>
    %263 = math.exp %262 : vector<8x8xf32>
    %cst_118 = arith.constant dense<0.000000e+00> : vector<8xf32>
    %264 = vector.multi_reduction <add>, %263, %cst_118 [1] : vector<8x8xf32> to vector<8xf32>
    %265 = vector.shape_cast %264 : vector<8xf32> to vector<8x1xf32>
    %266 = vector.broadcast %265 : vector<8x1xf32> to vector<8x8xf32>
    %267 = arith.divf %263, %266 : vector<8x8xf32>
    %c0_119 = arith.constant 0 : index
    %c0_120 = arith.constant 0 : index
    %c24_121 = arith.constant 24 : index
    %268 = vector.load %arg29[%c0_119, %c0_120, %c24_121] : memref<1x8x32xf32, #tpu.memory_space<vmem>>, vector<1x8x8xf32>
    %269 = vector.shape_cast %268 : vector<1x8x8xf32> to vector<8x8xf32>
    %270 = vector.shape_cast %267 : vector<8x8xf32> to vector<1x8x8xf32>
    tpu.vector_store %arg29[%c0_119, %c0_120, %c24_121], %270 {strides = array<i32>} : memref<1x8x32xf32, #tpu.memory_space<vmem>>, vector<1x8x8xf32>,
    %271 = arith.truncf %267 : vector<8x8xf32> to vector<8x8xbf16>
    %272 = vector.extract_strided_slice %171 {offsets = [0, 24], sizes = [8, 8], strides = [1, 1]} : vector<8x32xf32> to vector<8x8xf32>
    %273 = arith.truncf %272 : vector<8x8xf32> to vector<8x8xbf16>
    %cst_122 = arith.constant dense<0.000000e+00> : vector<8x8xf32>
    %274 = tpu.matmul %271, %273, %cst_122 {dimension_numbers = #tpu.dot_dimension_numbers<[1], [0], [0], [1], [0, 0, 1, 1], [], []>} : vector<8x8xbf16>, vector<8x8xbf16>, vector<8x8xf32> -> vector<8x8xf32>
    %c0_123 = arith.constant 0 : index
    %c24_124 = arith.constant 24 : index
    %275 = vector.load %arg30[%c0_123, %c24_124] : memref<8x32xf32, #tpu.memory_space<vmem>>, vector<8x8xf32>
    tpu.vector_store %arg30[%c0_123, %c24_124], %274 {strides = array<i32>} : memref<8x32xf32, #tpu.memory_space<vmem>>, vector<8x8xf32>,
    %c0_125 = arith.constant 0 : index
    %c0_126 = arith.constant 0 : index
    %276 = vector.load %arg30[%c0_125, %c0_126] : memref<8x32xf32, #tpu.memory_space<vmem>>, vector<8x32xf32>
    %277 = arith.truncf %276 : vector<8x32xf32> to vector<8x32xbf16>
    %c0_127 = arith.constant 0 : index
    %c0_128 = arith.constant 0 : index
    %278 = vector.load %arg17[%c0_127, %c0_128] : memref<32x32xbf16, #tpu.memory_space<vmem>>, vector<32x32xbf16>
    %cst_129 = arith.constant dense<0.000000e+00> : vector<8x32xf32>
    %279 = tpu.matmul %277, %278, %cst_129 {dimension_numbers = #tpu.dot_dimension_numbers<[1], [0], [0], [1], [0, 0, 1, 1], [], []>} : vector<8x32xbf16>, vector<32x32xbf16>, vector<8x32xf32> -> vector<8x32xf32>
    %c0_130 = arith.constant 0 : index
    %c0_131 = arith.constant 0 : index
    %280 = vector.load %arg18[%c0_130, %c0_131] : memref<1x32xf32, #tpu.memory_space<vmem>>, vector<1x32xf32>
    %281 = vector.broadcast %280 : vector<1x32xf32> to vector<8x32xf32>
    %282 = arith.addf %279, %281 : vector<8x32xf32>
    %283 = arith.addf %282, %155 : vector<8x32xf32>
    %cst_132 = arith.constant dense<0.000000e+00> : vector<8xf32>
    %284 = vector.multi_reduction <add>, %283, %cst_132 [1] : vector<8x32xf32> to vector<8xf32>
    %285 = vector.shape_cast %284 : vector<8xf32> to vector<8x1xf32>
    %cst_133 = arith.constant 3.200000e+01 : f32
    %286 = vector.broadcast %cst_133 : f32 to vector<8x1xf32>
    %287 = arith.divf %285, %286 : vector<8x1xf32>
    %288 = vector.broadcast %287 : vector<8x1xf32> to vector<8x32xf32>
    %289 = arith.subf %283, %288 : vector<8x32xf32>
    %290 = arith.mulf %289, %289 : vector<8x32xf32>
    %cst_134 = arith.constant dense<0.000000e+00> : vector<8xf32>
    %291 = vector.multi_reduction <add>, %290, %cst_134 [1] : vector<8x32xf32> to vector<8xf32>
    %292 = vector.shape_cast %291 : vector<8xf32> to vector<8x1xf32>
    %cst_135 = arith.constant 3.200000e+01 : f32
    %293 = vector.broadcast %cst_135 : f32 to vector<8x1xf32>
    %294 = arith.divf %292, %293 : vector<8x1xf32>
    %295 = vector.broadcast %287 : vector<8x1xf32> to vector<8x32xf32>
    %296 = arith.subf %283, %295 : vector<8x32xf32>
    %cst_136 = arith.constant 9.99999997E-7 : f32
    %297 = vector.broadcast %cst_136 : f32 to vector<8x1xf32>
    %298 = arith.addf %294, %297 : vector<8x1xf32>
    %299 = math.rsqrt %298 : vector<8x1xf32>
    %300 = vector.broadcast %299 : vector<8x1xf32> to vector<8x32xf32>
    %301 = arith.mulf %296, %300 : vector<8x32xf32>
    %c0_137 = arith.constant 0 : index
    %c0_138 = arith.constant 0 : index
    %302 = vector.load %arg19[%c0_137, %c0_138] : memref<1x32xf32, #tpu.memory_space<vmem>>, vector<1x32xf32>
    %303 = vector.broadcast %302 : vector<1x32xf32> to vector<8x32xf32>
    %304 = arith.mulf %301, %303 : vector<8x32xf32>
    %c0_139 = arith.constant 0 : index
    %c0_140 = arith.constant 0 : index
    %305 = vector.load %arg20[%c0_139, %c0_140] : memref<1x32xf32, #tpu.memory_space<vmem>>, vector<1x32xf32>
    %306 = vector.broadcast %305 : vector<1x32xf32> to vector<8x32xf32>
    %307 = arith.addf %304, %306 : vector<8x32xf32>
    %308 = arith.truncf %307 : vector<8x32xf32> to vector<8x32xbf16>
    %c0_141 = arith.constant 0 : index
    %c0_142 = arith.constant 0 : index
    %309 = vector.load %arg21[%c0_141, %c0_142] : memref<32x64xbf16, #tpu.memory_space<vmem>>, vector<32x64xbf16>
    %cst_143 = arith.constant dense<0.000000e+00> : vector<8x64xf32>
    %310 = tpu.matmul %308, %309, %cst_143 {dimension_numbers = #tpu.dot_dimension_numbers<[1], [0], [0], [1], [0, 0, 1, 1], [], []>} : vector<8x32xbf16>, vector<32x64xbf16>, vector<8x64xf32> -> vector<8x64xf32>
    %c0_144 = arith.constant 0 : index
    %c0_145 = arith.constant 0 : index
    %311 = vector.load %arg22[%c0_144, %c0_145] : memref<1x64xf32, #tpu.memory_space<vmem>>, vector<1x64xf32>
    %312 = vector.broadcast %311 : vector<1x64xf32> to vector<8x64xf32>
    %313 = arith.addf %310, %312 : vector<8x64xf32>
    %cst_146 = arith.constant 0.000000e+00 : f32
    %314 = vector.broadcast %cst_146 : f32 to vector<8x64xf32>
    %315 = arith.maximumf %313, %314 : vector<8x64xf32>
    %316 = arith.truncf %315 : vector<8x64xf32> to vector<8x64xbf16>
    %c0_147 = arith.constant 0 : index
    %c0_148 = arith.constant 0 : index
    %317 = vector.load %arg23[%c0_147, %c0_148] : memref<64x32xbf16, #tpu.memory_space<vmem>>, vector<64x32xbf16>
    %cst_149 = arith.constant dense<0.000000e+00> : vector<8x32xf32>
    %318 = tpu.matmul %316, %317, %cst_149 {dimension_numbers = #tpu.dot_dimension_numbers<[1], [0], [0], [1], [0, 0, 1, 1], [], []>} : vector<8x64xbf16>, vector<64x32xbf16>, vector<8x32xf32> -> vector<8x32xf32>
    %c0_150 = arith.constant 0 : index
    %c0_151 = arith.constant 0 : index
    %319 = vector.load %arg24[%c0_150, %c0_151] : memref<1x32xf32, #tpu.memory_space<vmem>>, vector<1x32xf32>
    %320 = vector.broadcast %319 : vector<1x32xf32> to vector<8x32xf32>
    %321 = arith.addf %318, %320 : vector<8x32xf32>
    %322 = arith.addf %321, %307 : vector<8x32xf32>
    %cst_152 = arith.constant dense<0.000000e+00> : vector<8xf32>
    %323 = vector.multi_reduction <add>, %322, %cst_152 [1] : vector<8x32xf32> to vector<8xf32>
    %324 = vector.shape_cast %323 : vector<8xf32> to vector<8x1xf32>
    %cst_153 = arith.constant 3.200000e+01 : f32
    %325 = vector.broadcast %cst_153 : f32 to vector<8x1xf32>
    %326 = arith.divf %324, %325 : vector<8x1xf32>
    %327 = vector.broadcast %326 : vector<8x1xf32> to vector<8x32xf32>
    %328 = arith.subf %322, %327 : vector<8x32xf32>
    %329 = arith.mulf %328, %328 : vector<8x32xf32>
    %cst_154 = arith.constant dense<0.000000e+00> : vector<8xf32>
    %330 = vector.multi_reduction <add>, %329, %cst_154 [1] : vector<8x32xf32> to vector<8xf32>
    %331 = vector.shape_cast %330 : vector<8xf32> to vector<8x1xf32>
    %cst_155 = arith.constant 3.200000e+01 : f32
    %332 = vector.broadcast %cst_155 : f32 to vector<8x1xf32>
    %333 = arith.divf %331, %332 : vector<8x1xf32>
    %334 = vector.broadcast %326 : vector<8x1xf32> to vector<8x32xf32>
    %335 = arith.subf %322, %334 : vector<8x32xf32>
    %cst_156 = arith.constant 9.99999997E-7 : f32
    %336 = vector.broadcast %cst_156 : f32 to vector<8x1xf32>
    %337 = arith.addf %333, %336 : vector<8x1xf32>
    %338 = math.rsqrt %337 : vector<8x1xf32>
    %339 = vector.broadcast %338 : vector<8x1xf32> to vector<8x32xf32>
    %340 = arith.mulf %335, %339 : vector<8x32xf32>
    %c0_157 = arith.constant 0 : index
    %c0_158 = arith.constant 0 : index
    %341 = vector.load %arg25[%c0_157, %c0_158] : memref<1x32xf32, #tpu.memory_space<vmem>>, vector<1x32xf32>
    %342 = vector.broadcast %341 : vector<1x32xf32> to vector<8x32xf32>
    %343 = arith.mulf %340, %342 : vector<8x32xf32>
    %c0_159 = arith.constant 0 : index
    %c0_160 = arith.constant 0 : index
    %344 = vector.load %arg26[%c0_159, %c0_160] : memref<1x32xf32, #tpu.memory_space<vmem>>, vector<1x32xf32>
    %345 = vector.broadcast %344 : vector<1x32xf32> to vector<8x32xf32>
    %346 = arith.addf %343, %345 : vector<8x32xf32>
    %c0_161 = arith.constant 0 : index
    %c0_162 = arith.constant 0 : index
    %c0_163 = arith.constant 0 : index
    %347 = vector.load %arg27[%c0_161, %c0_162, %c0_163] : memref<1x8x32xf32, #tpu.memory_space<vmem>>, vector<1x8x32xf32>
    %348 = vector.shape_cast %347 : vector<1x8x32xf32> to vector<8x32xf32>
    %349 = vector.shape_cast %346 : vector<8x32xf32> to vector<1x8x32xf32>
    tpu.vector_store %arg27[%c0_161, %c0_162, %c0_163], %349 {strides = array<i32>} : memref<1x8x32xf32, #tpu.memory_space<vmem>>, vector<1x8x32xf32>,
    return
  }
  func.func @transform_0(%arg0: i32) -> (i32, i32, i32) {
    %c0_i32 = arith.constant 0 : i32
    %c0_i32_0 = arith.constant 0 : i32
    %c0_i32_1 = arith.constant 0 : i32
    return %arg0, %c0_i32, %c0_i32_0 : i32, i32, i32
  }
  func.func @transform_1(%arg0: i32) -> (i32, i32, i32) {
    %c0_i32 = arith.constant 0 : i32
    %c0_i32_0 = arith.constant 0 : i32
    %c0_i32_1 = arith.constant 0 : i32
    return %arg0, %c0_i32, %c0_i32_0 : i32, i32, i32
  }
  func.func @transform_2(%arg0: i32) -> (i32, i32, i32) {
    %c0_i32 = arith.constant 0 : i32
    %c0_i32_0 = arith.constant 0 : i32
    %c0_i32_1 = arith.constant 0 : i32
    %c0_i32_2 = arith.constant 0 : i32
    return %c0_i32, %c0_i32_0, %c0_i32_1 : i32, i32, i32
  }
  func.func @transform_3(%arg0: i32) -> (i32, i32, i32) {
    %c0_i32 = arith.constant 0 : i32
    %c0_i32_0 = arith.constant 0 : i32
    %c0_i32_1 = arith.constant 0 : i32
    return %arg0, %c0_i32, %c0_i32_0 : i32, i32, i32
  }
  func.func @transform_4(%arg0: i32) -> (i32, i32) {
    %c0_i32 = arith.constant 0 : i32
    %c0_i32_0 = arith.constant 0 : i32
    %c0_i32_1 = arith.constant 0 : i32
    return %c0_i32, %c0_i32_0 : i32, i32
  }
  func.func @transform_5(%arg0: i32) -> (i32, i32) {
    %c0_i32 = arith.constant 0 : i32
    %c0_i32_0 = arith.constant 0 : i32
    %c0_i32_1 = arith.constant 0 : i32
    return %c0_i32, %c0_i32_0 : i32, i32
  }
  func.func @transform_6(%arg0: i32) -> (i32, i32) {
    %c0_i32 = arith.constant 0 : i32
    %c0_i32_0 = arith.constant 0 : i32
    %c0_i32_1 = arith.constant 0 : i32
    return %c0_i32, %c0_i32_0 : i32, i32
  }
  func.func @transform_7(%arg0: i32) -> (i32, i32) {
    %c0_i32 = arith.constant 0 : i32
    %c0_i32_0 = arith.constant 0 : i32
    %c0_i32_1 = arith.constant 0 : i32
    return %c0_i32, %c0_i32_0 : i32, i32
  }
  func.func @transform_8(%arg0: i32) -> (i32, i32) {
    %c0_i32 = arith.constant 0 : i32
    %c0_i32_0 = arith.constant 0 : i32
    %c0_i32_1 = arith.constant 0 : i32
    return %c0_i32, %c0_i32_0 : i32, i32
  }
  func.func @transform_9(%arg0: i32) -> (i32, i32) {
    %c0_i32 = arith.constant 0 : i32
    %c0_i32_0 = arith.constant 0 : i32
    %c0_i32_1 = arith.constant 0 : i32
    return %c0_i32, %c0_i32_0 : i32, i32
  }
  func.func @transform_10(%arg0: i32) -> (i32, i32) {
    %c0_i32 = arith.constant 0 : i32
    %c0_i32_0 = arith.constant 0 : i32
    %c0_i32_1 = arith.constant 0 : i32
    return %c0_i32, %c0_i32_0 : i32, i32
  }
  func.func @transform_11(%arg0: i32) -> (i32, i32) {
    %c0_i32 = arith.constant 0 : i32
    %c0_i32_0 = arith.constant 0 : i32
    %c0_i32_1 = arith.constant 0 : i32
    return %c0_i32, %c0_i32_0 : i32, i32
  }
  func.func @transform_12(%arg0: i32) -> (i32, i32) {
    %c0_i32 = arith.constant 0 : i32
    %c0_i32_0 = arith.constant 0 : i32
    %c0_i32_1 = arith.constant 0 : i32
    return %c0_i32, %c0_i32_0 : i32, i32
  }
  func.func @transform_13(%arg0: i32) -> (i32, i32) {
    %c0_i32 = arith.constant 0 : i32
    %c0_i32_0 = arith.constant 0 : i32
    %c0_i32_1 = arith.constant 0 : i32
    return %c0_i32, %c0_i32_0 : i32, i32
  }
  func.func @transform_14(%arg0: i32) -> (i32, i32) {
    %c0_i32 = arith.constant 0 : i32
    %c0_i32_0 = arith.constant 0 : i32
    %c0_i32_1 = arith.constant 0 : i32
    return %c0_i32, %c0_i32_0 : i32, i32
  }
  func.func @transform_15(%arg0: i32) -> (i32, i32) {
    %c0_i32 = arith.constant 0 : i32
    %c0_i32_0 = arith.constant 0 : i32
    %c0_i32_1 = arith.constant 0 : i32
    return %c0_i32, %c0_i32_0 : i32, i32
  }
  func.func @transform_16(%arg0: i32) -> (i32, i32) {
    %c0_i32 = arith.constant 0 : i32
    %c0_i32_0 = arith.constant 0 : i32
    %c0_i32_1 = arith.constant 0 : i32
    return %c0_i32, %c0_i32_0 : i32, i32
  }
  func.func @transform_17(%arg0: i32) -> (i32, i32) {
    %c0_i32 = arith.constant 0 : i32
    %c0_i32_0 = arith.constant 0 : i32
    %c0_i32_1 = arith.constant 0 : i32
    return %c0_i32, %c0_i32_0 : i32, i32
  }
  func.func @transform_18(%arg0: i32) -> (i32, i32) {
    %c0_i32 = arith.constant 0 : i32
    %c0_i32_0 = arith.constant 0 : i32
    %c0_i32_1 = arith.constant 0 : i32
    return %c0_i32, %c0_i32_0 : i32, i32
  }
  func.func @transform_19(%arg0: i32) -> (i32, i32) {
    %c0_i32 = arith.constant 0 : i32
    %c0_i32_0 = arith.constant 0 : i32
    %c0_i32_1 = arith.constant 0 : i32
    return %c0_i32, %c0_i32_0 : i32, i32
  }
  func.func @transform_20(%arg0: i32) -> (i32, i32) {
    %c0_i32 = arith.constant 0 : i32
    %c0_i32_0 = arith.constant 0 : i32
    %c0_i32_1 = arith.constant 0 : i32
    return %c0_i32, %c0_i32_0 : i32, i32
  }
  func.func @transform_21(%arg0: i32) -> (i32, i32) {
    %c0_i32 = arith.constant 0 : i32
    %c0_i32_0 = arith.constant 0 : i32
    %c0_i32_1 = arith.constant 0 : i32
    return %c0_i32, %c0_i32_0 : i32, i32
  }
  func.func @transform_22(%arg0: i32) -> (i32, i32) {
    %c0_i32 = arith.constant 0 : i32
    %c0_i32_0 = arith.constant 0 : i32
    %c0_i32_1 = arith.constant 0 : i32
    return %c0_i32, %c0_i32_0 : i32, i32
  }
  func.func @transform_23(%arg0: i32) -> (i32, i32) {
    %c0_i32 = arith.constant 0 : i32
    %c0_i32_0 = arith.constant 0 : i32
    %c0_i32_1 = arith.constant 0 : i32
    return %c0_i32, %c0_i32_0 : i32, i32
  }
  func.func @transform_24(%arg0: i32) -> (i32, i32) {
    %c0_i32 = arith.constant 0 : i32
    %c0_i32_0 = arith.constant 0 : i32
    %c0_i32_1 = arith.constant 0 : i32
    return %c0_i32, %c0_i32_0 : i32, i32
  }
  func.func @transform_25(%arg0: i32) -> (i32, i32) {
    %c0_i32 = arith.constant 0 : i32
    %c0_i32_0 = arith.constant 0 : i32
    %c0_i32_1 = arith.constant 0 : i32
    return %c0_i32, %c0_i32_0 : i32, i32
  }
  func.func @transform_26(%arg0: i32) -> (i32, i32, i32) {
    %c0_i32 = arith.constant 0 : i32
    %c0_i32_0 = arith.constant 0 : i32
    %c0_i32_1 = arith.constant 0 : i32
    return %arg0, %c0_i32, %c0_i32_0 : i32, i32, i32
  }
  func.func @transform_27(%arg0: i32) -> (i32, i32, i32) {
    %c0_i32 = arith.constant 0 : i32
    %c0_i32_0 = arith.constant 0 : i32
    %c0_i32_1 = arith.constant 0 : i32
    return %arg0, %c0_i32, %c0_i32_0 : i32, i32, i32
  }
  func.func @transform_28(%arg0: i32) -> (i32, i32, i32) {
    %c0_i32 = arith.constant 0 : i32
    %c0_i32_0 = arith.constant 0 : i32
    %c0_i32_1 = arith.constant 0 : i32
    return %arg0, %c0_i32, %c0_i32_0 : i32, i32, i32
  }
}

module attributes {stable_mosaic.version = 11 : i64} {
  func.func @_decoder_layer_kernel(%arg0: i32, %arg1: memref<1x8x32xf32, #tpu.memory_space<vmem>>, %arg2: memref<1x8x32xf32, #tpu.memory_space<vmem>>, %arg3: memref<1x8x8xf32, #tpu.memory_space<vmem>>, %arg4: memref<1x1x8xf32, #tpu.memory_space<vmem>>, %arg5: memref<32x32xbf16, #tpu.memory_space<vmem>>, %arg6: memref<1x32xf32, #tpu.memory_space<vmem>>, %arg7: memref<32x64xbf16, #tpu.memory_space<vmem>>, %arg8: memref<1x64xf32, #tpu.memory_space<vmem>>, %arg9: memref<32x32xbf16, #tpu.memory_space<vmem>>, %arg10: memref<1x32xf32, #tpu.memory_space<vmem>>, %arg11: memref<1x32xf32, #tpu.memory_space<vmem>>, %arg12: memref<1x32xf32, #tpu.memory_space<vmem>>, %arg13: memref<32x32xbf16, #tpu.memory_space<vmem>>, %arg14: memref<1x32xf32, #tpu.memory_space<vmem>>, %arg15: memref<32x64xbf16, #tpu.memory_space<vmem>>, %arg16: memref<1x64xf32, #tpu.memory_space<vmem>>, %arg17: memref<32x32xbf16, #tpu.memory_space<vmem>>, %arg18: memref<1x32xf32, #tpu.memory_space<vmem>>, %arg19: memref<1x32xf32, #tpu.memory_space<vmem>>, %arg20: memref<1x32xf32, #tpu.memory_space<vmem>>, %arg21: memref<32x64xbf16, #tpu.memory_space<vmem>>, %arg22: memref<1x64xf32, #tpu.memory_space<vmem>>, %arg23: memref<64x32xbf16, #tpu.memory_space<vmem>>, %arg24: memref<1x32xf32, #tpu.memory_space<vmem>>, %arg25: memref<1x32xf32, #tpu.memory_space<vmem>>, %arg26: memref<1x32xf32, #tpu.memory_space<vmem>>, %arg27: memref<1x8x32xf32, #tpu.memory_space<vmem>>, %arg28: memref<1x8x32xf32, #tpu.memory_space<vmem>>, %arg29: memref<1x8x32xf32, #tpu.memory_space<vmem>>, %arg30: memref<8x32xf32, #tpu.memory_space<vmem>>) attributes {dimension_semantics = [#tpu.dimension_semantics<parallel>], iteration_bounds = array<i64: 2>, scalar_prefetch = 0 : i64, scratch_operands = 1 : i64, tpu.core_type = #tpu.core_type<tc>, window_params = [{transform_indices = @transform_0, window_bounds = array<i64: 1, 8, 32>}, {transform_indices = @transform_1, window_bounds = array<i64: 1, 8, 32>}, {pipeline_mode = #tpu.pipeline_mode<synchronous>, transform_indices = @transform_2, window_bounds = array<i64: 1, 8, 8>}, {transform_indices = @transform_3, window_bounds = array<i64: 1, 1, 8>}, {pipeline_mode = #tpu.pipeline_mode<synchronous>, transform_indices = @transform_4, window_bounds = array<i64: 32, 32>}, {pipeline_mode = #tpu.pipeline_mode<synchronous>, transform_indices = @transform_5, window_bounds = array<i64: 1, 32>}, {pipeline_mode = #tpu.pipeline_mode<synchronous>, transform_indices = @transform_6, window_bounds = array<i64: 32, 64>}, {pipeline_mode = #tpu.pipeline_mode<synchronous>, transform_indices = @transform_7, window_bounds = array<i64: 1, 64>}, {pipeline_mode = #tpu.pipeline_mode<synchronous>, transform_indices = @transform_8, window_bounds = array<i64: 32, 32>}, {pipeline_mode = #tpu.pipeline_mode<synchronous>, transform_indices = @transform_9, window_bounds = array<i64: 1, 32>}, {pipeline_mode = #tpu.pipeline_mode<synchronous>, transform_indices = @transform_10, window_bounds = array<i64: 1, 32>}, {pipeline_mode = #tpu.pipeline_mode<synchronous>, transform_indices = @transform_11, window_bounds = array<i64: 1, 32>}, {pipeline_mode = #tpu.pipeline_mode<synchronous>, transform_indices = @transform_12, window_bounds = array<i64: 32, 32>}, {pipeline_mode = #tpu.pipeline_mode<synchronous>, transform_indices = @transform_13, window_bounds = array<i64: 1, 32>}, {pipeline_mode = #tpu.pipeline_mode<synchronous>, transform_indices = @transform_14, window_bounds = array<i64: 32, 64>}, {pipeline_mode = #tpu.pipeline_mode<synchronous>, transform_indices = @transform_15, window_bounds = array<i64: 1, 64>}, {pipeline_mode = #tpu.pipeline_mode<synchronous>, transform_indices = @transform_16, window_bounds = array<i64: 32, 32>}, {pipeline_mode = #tpu.pipeline_mode<synchronous>, transform_indices = @transform_17, window_bounds = array<i64: 1, 32>}, {pipeline_mode = #tpu.pipeline_mode<synchronous>, transform_indices = @transform_18, window_bounds = array<i64: 1, 32>}, {pipeline_mode = #tpu.pipeline_mode<synchronous>, transform_indices = @transform_19, window_bounds = array<i64: 1, 32>}, {pipeline_mode = #tpu.pipeline_mode<synchronous>, transform_indices = @transform_20, window_bounds = array<i64: 32, 64>}, {pipeline_mode = #tpu.pipeline_mode<synchronous>, transform_indices = @transform_21, window_bounds = array<i64: 1, 64>}, {pipeline_mode = #tpu.pipeline_mode<synchronous>, transform_indices = @transform_22, window_bounds = array<i64: 64, 32>}, {pipeline_mode = #tpu.pipeline_mode<synchronous>, transform_indices = @transform_23, window_bounds = array<i64: 1, 32>}, {pipeline_mode = #tpu.pipeline_mode<synchronous>, transform_indices = @transform_24, window_bounds = array<i64: 1, 32>}, {pipeline_mode = #tpu.pipeline_mode<synchronous>, transform_indices = @transform_25, window_bounds = array<i64: 1, 32>}, {transform_indices = @transform_26, window_bounds = array<i64: 1, 8, 32>}, {transform_indices = @transform_27, window_bounds = array<i64: 1, 8, 32>}, {transform_indices = @transform_28, window_bounds = array<i64: 1, 8, 32>}]} {
    %c0 = arith.constant 0 : index
    %c0_0 = arith.constant 0 : index
    %c0_1 = arith.constant 0 : index
    %0 = vector.load %arg1[%c0, %c0_0, %c0_1] : memref<1x8x32xf32, #tpu.memory_space<vmem>>, vector<1x8x32xf32>
    %1 = vector.shape_cast %0 : vector<1x8x32xf32> to vector<8x32xf32>
    %c0_2 = arith.constant 0 : index
    %c0_3 = arith.constant 0 : index
    %c0_4 = arith.constant 0 : index
    %2 = vector.load %arg3[%c0_2, %c0_3, %c0_4] : memref<1x8x8xf32, #tpu.memory_space<vmem>>, vector<1x8x8xf32>
    %3 = vector.shape_cast %2 : vector<1x8x8xf32> to vector<8x8xf32>
    %cst = arith.constant -1.000000e+09 : f32
    %4 = vector.broadcast %cst : f32 to vector<8x8xf32>
    %5 = arith.mulf %3, %4 : vector<8x8xf32>
    %c0_5 = arith.constant 0 : index
    %c0_6 = arith.constant 0 : index
    %c0_7 = arith.constant 0 : index
    %6 = vector.load %arg4[%c0_5, %c0_6, %c0_7] : memref<1x1x8xf32, #tpu.memory_space<vmem>>, vector<1x1x8xf32>
    %7 = vector.shape_cast %6 : vector<1x1x8xf32> to vector<1x8xf32>
    %cst_8 = arith.constant -1.000000e+09 : f32
    %8 = vector.broadcast %cst_8 : f32 to vector<1x8xf32>
    %9 = arith.mulf %7, %8 : vector<1x8xf32>
    %10 = arith.truncf %1 : vector<8x32xf32> to vector<8x32xbf16>
    %c0_9 = arith.constant 0 : index
    %c0_10 = arith.constant 0 : index
    %11 = vector.load %arg5[%c0_9, %c0_10] : memref<32x32xbf16, #tpu.memory_space<vmem>>, vector<32x32xbf16>
    %cst_11 = arith.constant dense<0.000000e+00> : vector<8x32xf32>
    %12 = tpu.matmul %10, %11, %cst_11 {dimension_numbers = #tpu.dot_dimension_numbers<[1], [0], [0], [1], [0, 0, 1, 1], [], []>} : vector<8x32xbf16>, vector<32x32xbf16>, vector<8x32xf32> -> vector<8x32xf32>
    %c0_12 = arith.constant 0 : index
    %c0_13 = arith.constant 0 : index
    %13 = vector.load %arg6[%c0_12, %c0_13] : memref<1x32xf32, #tpu.memory_space<vmem>>, vector<1x32xf32>
    %14 = vector.broadcast %13 : vector<1x32xf32> to vector<8x32xf32>
    %15 = arith.addf %12, %14 : vector<8x32xf32>
    %16 = arith.truncf %1 : vector<8x32xf32> to vector<8x32xbf16>
    %c0_14 = arith.constant 0 : index
    %c0_15 = arith.constant 0 : index
    %17 = vector.load %arg7[%c0_14, %c0_15] : memref<32x64xbf16, #tpu.memory_space<vmem>>, vector<32x64xbf16>
    %cst_16 = arith.constant dense<0.000000e+00> : vector<8x64xf32>
    %18 = tpu.matmul %16, %17, %cst_16 {dimension_numbers = #tpu.dot_dimension_numbers<[1], [0], [0], [1], [0, 0, 1, 1], [], []>} : vector<8x32xbf16>, vector<32x64xbf16>, vector<8x64xf32> -> vector<8x64xf32>
    %c0_17 = arith.constant 0 : index
    %c0_18 = arith.constant 0 : index
    %19 = vector.load %arg8[%c0_17, %c0_18] : memref<1x64xf32, #tpu.memory_space<vmem>>, vector<1x64xf32>
    %20 = vector.broadcast %19 : vector<1x64xf32> to vector<8x64xf32>
    %21 = arith.addf %18, %20 : vector<8x64xf32>
    %22 = vector.extract_strided_slice %21 {offsets = [0, 0], sizes = [8, 32], strides = [1, 1]} : vector<8x64xf32> to vector<8x32xf32>
    %23 = vector.extract_strided_slice %21 {offsets = [0, 32], sizes = [8, 32], strides = [1, 1]} : vector<8x64xf32> to vector<8x32xf32>
    %24 = vector.extract_strided_slice %15 {offsets = [0, 0], sizes = [8, 8], strides = [1, 1]} : vector<8x32xf32> to vector<8x8xf32>
    %25 = arith.truncf %24 : vector<8x8xf32> to vector<8x8xbf16>
    %26 = vector.extract_strided_slice %22 {offsets = [0, 0], sizes = [8, 8], strides = [1, 1]} : vector<8x32xf32> to vector<8x8xf32>
    %27 = arith.truncf %26 : vector<8x8xf32> to vector<8x8xbf16>
    %cst_19 = arith.constant dense<0.000000e+00> : vector<8x8xf32>
    %28 = tpu.matmul %25, %27, %cst_19 {dimension_numbers = #tpu.dot_dimension_numbers<[1], [1], [0], [0], [0, 0, 1, 0], [], []>} : vector<8x8xbf16>, vector<8x8xbf16>, vector<8x8xf32> -> vector<8x8xf32>
    %cst_20 = arith.constant 0.353553385 : f32
    %29 = vector.broadcast %cst_20 : f32 to vector<8x8xf32>
    %30 = arith.mulf %28, %29 : vector<8x8xf32>
    %31 = arith.addf %30, %5 : vector<8x8xf32>
    %cst_21 = arith.constant dense<0xFF800000> : vector<8xf32>
    %32 = vector.multi_reduction <maximumf>, %31, %cst_21 [1] : vector<8x8xf32> to vector<8xf32>
    %33 = vector.shape_cast %32 : vector<8xf32> to vector<8x1xf32>
    %34 = vector.broadcast %33 : vector<8x1xf32> to vector<8x8xf32>
    %35 = arith.subf %31, %34 : vector<8x8xf32>
    %36 = math.exp %35 : vector<8x8xf32>
    %cst_22 = arith.constant dense<0.000000e+00> : vector<8xf32>
    %37 = vector.multi_reduction <add>, %36, %cst_22 [1] : vector<8x8xf32> to vector<8xf32>
    %38 = vector.shape_cast %37 : vector<8xf32> to vector<8x1xf32>
    %39 = vector.broadcast %38 : vector<8x1xf32> to vector<8x8xf32>
    %40 = arith.divf %36, %39 : vector<8x8xf32>
    %c0_23 = arith.constant 0 : index
    %c0_24 = arith.constant 0 : index
    %c0_25 = arith.constant 0 : index
    %41 = vector.load %arg28[%c0_23, %c0_24, %c0_25] : memref<1x8x32xf32, #tpu.memory_space<vmem>>, vector<1x8x8xf32>
    %42 = vector.shape_cast %41 : vector<1x8x8xf32> to vector<8x8xf32>
    %43 = vector.shape_cast %40 : vector<8x8xf32> to vector<1x8x8xf32>
    tpu.vector_store %arg28[%c0_23, %c0_24, %c0_25], %43 {strides = array<i32>} : memref<1x8x32xf32, #tpu.memory_space<vmem>>, vector<1x8x8xf32>,
    %44 = arith.truncf %40 : vector<8x8xf32> to vector<8x8xbf16>
    %45 = vector.extract_strided_slice %23 {offsets = [0, 0], sizes = [8, 8], strides = [1, 1]} : vector<8x32xf32> to vector<8x8xf32>
    %46 = arith.truncf %45 : vector<8x8xf32> to vector<8x8xbf16>
    %cst_26 = arith.constant dense<0.000000e+00> : vector<8x8xf32>
    %47 = tpu.matmul %44, %46, %cst_26 {dimension_numbers = #tpu.dot_dimension_numbers<[1], [0], [0], [1], [0, 0, 1, 1], [], []>} : vector<8x8xbf16>, vector<8x8xbf16>, vector<8x8xf32> -> vector<8x8xf32>
    %c0_27 = arith.constant 0 : index
    %c0_28 = arith.constant 0 : index
    %48 = vector.load %arg30[%c0_27, %c0_28] : memref<8x32xf32, #tpu.memory_space<vmem>>, vector<8x8xf32>
    tpu.vector_store %arg30[%c0_27, %c0_28], %47 {strides = array<i32>} : memref<8x32xf32, #tpu.memory_space<vmem>>, vector<8x8xf32>,
    %49 = vector.extract_strided_slice %15 {offsets = [0, 8], sizes = [8, 8], strides = [1, 1]} : vector<8x32xf32> to vector<8x8xf32>
    %50 = arith.truncf %49 : vector<8x8xf32> to vector<8x8xbf16>
    %51 = vector.extract_strided_slice %22 {offsets = [0, 8], sizes = [8, 8], strides = [1, 1]} : vector<8x32xf32> to vector<8x8xf32>
    %52 = arith.truncf %51 : vector<8x8xf32> to vector<8x8xbf16>
    %cst_29 = arith.constant dense<0.000000e+00> : vector<8x8xf32>
    %53 = tpu.matmul %50, %52, %cst_29 {dimension_numbers = #tpu.dot_dimension_numbers<[1], [1], [0], [0], [0, 0, 1, 0], [], []>} : vector<8x8xbf16>, vector<8x8xbf16>, vector<8x8xf32> -> vector<8x8xf32>
    %cst_30 = arith.constant 0.353553385 : f32
    %54 = vector.broadcast %cst_30 : f32 to vector<8x8xf32>
    %55 = arith.mulf %53, %54 : vector<8x8xf32>
    %56 = arith.addf %55, %5 : vector<8x8xf32>
    %cst_31 = arith.constant dense<0xFF800000> : vector<8xf32>
    %57 = vector.multi_reduction <maximumf>, %56, %cst_31 [1] : vector<8x8xf32> to vector<8xf32>
    %58 = vector.shape_cast %57 : vector<8xf32> to vector<8x1xf32>
    %59 = vector.broadcast %58 : vector<8x1xf32> to vector<8x8xf32>
    %60 = arith.subf %56, %59 : vector<8x8xf32>
    %61 = math.exp %60 : vector<8x8xf32>
    %cst_32 = arith.constant dense<0.000000e+00> : vector<8xf32>
    %62 = vector.multi_reduction <add>, %61, %cst_32 [1] : vector<8x8xf32> to vector<8xf32>
    %63 = vector.shape_cast %62 : vector<8xf32> to vector<8x1xf32>
    %64 = vector.broadcast %63 : vector<8x1xf32> to vector<8x8xf32>
    %65 = arith.divf %61, %64 : vector<8x8xf32>
    %c0_33 = arith.constant 0 : index
    %c0_34 = arith.constant 0 : index
    %c8 = arith.constant 8 : index
    %66 = vector.load %arg28[%c0_33, %c0_34, %c8] : memref<1x8x32xf32, #tpu.memory_space<vmem>>, vector<1x8x8xf32>
    %67 = vector.shape_cast %66 : vector<1x8x8xf32> to vector<8x8xf32>
    %68 = vector.shape_cast %65 : vector<8x8xf32> to vector<1x8x8xf32>
    tpu.vector_store %arg28[%c0_33, %c0_34, %c8], %68 {strides = array<i32>} : memref<1x8x32xf32, #tpu.memory_space<vmem>>, vector<1x8x8xf32>,
    %69 = arith.truncf %65 : vector<8x8xf32> to vector<8x8xbf16>
    %70 = vector.extract_strided_slice %23 {offsets = [0, 8], sizes = [8, 8], strides = [1, 1]} : vector<8x32xf32> to vector<8x8xf32>
    %71 = arith.truncf %70 : vector<8x8xf32> to vector<8x8xbf16>
    %cst_35 = arith.constant dense<0.000000e+00> : vector<8x8xf32>
    %72 = tpu.matmul %69, %71, %cst_35 {dimension_numbers = #tpu.dot_dimension_numbers<[1], [0], [0], [1], [0, 0, 1, 1], [], []>} : vector<8x8xbf16>, vector<8x8xbf16>, vector<8x8xf32> -> vector<8x8xf32>
    %c0_36 = arith.constant 0 : index
    %c8_37 = arith.constant 8 : index
    %73 = vector.load %arg30[%c0_36, %c8_37] : memref<8x32xf32, #tpu.memory_space<vmem>>, vector<8x8xf32>
    tpu.vector_store %arg30[%c0_36, %c8_37], %72 {strides = array<i32>} : memref<8x32xf32, #tpu.memory_space<vmem>>, vector<8x8xf32>,
    %74 = vector.extract_strided_slice %15 {offsets = [0, 16], sizes = [8, 8], strides = [1, 1]} : vector<8x32xf32> to vector<8x8xf32>
    %75 = arith.truncf %74 : vector<8x8xf32> to vector<8x8xbf16>
    %76 = vector.extract_strided_slice %22 {offsets = [0, 16], sizes = [8, 8], strides = [1, 1]} : vector<8x32xf32> to vector<8x8xf32>
    %77 = arith.truncf %76 : vector<8x8xf32> to vector<8x8xbf16>
    %cst_38 = arith.constant dense<0.000000e+00> : vector<8x8xf32>
    %78 = tpu.matmul %75, %77, %cst_38 {dimension_numbers = #tpu.dot_dimension_numbers<[1], [1], [0], [0], [0, 0, 1, 0], [], []>} : vector<8x8xbf16>, vector<8x8xbf16>, vector<8x8xf32> -> vector<8x8xf32>
    %cst_39 = arith.constant 0.353553385 : f32
    %79 = vector.broadcast %cst_39 : f32 to vector<8x8xf32>
    %80 = arith.mulf %78, %79 : vector<8x8xf32>
    %81 = arith.addf %80, %5 : vector<8x8xf32>
    %cst_40 = arith.constant dense<0xFF800000> : vector<8xf32>
    %82 = vector.multi_reduction <maximumf>, %81, %cst_40 [1] : vector<8x8xf32> to vector<8xf32>
    %83 = vector.shape_cast %82 : vector<8xf32> to vector<8x1xf32>
    %84 = vector.broadcast %83 : vector<8x1xf32> to vector<8x8xf32>
    %85 = arith.subf %81, %84 : vector<8x8xf32>
    %86 = math.exp %85 : vector<8x8xf32>
    %cst_41 = arith.constant dense<0.000000e+00> : vector<8xf32>
    %87 = vector.multi_reduction <add>, %86, %cst_41 [1] : vector<8x8xf32> to vector<8xf32>
    %88 = vector.shape_cast %87 : vector<8xf32> to vector<8x1xf32>
    %89 = vector.broadcast %88 : vector<8x1xf32> to vector<8x8xf32>
    %90 = arith.divf %86, %89 : vector<8x8xf32>
    %c0_42 = arith.constant 0 : index
    %c0_43 = arith.constant 0 : index
    %c16 = arith.constant 16 : index
    %91 = vector.load %arg28[%c0_42, %c0_43, %c16] : memref<1x8x32xf32, #tpu.memory_space<vmem>>, vector<1x8x8xf32>
    %92 = vector.shape_cast %91 : vector<1x8x8xf32> to vector<8x8xf32>
    %93 = vector.shape_cast %90 : vector<8x8xf32> to vector<1x8x8xf32>
    tpu.vector_store %arg28[%c0_42, %c0_43, %c16], %93 {strides = array<i32>} : memref<1x8x32xf32, #tpu.memory_space<vmem>>, vector<1x8x8xf32>,
    %94 = arith.truncf %90 : vector<8x8xf32> to vector<8x8xbf16>
    %95 = vector.extract_strided_slice %23 {offsets = [0, 16], sizes = [8, 8], strides = [1, 1]} : vector<8x32xf32> to vector<8x8xf32>
    %96 = arith.truncf %95 : vector<8x8xf32> to vector<8x8xbf16>
    %cst_44 = arith.constant dense<0.000000e+00> : vector<8x8xf32>
    %97 = tpu.matmul %94, %96, %cst_44 {dimension_numbers = #tpu.dot_dimension_numbers<[1], [0], [0], [1], [0, 0, 1, 1], [], []>} : vector<8x8xbf16>, vector<8x8xbf16>, vector<8x8xf32> -> vector<8x8xf32>
    %c0_45 = arith.constant 0 : index
    %c16_46 = arith.constant 16 : index
    %98 = vector.load %arg30[%c0_45, %c16_46] : memref<8x32xf32, #tpu.memory_space<vmem>>, vector<8x8xf32>
    tpu.vector_store %arg30[%c0_45, %c16_46], %97 {strides = array<i32>} : memref<8x32xf32, #tpu.memory_space<vmem>>, vector<8x8xf32>,
    %99 = vector.extract_strided_slice %15 {offsets = [0, 24], sizes = [8, 8], strides = [1, 1]} : vector<8x32xf32> to vector<8x8xf32>
    %100 = arith.truncf %99 : vector<8x8xf32> to vector<8x8xbf16>
    %101 = vector.extract_strided_slice %22 {offsets = [0, 24], sizes = [8, 8], strides = [1, 1]} : vector<8x32xf32> to vector<8x8xf32>
    %102 = arith.truncf %101 : vector<8x8xf32> to vector<8x8xbf16>
    %cst_47 = arith.constant dense<0.000000e+00> : vector<8x8xf32>
    %103 = tpu.matmul %100, %102, %cst_47 {dimension_numbers = #tpu.dot_dimension_numbers<[1], [1], [0], [0], [0, 0, 1, 0], [], []>} : vector<8x8xbf16>, vector<8x8xbf16>, vector<8x8xf32> -> vector<8x8xf32>
    %cst_48 = arith.constant 0.353553385 : f32
    %104 = vector.broadcast %cst_48 : f32 to vector<8x8xf32>
    %105 = arith.mulf %103, %104 : vector<8x8xf32>
    %106 = arith.addf %105, %5 : vector<8x8xf32>
    %cst_49 = arith.constant dense<0xFF800000> : vector<8xf32>
    %107 = vector.multi_reduction <maximumf>, %106, %cst_49 [1] : vector<8x8xf32> to vector<8xf32>
    %108 = vector.shape_cast %107 : vector<8xf32> to vector<8x1xf32>
    %109 = vector.broadcast %108 : vector<8x1xf32> to vector<8x8xf32>
    %110 = arith.subf %106, %109 : vector<8x8xf32>
    %111 = math.exp %110 : vector<8x8xf32>
    %cst_50 = arith.constant dense<0.000000e+00> : vector<8xf32>
    %112 = vector.multi_reduction <add>, %111, %cst_50 [1] : vector<8x8xf32> to vector<8xf32>
    %113 = vector.shape_cast %112 : vector<8xf32> to vector<8x1xf32>
    %114 = vector.broadcast %113 : vector<8x1xf32> to vector<8x8xf32>
    %115 = arith.divf %111, %114 : vector<8x8xf32>
    %c0_51 = arith.constant 0 : index
    %c0_52 = arith.constant 0 : index
    %c24 = arith.constant 24 : index
    %116 = vector.load %arg28[%c0_51, %c0_52, %c24] : memref<1x8x32xf32, #tpu.memory_space<vmem>>, vector<1x8x8xf32>
    %117 = vector.shape_cast %116 : vector<1x8x8xf32> to vector<8x8xf32>
    %118 = vector.shape_cast %115 : vector<8x8xf32> to vector<1x8x8xf32>
    tpu.vector_store %arg28[%c0_51, %c0_52, %c24], %118 {strides = array<i32>} : memref<1x8x32xf32, #tpu.memory_space<vmem>>, vector<1x8x8xf32>,
    %119 = arith.truncf %115 : vector<8x8xf32> to vector<8x8xbf16>
    %120 = vector.extract_strided_slice %23 {offsets = [0, 24], sizes = [8, 8], strides = [1, 1]} : vector<8x32xf32> to vector<8x8xf32>
    %121 = arith.truncf %120 : vector<8x8xf32> to vector<8x8xbf16>
    %cst_53 = arith.constant dense<0.000000e+00> : vector<8x8xf32>
    %122 = tpu.matmul %119, %121, %cst_53 {dimension_numbers = #tpu.dot_dimension_numbers<[1], [0], [0], [1], [0, 0, 1, 1], [], []>} : vector<8x8xbf16>, vector<8x8xbf16>, vector<8x8xf32> -> vector<8x8xf32>
    %c0_54 = arith.constant 0 : index
    %c24_55 = arith.constant 24 : index
    %123 = vector.load %arg30[%c0_54, %c24_55] : memref<8x32xf32, #tpu.memory_space<vmem>>, vector<8x8xf32>
    tpu.vector_store %arg30[%c0_54, %c24_55], %122 {strides = array<i32>} : memref<8x32xf32, #tpu.memory_space<vmem>>, vector<8x8xf32>,
    %c0_56 = arith.constant 0 : index
    %c0_57 = arith.constant 0 : index
    %124 = vector.load %arg30[%c0_56, %c0_57] : memref<8x32xf32, #tpu.memory_space<vmem>>, vector<8x32xf32>
    %125 = arith.truncf %124 : vector<8x32xf32> to vector<8x32xbf16>
    %c0_58 = arith.constant 0 : index
    %c0_59 = arith.constant 0 : index
    %126 = vector.load %arg9[%c0_58, %c0_59] : memref<32x32xbf16, #tpu.memory_space<vmem>>, vector<32x32xbf16>
    %cst_60 = arith.constant dense<0.000000e+00> : vector<8x32xf32>
    %127 = tpu.matmul %125, %126, %cst_60 {dimension_numbers = #tpu.dot_dimension_numbers<[1], [0], [0], [1], [0, 0, 1, 1], [], []>} : vector<8x32xbf16>, vector<32x32xbf16>, vector<8x32xf32> -> vector<8x32xf32>
    %c0_61 = arith.constant 0 : index
    %c0_62 = arith.constant 0 : index
    %128 = vector.load %arg10[%c0_61, %c0_62] : memref<1x32xf32, #tpu.memory_space<vmem>>, vector<1x32xf32>
    %129 = vector.broadcast %128 : vector<1x32xf32> to vector<8x32xf32>
    %130 = arith.addf %127, %129 : vector<8x32xf32>
    %131 = arith.addf %130, %1 : vector<8x32xf32>
    %cst_63 = arith.constant dense<0.000000e+00> : vector<8xf32>
    %132 = vector.multi_reduction <add>, %131, %cst_63 [1] : vector<8x32xf32> to vector<8xf32>
    %133 = vector.shape_cast %132 : vector<8xf32> to vector<8x1xf32>
    %cst_64 = arith.constant 3.200000e+01 : f32
    %134 = vector.broadcast %cst_64 : f32 to vector<8x1xf32>
    %135 = arith.divf %133, %134 : vector<8x1xf32>
    %136 = vector.broadcast %135 : vector<8x1xf32> to vector<8x32xf32>
    %137 = arith.subf %131, %136 : vector<8x32xf32>
    %138 = arith.mulf %137, %137 : vector<8x32xf32>
    %cst_65 = arith.constant dense<0.000000e+00> : vector<8xf32>
    %139 = vector.multi_reduction <add>, %138, %cst_65 [1] : vector<8x32xf32> to vector<8xf32>
    %140 = vector.shape_cast %139 : vector<8xf32> to vector<8x1xf32>
    %cst_66 = arith.constant 3.200000e+01 : f32
    %141 = vector.broadcast %cst_66 : f32 to vector<8x1xf32>
    %142 = arith.divf %140, %141 : vector<8x1xf32>
    %143 = vector.broadcast %135 : vector<8x1xf32> to vector<8x32xf32>
    %144 = arith.subf %131, %143 : vector<8x32xf32>
    %cst_67 = arith.constant 9.99999997E-7 : f32
    %145 = vector.broadcast %cst_67 : f32 to vector<8x1xf32>
    %146 = arith.addf %142, %145 : vector<8x1xf32>
    %147 = math.rsqrt %146 : vector<8x1xf32>
    %148 = vector.broadcast %147 : vector<8x1xf32> to vector<8x32xf32>
    %149 = arith.mulf %144, %148 : vector<8x32xf32>
    %c0_68 = arith.constant 0 : index
    %c0_69 = arith.constant 0 : index
    %150 = vector.load %arg11[%c0_68, %c0_69] : memref<1x32xf32, #tpu.memory_space<vmem>>, vector<1x32xf32>
    %151 = vector.broadcast %150 : vector<1x32xf32> to vector<8x32xf32>
    %152 = arith.mulf %149, %151 : vector<8x32xf32>
    %c0_70 = arith.constant 0 : index
    %c0_71 = arith.constant 0 : index
    %153 = vector.load %arg12[%c0_70, %c0_71] : memref<1x32xf32, #tpu.memory_space<vmem>>, vector<1x32xf32>
    %154 = vector.broadcast %153 : vector<1x32xf32> to vector<8x32xf32>
    %155 = arith.addf %152, %154 : vector<8x32xf32>
    %c0_72 = arith.constant 0 : index
    %c0_73 = arith.constant 0 : index
    %c0_74 = arith.constant 0 : index
    %156 = vector.load %arg2[%c0_72, %c0_73, %c0_74] : memref<1x8x32xf32, #tpu.memory_space<vmem>>, vector<1x8x32xf32>
    %157 = vector.shape_cast %156 : vector<1x8x32xf32> to vector<8x32xf32>
    %158 = arith.truncf %155 : vector<8x32xf32> to vector<8x32xbf16>
    %c0_75 = arith.constant 0 : index
    %c0_76 = arith.constant 0 : index
    %159 = vector.load %arg13[%c0_75, %c0_76] : memref<32x32xbf16, #tpu.memory_space<vmem>>, vector<32x32xbf16>
    %cst_77 = arith.constant dense<0.000000e+00> : vector<8x32xf32>
    %160 = tpu.matmul %158, %159, %cst_77 {dimension_numbers = #tpu.dot_dimension_numbers<[1], [0], [0], [1], [0, 0, 1, 1], [], []>} : vector<8x32xbf16>, vector<32x32xbf16>, vector<8x32xf32> -> vector<8x32xf32>
    %c0_78 = arith.constant 0 : index
    %c0_79 = arith.constant 0 : index
    %161 = vector.load %arg14[%c0_78, %c0_79] : memref<1x32xf32, #tpu.memory_space<vmem>>, vector<1x32xf32>
    %162 = vector.broadcast %161 : vector<1x32xf32> to vector<8x32xf32>
    %163 = arith.addf %160, %162 : vector<8x32xf32>
    %164 = arith.truncf %157 : vector<8x32xf32> to vector<8x32xbf16>
    %c0_80 = arith.constant 0 : index
    %c0_81 = arith.constant 0 : index
    %165 = vector.load %arg15[%c0_80, %c0_81] : memref<32x64xbf16, #tpu.memory_space<vmem>>, vector<32x64xbf16>
    %cst_82 = arith.constant dense<0.000000e+00> : vector<8x64xf32>
    %166 = tpu.matmul %164, %165, %cst_82 {dimension_numbers = #tpu.dot_dimension_numbers<[1], [0], [0], [1], [0, 0, 1, 1], [], []>} : vector<8x32xbf16>, vector<32x64xbf16>, vector<8x64xf32> -> vector<8x64xf32>
    %c0_83 = arith.constant 0 : index
    %c0_84 = arith.constant 0 : index
    %167 = vector.load %arg16[%c0_83, %c0_84] : memref<1x64xf32, #tpu.memory_space<vmem>>, vector<1x64xf32>
    %168 = vector.broadcast %167 : vector<1x64xf32> to vector<8x64xf32>
    %169 = arith.addf %166, %168 : vector<8x64xf32>
    %170 = vector.extract_strided_slice %169 {offsets = [0, 0], sizes = [8, 32], strides = [1, 1]} : vector<8x64xf32> to vector<8x32xf32>
    %171 = vector.extract_strided_slice %169 {offsets = [0, 32], sizes = [8, 32], strides = [1, 1]} : vector<8x64xf32> to vector<8x32xf32>
    %172 = vector.extract_strided_slice %163 {offsets = [0, 0], sizes = [8, 8], strides = [1, 1]} : vector<8x32xf32> to vector<8x8xf32>
    %173 = arith.truncf %172 : vector<8x8xf32> to vector<8x8xbf16>
    %174 = vector.extract_strided_slice %170 {offsets = [0, 0], sizes = [8, 8], strides = [1, 1]} : vector<8x32xf32> to vector<8x8xf32>
    %175 = arith.truncf %174 : vector<8x8xf32> to vector<8x8xbf16>
    %cst_85 = arith.constant dense<0.000000e+00> : vector<8x8xf32>
    %176 = tpu.matmul %173, %175, %cst_85 {dimension_numbers = #tpu.dot_dimension_numbers<[1], [1], [0], [0], [0, 0, 1, 0], [], []>} : vector<8x8xbf16>, vector<8x8xbf16>, vector<8x8xf32> -> vector<8x8xf32>
    %cst_86 = arith.constant 0.353553385 : f32
    %177 = vector.broadcast %cst_86 : f32 to vector<8x8xf32>
    %178 = arith.mulf %176, %177 : vector<8x8xf32>
    %179 = vector.broadcast %9 : vector<1x8xf32> to vector<8x8xf32>
    %180 = arith.addf %178, %179 : vector<8x8xf32>
    %cst_87 = arith.constant dense<0xFF800000> : vector<8xf32>
    %181 = vector.multi_reduction <maximumf>, %180, %cst_87 [1] : vector<8x8xf32> to vector<8xf32>
    %182 = vector.shape_cast %181 : vector<8xf32> to vector<8x1xf32>
    %183 = vector.broadcast %182 : vector<8x1xf32> to vector<8x8xf32>
    %184 = arith.subf %180, %183 : vector<8x8xf32>
    %185 = math.exp %184 : vector<8x8xf32>
    %cst_88 = arith.constant dense<0.000000e+00> : vector<8xf32>
    %186 = vector.multi_reduction <add>, %185, %cst_88 [1] : vector<8x8xf32> to vector<8xf32>
    %187 = vector.shape_cast %186 : vector<8xf32> to vector<8x1xf32>
    %188 = vector.broadcast %187 : vector<8x1xf32> to vector<8x8xf32>
    %189 = arith.divf %185, %188 : vector<8x8xf32>
    %c0_89 = arith.constant 0 : index
    %c0_90 = arith.constant 0 : index
    %c0_91 = arith.constant 0 : index
    %190 = vector.load %arg29[%c0_89, %c0_90, %c0_91] : memref<1x8x32xf32, #tpu.memory_space<vmem>>, vector<1x8x8xf32>
    %191 = vector.shape_cast %190 : vector<1x8x8xf32> to vector<8x8xf32>
    %192 = vector.shape_cast %189 : vector<8x8xf32> to vector<1x8x8xf32>
    tpu.vector_store %arg29[%c0_89, %c0_90, %c0_91], %192 {strides = array<i32>} : memref<1x8x32xf32, #tpu.memory_space<vmem>>, vector<1x8x8xf32>,
    %193 = arith.truncf %189 : vector<8x8xf32> to vector<8x8xbf16>
    %194 = vector.extract_strided_slice %171 {offsets = [0, 0], sizes = [8, 8], strides = [1, 1]} : vector<8x32xf32> to vector<8x8xf32>
    %195 = arith.truncf %194 : vector<8x8xf32> to vector<8x8xbf16>
    %cst_92 = arith.constant dense<0.000000e+00> : vector<8x8xf32>
    %196 = tpu.matmul %193, %195, %cst_92 {dimension_numbers = #tpu.dot_dimension_numbers<[1], [0], [0], [1], [0, 0, 1, 1], [], []>} : vector<8x8xbf16>, vector<8x8xbf16>, vector<8x8xf32> -> vector<8x8xf32>
    %c0_93 = arith.constant 0 : index
    %c0_94 = arith.constant 0 : index
    %197 = vector.load %arg30[%c0_93, %c0_94] : memref<8x32xf32, #tpu.memory_space<vmem>>, vector<8x8xf32>
    tpu.vector_store %arg30[%c0_93, %c0_94], %196 {strides = array<i32>} : memref<8x32xf32, #tpu.memory_space<vmem>>, vector<8x8xf32>,
    %198 = vector.extract_strided_slice %163 {offsets = [0, 8], sizes = [8, 8], strides = [1, 1]} : vector<8x32xf32> to vector<8x8xf32>
    %199 = arith.truncf %198 : vector<8x8xf32> to vector<8x8xbf16>
    %200 = vector.extract_strided_slice %170 {offsets = [0, 8], sizes = [8, 8], strides = [1, 1]} : vector<8x32xf32> to vector<8x8xf32>
    %201 = arith.truncf %200 : vector<8x8xf32> to vector<8x8xbf16>
    %cst_95 = arith.constant dense<0.000000e+00> : vector<8x8xf32>
    %202 = tpu.matmul %199, %201, %cst_95 {dimension_numbers = #tpu.dot_dimension_numbers<[1], [1], [0], [0], [0, 0, 1, 0], [], []>} : vector<8x8xbf16>, vector<8x8xbf16>, vector<8x8xf32> -> vector<8x8xf32>
    %cst_96 = arith.constant 0.353553385 : f32
    %203 = vector.broadcast %cst_96 : f32 to vector<8x8xf32>
    %204 = arith.mulf %202, %203 : vector<8x8xf32>
    %205 = vector.broadcast %9 : vector<1x8xf32> to vector<8x8xf32>
    %206 = arith.addf %204, %205 : vector<8x8xf32>
    %cst_97 = arith.constant dense<0xFF800000> : vector<8xf32>
    %207 = vector.multi_reduction <maximumf>, %206, %cst_97 [1] : vector<8x8xf32> to vector<8xf32>
    %208 = vector.shape_cast %207 : vector<8xf32> to vector<8x1xf32>
    %209 = vector.broadcast %208 : vector<8x1xf32> to vector<8x8xf32>
    %210 = arith.subf %206, %209 : vector<8x8xf32>
    %211 = math.exp %210 : vector<8x8xf32>
    %cst_98 = arith.constant dense<0.000000e+00> : vector<8xf32>
    %212 = vector.multi_reduction <add>, %211, %cst_98 [1] : vector<8x8xf32> to vector<8xf32>
    %213 = vector.shape_cast %212 : vector<8xf32> to vector<8x1xf32>
    %214 = vector.broadcast %213 : vector<8x1xf32> to vector<8x8xf32>
    %215 = arith.divf %211, %214 : vector<8x8xf32>
    %c0_99 = arith.constant 0 : index
    %c0_100 = arith.constant 0 : index
    %c8_101 = arith.constant 8 : index
    %216 = vector.load %arg29[%c0_99, %c0_100, %c8_101] : memref<1x8x32xf32, #tpu.memory_space<vmem>>, vector<1x8x8xf32>
    %217 = vector.shape_cast %216 : vector<1x8x8xf32> to vector<8x8xf32>
    %218 = vector.shape_cast %215 : vector<8x8xf32> to vector<1x8x8xf32>
    tpu.vector_store %arg29[%c0_99, %c0_100, %c8_101], %218 {strides = array<i32>} : memref<1x8x32xf32, #tpu.memory_space<vmem>>, vector<1x8x8xf32>,
    %219 = arith.truncf %215 : vector<8x8xf32> to vector<8x8xbf16>
    %220 = vector.extract_strided_slice %171 {offsets = [0, 8], sizes = [8, 8], strides = [1, 1]} : vector<8x32xf32> to vector<8x8xf32>
    %221 = arith.truncf %220 : vector<8x8xf32> to vector<8x8xbf16>
    %cst_102 = arith.constant dense<0.000000e+00> : vector<8x8xf32>
    %222 = tpu.matmul %219, %221, %cst_102 {dimension_numbers = #tpu.dot_dimension_numbers<[1], [0], [0], [1], [0, 0, 1, 1], [], []>} : vector<8x8xbf16>, vector<8x8xbf16>, vector<8x8xf32> -> vector<8x8xf32>
    %c0_103 = arith.constant 0 : index
    %c8_104 = arith.constant 8 : index
    %223 = vector.load %arg30[%c0_103, %c8_104] : memref<8x32xf32, #tpu.memory_space<vmem>>, vector<8x8xf32>
    tpu.vector_store %arg30[%c0_103, %c8_104], %222 {strides = array<i32>} : memref<8x32xf32, #tpu.memory_space<vmem>>, vector<8x8xf32>,
    %224 = vector.extract_strided_slice %163 {offsets = [0, 16], sizes = [8, 8], strides = [1, 1]} : vector<8x32xf32> to vector<8x8xf32>
    %225 = arith.truncf %224 : vector<8x8xf32> to vector<8x8xbf16>
    %226 = vector.extract_strided_slice %170 {offsets = [0, 16], sizes = [8, 8], strides = [1, 1]} : vector<8x32xf32> to vector<8x8xf32>
    %227 = arith.truncf %226 : vector<8x8xf32> to vector<8x8xbf16>
    %cst_105 = arith.constant dense<0.000000e+00> : vector<8x8xf32>
    %228 = tpu.matmul %225, %227, %cst_105 {dimension_numbers = #tpu.dot_dimension_numbers<[1], [1], [0], [0], [0, 0, 1, 0], [], []>} : vector<8x8xbf16>, vector<8x8xbf16>, vector<8x8xf32> -> vector<8x8xf32>
    %cst_106 = arith.constant 0.353553385 : f32
    %229 = vector.broadcast %cst_106 : f32 to vector<8x8xf32>
    %230 = arith.mulf %228, %229 : vector<8x8xf32>
    %231 = vector.broadcast %9 : vector<1x8xf32> to vector<8x8xf32>
    %232 = arith.addf %230, %231 : vector<8x8xf32>
    %cst_107 = arith.constant dense<0xFF800000> : vector<8xf32>
    %233 = vector.multi_reduction <maximumf>, %232, %cst_107 [1] : vector<8x8xf32> to vector<8xf32>
    %234 = vector.shape_cast %233 : vector<8xf32> to vector<8x1xf32>
    %235 = vector.broadcast %234 : vector<8x1xf32> to vector<8x8xf32>
    %236 = arith.subf %232, %235 : vector<8x8xf32>
    %237 = math.exp %236 : vector<8x8xf32>
    %cst_108 = arith.constant dense<0.000000e+00> : vector<8xf32>
    %238 = vector.multi_reduction <add>, %237, %cst_108 [1] : vector<8x8xf32> to vector<8xf32>
    %239 = vector.shape_cast %238 : vector<8xf32> to vector<8x1xf32>
    %240 = vector.broadcast %239 : vector<8x1xf32> to vector<8x8xf32>
    %241 = arith.divf %237, %240 : vector<8x8xf32>
    %c0_109 = arith.constant 0 : index
    %c0_110 = arith.constant 0 : index
    %c16_111 = arith.constant 16 : index
    %242 = vector.load %arg29[%c0_109, %c0_110, %c16_111] : memref<1x8x32xf32, #tpu.memory_space<vmem>>, vector<1x8x8xf32>
    %243 = vector.shape_cast %242 : vector<1x8x8xf32> to vector<8x8xf32>
    %244 = vector.shape_cast %241 : vector<8x8xf32> to vector<1x8x8xf32>
    tpu.vector_store %arg29[%c0_109, %c0_110, %c16_111], %244 {strides = array<i32>} : memref<1x8x32xf32, #tpu.memory_space<vmem>>, vector<1x8x8xf32>,
    %245 = arith.truncf %241 : vector<8x8xf32> to vector<8x8xbf16>
    %246 = vector.extract_strided_slice %171 {offsets = [0, 16], sizes = [8, 8], strides = [1, 1]} : vector<8x32xf32> to vector<8x8xf32>
    %247 = arith.truncf %246 : vector<8x8xf32> to vector<8x8xbf16>
    %cst_112 = arith.constant dense<0.000000e+00> : vector<8x8xf32>
    %248 = tpu.matmul %245, %247, %cst_112 {dimension_numbers = #tpu.dot_dimension_numbers<[1], [0], [0], [1], [0, 0, 1, 1], [], []>} : vector<8x8xbf16>, vector<8x8xbf16>, vector<8x8xf32> -> vector<8x8xf32>
    %c0_113 = arith.constant 0 : index
    %c16_114 = arith.constant 16 : index
    %249 = vector.load %arg30[%c0_113, %c16_114] : memref<8x32xf32, #tpu.memory_space<vmem>>, vector<8x8xf32>
    tpu.vector_store %arg30[%c0_113, %c16_114], %248 {strides = array<i32>} : memref<8x32xf32, #tpu.memory_space<vmem>>, vector<8x8xf32>,
    %250 = vector.extract_strided_slice %163 {offsets = [0, 24], sizes = [8, 8], strides = [1, 1]} : vector<8x32xf32> to vector<8x8xf32>
    %251 = arith.truncf %250 : vector<8x8xf32> to vector<8x8xbf16>
    %252 = vector.extract_strided_slice %170 {offsets = [0, 24], sizes = [8, 8], strides = [1, 1]} : vector<8x32xf32> to vector<8x8xf32>
    %253 = arith.truncf %252 : vector<8x8xf32> to vector<8x8xbf16>
    %cst_115 = arith.constant dense<0.000000e+00> : vector<8x8xf32>
    %254 = tpu.matmul %251, %253, %cst_115 {dimension_numbers = #tpu.dot_dimension_numbers<[1], [1], [0], [0], [0, 0, 1, 0], [], []>} : vector<8x8xbf16>, vector<8x8xbf16>, vector<8x8xf32> -> vector<8x8xf32>
    %cst_116 = arith.constant 0.353553385 : f32
    %255 = vector.broadcast %cst_116 : f32 to vector<8x8xf32>
    %256 = arith.mulf %254, %255 : vector<8x8xf32>
    %257 = vector.broadcast %9 : vector<1x8xf32> to vector<8x8xf32>
    %258 = arith.addf %256, %257 : vector<8x8xf32>
    %cst_117 = arith.constant dense<0xFF800000> : vector<8xf32>
    %259 = vector.multi_reduction <maximumf>, %258, %cst_117 [1] : vector<8x8xf32> to vector<8xf32>
    %260 = vector.shape_cast %259 : vector<8xf32> to vector<8x1xf32>
    %261 = vector.broadcast %260 : vector<8x1xf32> to vector<8x8xf32>
    %262 = arith.subf %258, %261 : vector<8x8xf32>
    %263 = math.exp %262 : vector<8x8xf32>
    %cst_118 = arith.constant dense<0.000000e+00> : vector<8xf32>
    %264 = vector.multi_reduction <add>, %263, %cst_118 [1] : vector<8x8xf32> to vector<8xf32>
    %265 = vector.shape_cast %264 : vector<8xf32> to vector<8x1xf32>
    %266 = vector.broadcast %265 : vector<8x1xf32> to vector<8x8xf32>
    %267 = arith.divf %263, %266 : vector<8x8xf32>
    %c0_119 = arith.constant 0 : index
    %c0_120 = arith.constant 0 : index
    %c24_121 = arith.constant 24 : index
    %268 = vector.load %arg29[%c0_119, %c0_120, %c24_121] : memref<1x8x32xf32, #tpu.memory_space<vmem>>, vector<1x8x8xf32>
    %269 = vector.shape_cast %268 : vector<1x8x8xf32> to vector<8x8xf32>
    %270 = vector.shape_cast %267 : vector<8x8xf32> to vector<1x8x8xf32>
    tpu.vector_store %arg29[%c0_119, %c0_120, %c24_121], %270 {strides = array<i32>} : memref<1x8x32xf32, #tpu.memory_space<vmem>>, vector<1x8x8xf32>,
    %271 = arith.truncf %267 : vector<8x8xf32> to vector<8x8xbf16>
    %272 = vector.extract_strided_slice %171 {offsets = [0, 24], sizes = [8, 8], strides = [1, 1]} : vector<8x32xf32> to vector<8x8xf32>
    %273 = arith.truncf %272 : vector<8x8xf32> to vector<8x8xbf16>
    %cst_122 = arith.constant dense<0.000000e+00> : vector<8x8xf32>
    %274 = tpu.matmul %271, %273, %cst_122 {dimension_numbers = #tpu.dot_dimension_numbers<[1], [0], [0], [1], [0, 0, 1, 1], [], []>} : vector<8x8xbf16>, vector<8x8xbf16>, vector<8x8xf32> -> vector<8x8xf32>
    %c0_123 = arith.constant 0 : index
    %c24_124 = arith.constant 24 : index
    %275 = vector.load %arg30[%c0_123, %c24_124] : memref<8x32xf32, #tpu.memory_space<vmem>>, vector<8x8xf32>
    tpu.vector_store %arg30[%c0_123, %c24_124], %274 {strides = array<i32>} : memref<8x32xf32, #tpu.memory_space<vmem>>, vector<8x8xf32>,
    %c0_125 = arith.constant 0 : index
    %c0_126 = arith.constant 0 : index
    %276 = vector.load %arg30[%c0_125, %c0_126] : memref<8x32xf32, #tpu.memory_space<vmem>>, vector<8x32xf32>
    %277 = arith.truncf %276 : vector<8x32xf32> to vector<8x32xbf16>
    %c0_127 = arith.constant 0 : index
    %c0_128 = arith.constant 0 : index
    %278 = vector.load %arg17[%c0_127, %c0_128] : memref<32x32xbf16, #tpu.memory_space<vmem>>, vector<32x32xbf16>
    %cst_129 = arith.constant dense<0.000000e+00> : vector<8x32xf32>
    %279 = tpu.matmul %277, %278, %cst_129 {dimension_numbers = #tpu.dot_dimension_numbers<[1], [0], [0], [1], [0, 0, 1, 1], [], []>} : vector<8x32xbf16>, vector<32x32xbf16>, vector<8x32xf32> -> vector<8x32xf32>
    %c0_130 = arith.constant 0 : index
    %c0_131 = arith.constant 0 : index
    %280 = vector.load %arg18[%c0_130, %c0_131] : memref<1x32xf32, #tpu.memory_space<vmem>>, vector<1x32xf32>
    %281 = vector.broadcast %280 : vector<1x32xf32> to vector<8x32xf32>
    %282 = arith.addf %279, %281 : vector<8x32xf32>
    %283 = arith.addf %282, %155 : vector<8x32xf32>
    %cst_132 = arith.constant dense<0.000000e+00> : vector<8xf32>
    %284 = vector.multi_reduction <add>, %283, %cst_132 [1] : vector<8x32xf32> to vector<8xf32>
    %285 = vector.shape_cast %284 : vector<8xf32> to vector<8x1xf32>
    %cst_133 = arith.constant 3.200000e+01 : f32
    %286 = vector.broadcast %cst_133 : f32 to vector<8x1xf32>
    %287 = arith.divf %285, %286 : vector<8x1xf32>
    %288 = vector.broadcast %287 : vector<8x1xf32> to vector<8x32xf32>
    %289 = arith.subf %283, %288 : vector<8x32xf32>
    %290 = arith.mulf %289, %289 : vector<8x32xf32>
    %cst_134 = arith.constant dense<0.000000e+00> : vector<8xf32>
    %291 = vector.multi_reduction <add>, %290, %cst_134 [1] : vector<8x32xf32> to vector<8xf32>
    %292 = vector.shape_cast %291 : vector<8xf32> to vector<8x1xf32>
    %cst_135 = arith.constant 3.200000e+01 : f32
    %293 = vector.broadcast %cst_135 : f32 to vector<8x1xf32>
    %294 = arith.divf %292, %293 : vector<8x1xf32>
    %295 = vector.broadcast %287 : vector<8x1xf32> to vector<8x32xf32>
    %296 = arith.subf %283, %295 : vector<8x32xf32>
    %cst_136 = arith.constant 9.99999997E-7 : f32
    %297 = vector.broadcast %cst_136 : f32 to vector<8x1xf32>
    %298 = arith.addf %294, %297 : vector<8x1xf32>
    %299 = math.rsqrt %298 : vector<8x1xf32>
    %300 = vector.broadcast %299 : vector<8x1xf32> to vector<8x32xf32>
    %301 = arith.mulf %296, %300 : vector<8x32xf32>
    %c0_137 = arith.constant 0 : index
    %c0_138 = arith.constant 0 : index
    %302 = vector.load %arg19[%c0_137, %c0_138] : memref<1x32xf32, #tpu.memory_space<vmem>>, vector<1x32xf32>
    %303 = vector.broadcast %302 : vector<1x32xf32> to vector<8x32xf32>
    %304 = arith.mulf %301, %303 : vector<8x32xf32>
    %c0_139 = arith.constant 0 : index
    %c0_140 = arith.constant 0 : index
    %305 = vector.load %arg20[%c0_139, %c0_140] : memref<1x32xf32, #tpu.memory_space<vmem>>, vector<1x32xf32>
    %306 = vector.broadcast %305 : vector<1x32xf32> to vector<8x32xf32>
    %307 = arith.addf %304, %306 : vector<8x32xf32>
    %308 = arith.truncf %307 : vector<8x32xf32> to vector<8x32xbf16>
    %c0_141 = arith.constant 0 : index
    %c0_142 = arith.constant 0 : index
    %309 = vector.load %arg21[%c0_141, %c0_142] : memref<32x64xbf16, #tpu.memory_space<vmem>>, vector<32x64xbf16>
    %cst_143 = arith.constant dense<0.000000e+00> : vector<8x64xf32>
    %310 = tpu.matmul %308, %309, %cst_143 {dimension_numbers = #tpu.dot_dimension_numbers<[1], [0], [0], [1], [0, 0, 1, 1], [], []>} : vector<8x32xbf16>, vector<32x64xbf16>, vector<8x64xf32> -> vector<8x64xf32>
    %c0_144 = arith.constant 0 : index
    %c0_145 = arith.constant 0 : index
    %311 = vector.load %arg22[%c0_144, %c0_145] : memref<1x64xf32, #tpu.memory_space<vmem>>, vector<1x64xf32>
    %312 = vector.broadcast %311 : vector<1x64xf32> to vector<8x64xf32>
    %313 = arith.addf %310, %312 : vector<8x64xf32>
    %cst_146 = arith.constant 0.000000e+00 : f32
    %314 = vector.broadcast %cst_146 : f32 to vector<8x64xf32>
    %315 = arith.maximumf %313, %314 : vector<8x64xf32>
    %316 = arith.truncf %315 : vector<8x64xf32> to vector<8x64xbf16>
    %c0_147 = arith.constant 0 : index
    %c0_148 = arith.constant 0 : index
    %317 = vector.load %arg23[%c0_147, %c0_148] : memref<64x32xbf16, #tpu.memory_space<vmem>>, vector<64x32xbf16>
    %cst_149 = arith.constant dense<0.000000e+00> : vector<8x32xf32>
    %318 = tpu.matmul %316, %317, %cst_149 {dimension_numbers = #tpu.dot_dimension_numbers<[1], [0], [0], [1], [0, 0, 1, 1], [], []>} : vector<8x64xbf16>, vector<64x32xbf16>, vector<8x32xf32> -> vector<8x32xf32>
    %c0_150 = arith.constant 0 : index
    %c0_151 = arith.constant 0 : index
    %319 = vector.load %arg24[%c0_150, %c0_151] : memref<1x32xf32, #tpu.memory_space<vmem>>, vector<1x32xf32>
    %320 = vector.broadcast %319 : vector<1x32xf32> to vector<8x32xf32>
    %321 = arith.addf %318, %320 : vector<8x32xf32>
    %322 = arith.addf %321, %307 : vector<8x32xf32>
    %cst_152 = arith.constant dense<0.000000e+00> : vector<8xf32>
    %323 = vector.multi_reduction <add>, %322, %cst_152 [1] : vector<8x32xf32> to vector<8xf32>
    %324 = vector.shape_cast %323 : vector<8xf32> to vector<8x1xf32>
    %cst_153 = arith.constant 3.200000e+01 : f32
    %325 = vector.broadcast %cst_153 : f32 to vector<8x1xf32>
    %326 = arith.divf %324, %325 : vector<8x1xf32>
    %327 = vector.broadcast %326 : vector<8x1xf32> to vector<8x32xf32>
    %328 = arith.subf %322, %327 : vector<8x32xf32>
    %329 = arith.mulf %328, %328 : vector<8x32xf32>
    %cst_154 = arith.constant dense<0.000000e+00> : vector<8xf32>
    %330 = vector.multi_reduction <add>, %329, %cst_154 [1] : vector<8x32xf32> to vector<8xf32>
    %331 = vector.shape_cast %330 : vector<8xf32> to vector<8x1xf32>
    %cst_155 = arith.constant 3.200000e+01 : f32
    %332 = vector.broadcast %cst_155 : f32 to vector<8x1xf32>
    %333 = arith.divf %331, %332 : vector<8x1xf32>
    %334 = vector.broadcast %326 : vector<8x1xf32> to vector<8x32xf32>
    %335 = arith.subf %322, %334 : vector<8x32xf32>
    %cst_156 = arith.constant 9.99999997E-7 : f32
    %336 = vector.broadcast %cst_156 : f32 to vector<8x1xf32>
    %337 = arith.addf %333, %336 : vector<8x1xf32>
    %338 = math.rsqrt %337 : vector<8x1xf32>
    %339 = vector.broadcast %338 : vector<8x1xf32> to vector<8x32xf32>
    %340 = arith.mulf %335, %339 : vector<8x32xf32>
    %c0_157 = arith.constant 0 : index
    %c0_158 = arith.constant 0 : index
    %341 = vector.load %arg25[%c0_157, %c0_158] : memref<1x32xf32, #tpu.memory_space<vmem>>, vector<1x32xf32>
    %342 = vector.broadcast %341 : vector<1x32xf32> to vector<8x32xf32>
    %343 = arith.mulf %340, %342 : vector<8x32xf32>
    %c0_159 = arith.constant 0 : index
    %c0_160 = arith.constant 0 : index
    %344 = vector.load %arg26[%c0_159, %c0_160] : memref<1x32xf32, #tpu.memory_space<vmem>>, vector<1x32xf32>
    %345 = vector.broadcast %344 : vector<1x32xf32> to vector<8x32xf32>
    %346 = arith.addf %343, %345 : vector<8x32xf32>
    %c0_161 = arith.constant 0 : index
    %c0_162 = arith.constant 0 : index
    %c0_163 = arith.constant 0 : index
    %347 = vector.load %arg27[%c0_161, %c0_162, %c0_163] : memref<1x8x32xf32, #tpu.memory_space<vmem>>, vector<1x8x32xf32>
    %348 = vector.shape_cast %347 : vector<1x8x32xf32> to vector<8x32xf32>
    %349 = vector.shape_cast %346 : vector<8x32xf32> to vector<1x8x32xf32>
    tpu.vector_store %arg27[%c0_161, %c0_162, %c0_163], %349 {strides = array<i32>} : memref<1x8x32xf32, #tpu.memory_space<vmem>>, vector<1x8x32xf32>,
    return
  }
  func.func @transform_0(%arg0: i32) -> (i32, i32, i32) {
    %c0_i32 = arith.constant 0 : i32
    %c0_i32_0 = arith.constant 0 : i32
    %c0_i32_1 = arith.constant 0 : i32
    return %arg0, %c0_i32, %c0_i32_0 : i32, i32, i32
  }
  func.func @transform_1(%arg0: i32) -> (i32, i32, i32) {
    %c0_i32 = arith.constant 0 : i32
    %c0_i32_0 = arith.constant 0 : i32
    %c0_i32_1 = arith.constant 0 : i32
    return %arg0, %c0_i32, %c0_i32_0 : i32, i32, i32
  }
  func.func @transform_2(%arg0: i32) -> (i32, i32, i32) {
    %c0_i32 = arith.constant 0 : i32
    %c0_i32_0 = arith.constant 0 : i32
    %c0_i32_1 = arith.constant 0 : i32
    %c0_i32_2 = arith.constant 0 : i32
    return %c0_i32, %c0_i32_0, %c0_i32_1 : i32, i32, i32
  }
  func.func @transform_3(%arg0: i32) -> (i32, i32, i32) {
    %c0_i32 = arith.constant 0 : i32
    %c0_i32_0 = arith.constant 0 : i32
    %c0_i32_1 = arith.constant 0 : i32
    return %arg0, %c0_i32, %c0_i32_0 : i32, i32, i32
  }
  func.func @transform_4(%arg0: i32) -> (i32, i32) {
    %c0_i32 = arith.constant 0 : i32
    %c0_i32_0 = arith.constant 0 : i32
    %c0_i32_1 = arith.constant 0 : i32
    return %c0_i32, %c0_i32_0 : i32, i32
  }
  func.func @transform_5(%arg0: i32) -> (i32, i32) {
    %c0_i32 = arith.constant 0 : i32
    %c0_i32_0 = arith.constant 0 : i32
    %c0_i32_1 = arith.constant 0 : i32
    return %c0_i32, %c0_i32_0 : i32, i32
  }
  func.func @transform_6(%arg0: i32) -> (i32, i32) {
    %c0_i32 = arith.constant 0 : i32
    %c0_i32_0 = arith.constant 0 : i32
    %c0_i32_1 = arith.constant 0 : i32
    return %c0_i32, %c0_i32_0 : i32, i32
  }
  func.func @transform_7(%arg0: i32) -> (i32, i32) {
    %c0_i32 = arith.constant 0 : i32
    %c0_i32_0 = arith.constant 0 : i32
    %c0_i32_1 = arith.constant 0 : i32
    return %c0_i32, %c0_i32_0 : i32, i32
  }
  func.func @transform_8(%arg0: i32) -> (i32, i32) {
    %c0_i32 = arith.constant 0 : i32
    %c0_i32_0 = arith.constant 0 : i32
    %c0_i32_1 = arith.constant 0 : i32
    return %c0_i32, %c0_i32_0 : i32, i32
  }
  func.func @transform_9(%arg0: i32) -> (i32, i32) {
    %c0_i32 = arith.constant 0 : i32
    %c0_i32_0 = arith.constant 0 : i32
    %c0_i32_1 = arith.constant 0 : i32
    return %c0_i32, %c0_i32_0 : i32, i32
  }
  func.func @transform_10(%arg0: i32) -> (i32, i32) {
    %c0_i32 = arith.constant 0 : i32
    %c0_i32_0 = arith.constant 0 : i32
    %c0_i32_1 = arith.constant 0 : i32
    return %c0_i32, %c0_i32_0 : i32, i32
  }
  func.func @transform_11(%arg0: i32) -> (i32, i32) {
    %c0_i32 = arith.constant 0 : i32
    %c0_i32_0 = arith.constant 0 : i32
    %c0_i32_1 = arith.constant 0 : i32
    return %c0_i32, %c0_i32_0 : i32, i32
  }
  func.func @transform_12(%arg0: i32) -> (i32, i32) {
    %c0_i32 = arith.constant 0 : i32
    %c0_i32_0 = arith.constant 0 : i32
    %c0_i32_1 = arith.constant 0 : i32
    return %c0_i32, %c0_i32_0 : i32, i32
  }
  func.func @transform_13(%arg0: i32) -> (i32, i32) {
    %c0_i32 = arith.constant 0 : i32
    %c0_i32_0 = arith.constant 0 : i32
    %c0_i32_1 = arith.constant 0 : i32
    return %c0_i32, %c0_i32_0 : i32, i32
  }
  func.func @transform_14(%arg0: i32) -> (i32, i32) {
    %c0_i32 = arith.constant 0 : i32
    %c0_i32_0 = arith.constant 0 : i32
    %c0_i32_1 = arith.constant 0 : i32
    return %c0_i32, %c0_i32_0 : i32, i32
  }
  func.func @transform_15(%arg0: i32) -> (i32, i32) {
    %c0_i32 = arith.constant 0 : i32
    %c0_i32_0 = arith.constant 0 : i32
    %c0_i32_1 = arith.constant 0 : i32
    return %c0_i32, %c0_i32_0 : i32, i32
  }
  func.func @transform_16(%arg0: i32) -> (i32, i32) {
    %c0_i32 = arith.constant 0 : i32
    %c0_i32_0 = arith.constant 0 : i32
    %c0_i32_1 = arith.constant 0 : i32
    return %c0_i32, %c0_i32_0 : i32, i32
  }
  func.func @transform_17(%arg0: i32) -> (i32, i32) {
    %c0_i32 = arith.constant 0 : i32
    %c0_i32_0 = arith.constant 0 : i32
    %c0_i32_1 = arith.constant 0 : i32
    return %c0_i32, %c0_i32_0 : i32, i32
  }
  func.func @transform_18(%arg0: i32) -> (i32, i32) {
    %c0_i32 = arith.constant 0 : i32
    %c0_i32_0 = arith.constant 0 : i32
    %c0_i32_1 = arith.constant 0 : i32
    return %c0_i32, %c0_i32_0 : i32, i32
  }
  func.func @transform_19(%arg0: i32) -> (i32, i32) {
    %c0_i32 = arith.constant 0 : i32
    %c0_i32_0 = arith.constant 0 : i32
    %c0_i32_1 = arith.constant 0 : i32
    return %c0_i32, %c0_i32_0 : i32, i32
  }
  func.func @transform_20(%arg0: i32) -> (i32, i32) {
    %c0_i32 = arith.constant 0 : i32
    %c0_i32_0 = arith.constant 0 : i32
    %c0_i32_1 = arith.constant 0 : i32
    return %c0_i32, %c0_i32_0 : i32, i32
  }
  func.func @transform_21(%arg0: i32) -> (i32, i32) {
    %c0_i32 = arith.constant 0 : i32
    %c0_i32_0 = arith.constant 0 : i32
    %c0_i32_1 = arith.constant 0 : i32
    return %c0_i32, %c0_i32_0 : i32, i32
  }
  func.func @transform_22(%arg0: i32) -> (i32, i32) {
    %c0_i32 = arith.constant 0 : i32
    %c0_i32_0 = arith.constant 0 : i32
    %c0_i32_1 = arith.constant 0 : i32
    return %c0_i32, %c0_i32_0 : i32, i32
  }
  func.func @transform_23(%arg0: i32) -> (i32, i32) {
    %c0_i32 = arith.constant 0 : i32
    %c0_i32_0 = arith.constant 0 : i32
    %c0_i32_1 = arith.constant 0 : i32
    return %c0_i32, %c0_i32_0 : i32, i32
  }
  func.func @transform_24(%arg0: i32) -> (i32, i32) {
    %c0_i32 = arith.constant 0 : i32
    %c0_i32_0 = arith.constant 0 : i32
    %c0_i32_1 = arith.constant 0 : i32
    return %c0_i32, %c0_i32_0 : i32, i32
  }
  func.func @transform_25(%arg0: i32) -> (i32, i32) {
    %c0_i32 = arith.constant 0 : i32
    %c0_i32_0 = arith.constant 0 : i32
    %c0_i32_1 = arith.constant 0 : i32
    return %c0_i32, %c0_i32_0 : i32, i32
  }
  func.func @transform_26(%arg0: i32) -> (i32, i32, i32) {
    %c0_i32 = arith.constant 0 : i32
    %c0_i32_0 = arith.constant 0 : i32
    %c0_i32_1 = arith.constant 0 : i32
    return %arg0, %c0_i32, %c0_i32_0 : i32, i32, i32
  }
  func.func @transform_27(%arg0: i32) -> (i32, i32, i32) {
    %c0_i32 = arith.constant 0 : i32
    %c0_i32_0 = arith.constant 0 : i32
    %c0_i32_1 = arith.constant 0 : i32
    return %arg0, %c0_i32, %c0_i32_0 : i32, i32, i32
  }
  func.func @transform_28(%arg0: i32) -> (i32, i32, i32) {
    %c0_i32 = arith.constant 0 : i32
    %c0_i32_0 = arith.constant 0 : i32
    %c0_i32_1 = arith.constant 0 : i32
    return %arg0, %c0_i32, %c0_i32_0 : i32, i32, i32
  }
}

</mosaic_0001>

<bundles_post_ra>
// kernel: decoder_forward.3
= control target key start
LH: loop header
LB: loop body
LE: loop exit
PB: predicated region body
PF: predicated region fallthrough
CT: control target
= control target key end

     0   :  { %s3513_s0 = inlined_call_operand.vmem [shape: f32[2,8,32], index: 0, kind: input, shape index: {}]   ;;  %s3514_s1 = inlined_call_operand.vmem [shape: f32[2,8,32], index: 1, kind: input, shape index: {}]   ;;  %s3515_s2 = inlined_call_operand.vmem [shape: f32[1,8,8], index: 2, kind: input, shape index: {}]   ;;  %s3516_s3 = inlined_call_operand.vmem [shape: f32[2,1,8], index: 3, kind: input, shape index: {}]   ;;  %s3517_s4 = inlined_call_operand.vmem [shape: bf16[32,32], index: 4, kind: input, shape index: {}]   ;;  %s3518_s5 = inlined_call_operand.vmem [shape: f32[1,32], index: 5, kind: input, shape index: {}]   ;;  %s3519_s6 = inlined_call_operand.vmem [shape: bf16[32,64], index: 6, kind: input, shape index: {}]   ;;  %s3520_s7 = inlined_call_operand.vmem [shape: f32[1,64], index: 7, kind: input, shape index: {}]   ;;  %s3521_s8 = inlined_call_operand.vmem [shape: bf16[32,32], index: 8, kind: input, shape index: {}]   ;;  %s3522_s9 = inlined_call_operand.vmem [shape: f32[1,32], index: 9, kind: input, shape index: {}]   ;;  %s3523_s10 = inlined_call_operand.vmem [shape: f32[1,32], index: 10, kind: input, shape index: {}]   ;;  %s3524_s11 = inlined_call_operand.vmem [shape: f32[1,32], index: 11, kind: input, shape index: {}]   ;;  %s3525_s12 = inlined_call_operand.vmem [shape: bf16[32,32], index: 12, kind: input, shape index: {}]   ;;  %s3526_s13 = inlined_call_operand.vmem [shape: f32[1,32], index: 13, kind: input, shape index: {}]   ;;  %s3527_s14 = inlined_call_operand.vmem [shape: bf16[32,64], index: 14, kind: input, shape index: {}]   ;;  %s3528_s15 = inlined_call_operand.vmem [shape: f32[1,64], index: 15, kind: input, shape index: {}]   ;;  %s3529_s16 = inlined_call_operand.vmem [shape: bf16[32,32], index: 16, kind: input, shape index: {}]   ;;  %s3530_s17 = inlined_call_operand.hbm [shape: f32[1,32], index: 17, kind: input, shape index: {}]   ;;  %s3531_s18 = inlined_call_operand.hbm [shape: f32[1,32], index: 18, kind: input, shape index: {}]   ;;  %s3532_s19 = inlined_call_operand.hbm [shape: f32[1,32], index: 19, kind: input, shape index: {}]   ;;  %s3533_s20 = inlined_call_operand.vmem [shape: bf16[32,64], index: 20, kind: input, shape index: {}]   ;;  %s3534_s21 = inlined_call_operand.hbm [shape: f32[1,64], index: 21, kind: input, shape index: {}]   ;;  %s3535_s22 = inlined_call_operand.vmem [shape: bf16[64,32], index: 22, kind: input, shape index: {}]   ;;  %s3536_s23 = inlined_call_operand.hbm [shape: f32[1,32], index: 23, kind: input, shape index: {}]   ;;  %s3537_s24 = inlined_call_operand.hbm [shape: f32[1,32], index: 24, kind: input, shape index: {}]   ;;  %s3538_s25 = inlined_call_operand.hbm [shape: f32[1,32], index: 25, kind: input, shape index: {}]   ;;  %s3539_s26 = inlined_call_operand.hbm [shape: f32[2,8,32], index: 26, kind: output, shape index: {0}]   ;;  %s3540_s27 = inlined_call_operand.vmem [shape: f32[2,8,32], index: 27, kind: output, shape index: {1}]   ;;  %s3541_s28 = inlined_call_operand.vmem [shape: f32[2,8,32], index: 28, kind: output, shape index: {2}]  }
   0x1   :  { %3572 = sst [smem:[#allocation28_spill]] %s3513_s0 }
   0x2   :  { %3573 = sst [smem:[#allocation29_spill]] %s3514_s1 }
   0x3   :  { %3574 = sst [smem:[#allocation30_spill]] %s3515_s2 }
   0x4   :  { %3575 = sst [smem:[#allocation31_spill]] %s3516_s3 }
   0x5   :  { %3576 = sst [smem:[#allocation32_spill]] %s3517_s4 }
   0x6   :  { %3577 = sst [smem:[#allocation33_spill]] %s3518_s5 }
   0x7   :  { %3578 = sst [smem:[#allocation34_spill]] %s3519_s6 }
   0x8   :  { %3579 = sst [smem:[#allocation35_spill]] %s3520_s7 }
   0x9   :  { %3580 = sst [smem:[#allocation36_spill]] %s3521_s8 }
   0xa   :  { %3581 = sst [smem:[#allocation37_spill]] %s3522_s9 }
   0xb   :  { %3582 = sst [smem:[#allocation38_spill]] %s3523_s10 }
   0xc   :  { %3583 = sst [smem:[#allocation39_spill]] %s3524_s11 }
   0xd   :  { %3584 = sst [smem:[#allocation40_spill]] %s3525_s12 }
   0xe   :  { %3585 = sst [smem:[#allocation41_spill]] %s3530_s17 }
   0xf   :  { %3586 = sst [smem:[#allocation42_spill]] %s3531_s18 }
  0x10   :  { %3587 = sst [smem:[#allocation43_spill]] %s3534_s21 }
  0x11   :  { %34 = vsyncpa [#allocation4], 0 }
  0x12   :  { %35 = vsyncpa [#allocation7], 0 }
  0x13   :  { %36 = vsyncpa [#allocation10], 0 }
  0x14   :  { %37 = vsyncpa [#allocation13], 0 }
  0x15   :  { %38 = vsyncpa [#allocation5], 0 }
  0x16   :  { %40 = vsyncpa [#allocation5 + $0x1], 0  ;;  %s3058_s8 = smov 0   ;;  %s3060_s5 = smov 0  }
  0x17   :  { %s3062_s9 = smov 0   ;;  %s3064_s30 = smov 0  }
  0x18 LB: > { %3588 = sst [smem:[#allocation21_spill]] %s2881_s8  ;;  %s3079_s3 = sadd.s32 4294967295, %s2893_s30   ;;  %s2893_s30 = sphi %s3064_s30, %s3629_s30   ;;  %s2889_s9 = sphi %s3062_s9, %s3631_s9   ;;  %s2885_s5 = sphi %s3060_s5, %s3633_s5   ;;  %s2881_s8 = sphi %s3058_s8, %s3632_s8  }
  0x19   : > { %3589 = sst [smem:[#allocation22_spill]] %s2889_s9  ;;  %s2289_s6 = sadd.s32 4294967294, %s2893_s30  }
  0x1a   : > { %3590 = sst [smem:[#allocation23_spill]] %s2893_s30  ;;  %s3083_s10 = sadd.s32 1, %s2893_s30  }
  0x1b   : > { %3591 = sst [smem:[#allocation24_spill]] %s3083_s10  ;;  %s614_s0 = sadd.s32 1, %s2889_s9 }
  0x1c   : > { %s611_s11 = ssub.s32 %s2893_s30, %s3083_s10  ;;  %p624_p0 = scmp.ne.s32.totalorder %s2889_s9, %s2885_s5 }
  0x1d   : > { %p612_p1 = scmp.eq.s32.totalorder %s611_s11, 0  ;;  %p625_p2 = scmp.eq.s32.totalorder %s3079_s3, 1 }
  0x1e   : > { %p630_p3 = scmp.ne.s32.totalorder %s2885_s5, %s2881_s8  ;;  %p631_p4 = scmp.eq.s32.totalorder %s2289_s6, 1 }
  0x1f   : > { %s3094_s29 = scalar_select %p612_p1, %s2889_s9, %s614_s0  }
  0x20   : > { %p3096_p5 = por %p625_p2, %p624_p0  ;;  %p3100_p6 = por %p631_p4, %p630_p3 }
  0x21   : > { %3592 = sst [smem:[#allocation25_spill]] %s3094_s29  ;;  %p2290_p7 = scmp.ge.s32.totalorder %s2893_s30, 1 }
  0x22   : > { %s3593_s2 = scalar_select %p3096_p5, 1, 0 }
  0x23   : > { %s3595_s7 = scalar_select %p3100_p6, 1, 0 }
  0x24   : > { %3594 = sst [smem:[#allocation26_spill]] %s3593_s2  ;;  %p690_p8 = scmp.lt.s32.totalorder %s2893_s30, 3 }
  0x25   : > { %3596 = sst [smem:[#allocation27_spill]] %s3595_s7  ;;  %p2486_p9 = scmp.eq.s32.totalorder %s3079_s3, 0 }
  0x26   : > { %p3107_p10 = pnand %p2290_p7, %p690_p8  ;;  %s3598_s18 = sld [smem:[#allocation42_spill]] }
  0x27   : > { %s2895_s0 = smov [#allocation6]   ;;  %s3599_s21 = sld [smem:[#allocation43_spill]] }
  0x28   : > { %p2460_p11 = pneg %p3107_p10  ;;  %s758_s11 = sshll.u32 %s2895_s0, 4  ;;  %s759_s11 = int_to_ptr.vmem [resolvable:$true] %s758_s11 }
  0x29   : > { %s2896_s8 = smov [#allocation9]   ;;  %s3601_s17 = sld [smem:[#allocation41_spill]] }
  0x2a   : > { %p3121_p12 = pnand %p2486_p9, %p2460_p11  ;;  %s785_s0 = sshll.u32 %s2896_s8, 4  ;;  %s786_s0 = int_to_ptr.vmem [resolvable:$true] %s785_s0 }
  0x2b   : > { %s2897_s30 = smov [#allocation12]   ;;  %s2898_s1 = smov [#allocation3]  }
  0x2c   : > { %s756_s6 = sshll.u32 %s3598_s18, 4  ;;  %s810_s18 = sshll.u32 %s3537_s24, 4  ;;  %s757_s6 = int_to_ptr.hbm [resolvable:$true] %s756_s6  ;;  %s811_s18 = int_to_ptr.hbm [resolvable:$true] %s810_s18 }
  0x2d   : > { %s783_s10 = sshll.u32 %s3599_s21, 4  ;;  %s812_s2 = sshll.u32 %s2897_s30, 4  ;;  %s784_s10 = int_to_ptr.hbm [resolvable:$true] %s783_s10  ;;  %s813_s2 = int_to_ptr.vmem [resolvable:$true] %s812_s2 }
  0x2e   : > { %2466 = dma.hbm_to_vmem [thread:$0]  (!%p3121_p12), %s757_s6, 16, %s759_s11, [#allocation7]  }
  0x2f   : > { %2472 = dma.hbm_to_vmem [thread:$0]  (!%p3121_p12), %s784_s10, 16, %s786_s0, [#allocation10]  }
  0x30   : > { %s744_s21 = sshll.u32 %s3601_s17, 4  ;;  %s746_s8 = sshll.u32 %s2898_s1, 4  ;;  %s745_s21 = int_to_ptr.hbm [resolvable:$true] %s744_s21  ;;  %s747_s8 = int_to_ptr.vmem [resolvable:$true] %s746_s8 }
  0x31   : > { %2478 = dma.hbm_to_vmem [thread:$0]  (!%p3121_p12), %s811_s18, 16, %s813_s2, [#allocation13]  }
  0x32   : > { %s768_s11 = sshll.u32 %s3532_s19, 4  ;;  %s798_s30 = sshll.u32 %s3536_s23, 4  ;;  %s769_s11 = int_to_ptr.hbm [resolvable:$true] %s768_s11  ;;  %s799_s30 = int_to_ptr.hbm [resolvable:$true] %s798_s30 }
  0x33   : > { %2463 = dma.hbm_to_vmem [thread:$0]  (!%p3121_p12), %s745_s21, 16, %s747_s8, [#allocation4]  }
  0x34   : > { %s2899_s9 = smov [#allocation8]   ;;  %s2900_s18 = smov [#allocation11]  }
  0x35   : > { %s770_s29 = sshll.u32 %s2899_s9, 4  ;;  %s800_s2 = sshll.u32 %s2900_s18, 4  ;;  %s771_s29 = int_to_ptr.vmem [resolvable:$true] %s770_s29  ;;  %s801_s2 = int_to_ptr.vmem [resolvable:$true] %s800_s2 }
  0x36   : > { %2469 = dma.hbm_to_vmem [thread:$0]  (!%p3121_p12), %s769_s11, 16, %s771_s29, [#allocation7]  }
  0x37   : > { %s822_s6 = sshll.u32 %s3538_s25, 4  ;;  %s2901_s21 = smov [#allocation14]   ;;  %s823_s6 = int_to_ptr.hbm [resolvable:$true] %s822_s6 }
  0x38   : > { %2475 = dma.hbm_to_vmem [thread:$0]  (!%p3121_p12), %s799_s30, 16, %s801_s2, [#allocation10]  }
  0x39   : > { %s824_s8 = sshll.u32 %s2901_s21, 4  ;;  %857 = sbr.rel (%p3107_p10) target bundleno = 3572 (0xdf4), region = 124  ;;  %s825_s8 = int_to_ptr.vmem [resolvable:$true] %s824_s8 }
  0x3a   : > { %2481 = dma.hbm_to_vmem [thread:$0]  (!%p3121_p12), %s823_s6, 16, %s825_s8, [#allocation13]  }
  0x3e   : > { %2860 = dma.done.wait (%p2486_p9), [#allocation4], 16  }
  0x3f   : > { %2862 = vsyncadd (%p2486_p9), [#allocation4], 4294967280 }
  0x40   : > { %2864 = dma.done.wait (%p2486_p9), [#allocation7], 32  }
  0x41   : > { %2866 = vsyncadd (%p2486_p9), [#allocation7], 4294967264 }
  0x42   : > { %2868 = dma.done.wait (%p2486_p9), [#allocation10], 32  }
  0x43   : > { %2870 = vsyncadd (%p2486_p9), [#allocation10], 4294967264 }
  0x44   : > { %2872 = dma.done.wait (%p2486_p9), [#allocation13], 32  }
  0x45   : > { %2874 = vsyncadd (%p2486_p9), [#allocation13], 4294967264  ;;  %p976_p13 = scmp.lt.s32.totalorder %s3079_s3, 1  ;;  %s3602_s0 = sld [smem:[#allocation28_spill]]  ;;  %vm1022_vm0 = vcmask 261120   ;;  %vm1074_vm1 = vcmask 64512  }
  0x46   : > { %s3603_s18 = sld [smem:[#allocation32_spill]]  ;;  %s3568_s2 = smov 120   ;;  %vm1128_vm2 = vcmask 1043456  }
  0x47   : > { %s3174_s7 = scalar_select %p976_p13, %s3079_s3, 1 }
  0x48   : > { %s3604_s4 = sld [smem:[#allocation34_spill]]  ;;  %s3566_s1 = smov 112  }
  0x49   : > { %s3177_s12 = sshll.u32 %s3174_s7, 3  ;;  %s3606_s29 = sld [smem:[#allocation35_spill]] }
  0x4a   : > { %s3564_s6 = smov 104   ;;  %s3607_s11 = sld [smem:[#allocation30_spill]] }
  0x4b   : > { %s979_s30 = scalar_lea.vmem %s3602_s0, %s3177_s12  ;;  %s3605_s0 = sld [smem:[#allocation33_spill]] }
  0x4c   : > { %v2413_v0 = vld [vmem:[%s3603_s18 + $0x8] sm:$0xff]  ;;  %v2412_v2 = vld [vmem:[%s3603_s18] sm:$0xff]  ;;  %s3241_s17 = scalar_lea.vmem %s3540_s27, %s3177_s12  ;;  %s3557_s9 = smov 88  }
  0x4d   : > { %1032 = vmatpush.bf16.msra.mxu0 %v2413_v0  ;;  %v3195_v4 = vld [vmem:[%s979_s30] sm:$0xff]  ;;  %s3556_s30 = smov 96   ;;  %s3555_s21 = smov 72  }
  0x4e   : > { %v2415_v1 = vld [vmem:[%s3604_s4 + $0x8] sm:$0xff]  ;;  %v2414_v3 = vld [vmem:[%s3604_s4] sm:$0xff]  ;;  %v1001_v5 = vpack.c.bf16 %v3195_v4, %v3195_v4  ;;  %s3558_s8 = smov 16   ;;  %s3560_s10 = smov 24  }
  0x4f   : > { %1065 = vmatpush.bf16.msra.mxu1 %v2415_v1  ;;  %v2552_v7 = vld [vmem:[%s3606_s29] ss:$0 sm:$0xff]  ;;  %s3554_s29 = smov 80   ;;  %s3611_s4 = sld [smem:[#allocation40_spill]] }
  0x50   : > { %v997_v25 = vld [vmem:[%s3607_s11] sm:$0xff]  ;;  %s3562_s11 = smov 8  }
  0x51   : > { %1033 = vmatpush.bf16.msra.mxu0 %v2412_v2  ;;  %v2551_v6 = vld [vmem:[%s3605_s0] ss:$0 sm:$0xff]  ;;  %v3228_v26 = vmul.f32 -1e+09, %v997_v25  ;;  %s3614_s0 = smov 120  }
  0x53   : > { %1066 = vmatpush.bf16.msra.mxu1 %v2414_v3 }
  0x54   : > { %2320 = vmatmul.msk.bf16.vlgmr.msra.gmra.mxu0 %vm1022_vm0, %v1001_v5 }
  0x56   : > { %2329 = vmatmul.msk.bf16.vlgmr.msra.gmra.mxu1 %vm1022_vm0, %v1001_v5 }
  0xd1   : > { %v1035_v8 = vpop.f32.mrf.mxu0 }
  0xd2   : > { %v1036_v10 = vadd.f32 %v2551_v6, %v1035_v8 }
  0xd3   : > { %v1068_v9 = vpop.f32.mrf.mxu1 }
  0xd4   : > { %v1069_v11 = vadd.f32 %v2552_v7, %v1068_v9  ;;  %v1072_v12 = vpack.c.bf16 %v1036_v10, %v1036_v10 }
  0xd6   : > { %v3207_v13 = vpack.c.bf16 %v1069_v11, %v1069_v11  ;;  %1147 = vrot.lane.b32.xlu2 %v1072_v12, %s3568_s2 }
  0xd8   : > { %1123 = vrot.lane.b32.xlu1 %v3207_v13, %s3556_s30  ;;  %v1079_v14 = vsel %vm1074_vm1, %v3207_v13, 0 }
  0xd9   : > { %1088 = vmatpush.bf16.xpose.msra.mxu2 %v1079_v14  ;;  %v1037_v15 = vpop.f32.mrf.mxu0 }
  0xdb   : > { %v1070_v16 = vpop.f32.mrf.mxu1 }
  0xde   : > { %1231 = vrot.lane.b32.xlu2 %v3207_v13, %s3566_s1 }
  0xe0   : > { %1149 = vrot.lane.b32.xlu1 %v3207_v13, %s3568_s2  ;;  %2330 = vmatmul.msk.bf16.vlgmr.msra.gmra.mxu2 %vm1074_vm1, %v1072_v12  ;;  %s3619_s2 = smov 96  }
  0xe6   : > { %1311 = vrot.lane.b32.xlu2 %v1072_v12, %s3564_s6 }
  0xe8   : > { %1229 = vrot.lane.b32.xlu1 %v1072_v12, %s3566_s1  ;;  %s3615_s1 = smov 112  }
 0x130   : > { %v1148_v17 = vpop.permute.xlu2 %1147 }
 0x138   : > { %v1232_v18 = vpop.permute.xlu2 %1231 }
 0x139   : > { %v1237_v19 = vsel %vm1074_vm1, %v1232_v18, 0 }
 0x13a   : > { %1246 = vmatpush.bf16.xpose.msrb.mxu1 %v1237_v19 }
 0x140   : > { %v1312_v57 = vpop.permute.xlu2 %1311 }
 0x14a   : > { %v1124_v20 = vpop.permute.xlu1 %1123 }
 0x14b   : > { %v1130_v21 = vsel %vm1128_vm2, %v1124_v20, 0 }
 0x14c   : > { %1139 = vmatpush.bf16.msra.mxu3 %v1130_v21 }
 0x152   : > { %v1150_v22 = vpop.permute.xlu1 %1149 }
 0x153   : > { %v1155_v23 = vsel %vm1074_vm1, %v1150_v22, 0 }
 0x154   : > { %1164 = vmatpush.bf16.xpose.msrb.mxu3 %v1155_v23 }
 0x15a   : > { %v1230_v24 = vpop.permute.xlu1 %1229 }
 0x15b   : > { %2334 = vmatmul.msk.bf16.vlgmr.msrb.gmra.mxu1 %vm1074_vm1, %v1230_v24 }
 0x163   : > { %v1090_v27 = vpop.f32.mrf.mxu2 }
 0x164   : > { %v1094_v28 = vmul.f32 0.35355338, %v1090_v27 }
 0x166   : > { %v1095_v29 = vadd.f32 %v1094_v28, %v3228_v26 }
 0x168   : > { %v1096_v30 = vsel %vm1074_vm1, %v1095_v29, -inf }
 0x169   : > { %1097 = vmax.xlane.f32.xlu0 %v1096_v30 }
 0x16b   : > { %v1092_v31 = vpop.f32.mrf.mxu2 }
 0x1d8   : > { %v1248_v32 = vpop.f32.mrf.mxu1 }
 0x1d9   : > { %v1252_v33 = vmul.f32 0.35355338, %v1248_v32 }
 0x1db   : > { %v1253_v34 = vadd.f32 %v1252_v33, %v3228_v26 }
 0x1dc   : > { %v1098_v35 = vpop.xlane.xlu0 %1097 }
 0x1dd   : > { %v1254_v36 = vsel %vm1074_vm1, %v1253_v34, -inf  ;;  %v1099_v37 = vsub.f32 %v1095_v29, %v1098_v35 }
 0x1de   : > { %1255 = vmax.xlane.f32.xlu2 %v1254_v36 }
 0x1df   : > { %v1100_v38 = vmul.f32 1.442695, %v1099_v37 }
 0x1e0   : > { %v1250_v39 = vpop.f32.mrf.mxu1 }
 0x1e1   : > { %2565 = vpow2.f32 %v1100_v38 }
 0x1e7   : > { %v2566_v40 = vpop.eup %2565 }
 0x1e8   : > { %v1102_v41 = vsel %vm1074_vm1, %v2566_v40, 0.0 }
 0x1e9   : > { %1103 = vadd.xlane.f32.xlu0 %v1102_v41 }
 0x1fd   : > { %1313 = vrot.lane.b32.xlu0 %v3207_v13, %s3564_s6  ;;  %s3612_s6 = sld [smem:[#allocation38_spill]] }
 0x251   : > { %v1256_v60 = vpop.xlane.xlu2 %1255 }
 0x252   : > { %v1257_v61 = vsub.f32 %v1253_v34, %v1256_v60 }
 0x254   : > { %v1258_v62 = vmul.f32 1.442695, %v1257_v61 }
 0x25c   : > { %v1104_v42 = vpop.xlane.xlu0 %1103 }
 0x25d   : > { %2567 = vrcp.f32 %v1104_v42  ;;  %v1116_v46 = vand.u32 2147483648, %v1104_v42  ;;  %v1114_v48 = vand.u32 2147483647, %v1104_v42  ;;  %vm1110_vm4 = vweird.f32 %v1104_v42 }
 0x25e   : > { %2569 = vpow2.f32 %v1258_v62 }
 0x25f   : > { %v1117_v50 = vor.u32 1.1754944e-38, %v1116_v46  ;;  %vm1115_vm6 = vcmp.eq.f32.partialorder %v1114_v48, 8.507059e+37 }
 0x263   : > { %v2568_v43 = vpop.eup %2567 }
 0x264   : > { %v1106_v44 = vmul.f32 %v2568_v43, %v1104_v42  ;;  %vm1111_vm3 = vweird.f32 %v2568_v43  ;;  %v2570_v5 = vpop.eup %2569 }
 0x265   : > { %vm1112_vm5 = vmor %vm1110_vm4, %vm1111_vm3  ;;  %v1260_v6 = vsel %vm1074_vm1, %v2570_v5, 0.0 }
 0x266   : > { %v1107_v45 = vsub.f32 1.0, %v1106_v44 }
 0x268   : > { %v1108_v47 = vmul.f32 %v2568_v43, %v1107_v45 }
 0x26a   : > { %v1109_v49 = vadd.f32 %v2568_v43, %v1108_v47 }
 0x26c   : > { %v1113_v51 = vsel %vm1112_vm5, %v2568_v43, %v1109_v49 }
 0x26d   : > { %v1118_v52 = vsel %vm1115_vm6, %v1117_v50, %v1113_v51  ;;  %vm1200_vm6 = vcmask 130112  }
 0x26e   : > { %v1119_v53 = vmul.f32 %v2566_v40, %v1118_v52 }
 0x26f   : > { %v1314_v54 = vpop.permute.xlu0 %1313 }
 0x270   : > { %v1319_v55 = vsel %vm1074_vm1, %v1314_v54, 0  ;;  %v1121_v56 = vpack.c.bf16 %v1119_v53, %v1119_v53  ;;  %1120 = vst.msk [vmem:[%s3241_s17] sm:$0xff] %vm1074_vm1, %v1119_v53 }
 0x272   : > { %2331 = vmatmul.msk.bf16.vlgmr.msra.gmra.mxu3 %vm1074_vm1, %v1121_v56 }
 0x273   : > { %1328 = vmatpush.bf16.xpose.msra.mxu3 %v1319_v55 }
 0x282   : > { %2332 = vmatmul.msk.bf16.vlgmr.msrb.gmra.mxu3 %vm1074_vm1, %v1148_v17 }
 0x292   : > { %2336 = vmatmul.msk.bf16.vlgmr.msra.gmra.mxu3 %vm1074_vm1, %v1312_v57 }
 0x2f5   : > { %v1141_v58 = vpop.f32.mrf.mxu3 }
 0x2f6   : > { %1145 = vst.msk [vmem:[#allocation2] sm:$0xff] %vm1074_vm1, %v1141_v58 }
 0x2fd   : > { %v1143_v59 = vpop.f32.mrf.mxu3 }
 0x305   : > { %v1166_v63 = vpop.f32.mrf.mxu3 }
 0x306   : > { %v1170_v0 = vmul.f32 0.35355338, %v1166_v63 }
 0x308   : > { %v1171_v1 = vadd.f32 %v1170_v0, %v3228_v26 }
 0x30a   : > { %v1172_v2 = vsel %vm1074_vm1, %v1171_v1, -inf }
 0x30b   : > { %1173 = vmax.xlane.f32.xlu1 %v1172_v2 }
 0x30d   : > { %v1168_v3 = vpop.f32.mrf.mxu3 }
 0x313   : > { %1261 = vadd.xlane.f32.xlu1 %v1260_v6 }
 0x315   : > { %v1330_v7 = vpop.f32.mrf.mxu3 }
 0x316   : > { %v1334_v8 = vmul.f32 0.35355338, %v1330_v7 }
 0x318   : > { %v1335_v9 = vadd.f32 %v1334_v8, %v3228_v26 }
 0x31a   : > { %v1336_v10 = vsel %vm1074_vm1, %v1335_v9, -inf }
 0x31b   : > { %1337 = vmax.xlane.f32.xlu0 %v1336_v10 }
 0x31d   : > { %v1332_v11 = vpop.f32.mrf.mxu3 }
 0x32c   : > { %1203 = vrot.lane.b32.xlu1 %v3207_v13, %s3557_s9  ;;  %s3609_s9 = sld [smem:[#allocation37_spill]] }
 0x32f   : > { %1285 = vrot.lane.b32.xlu0 %v3207_v13, %s3554_s29  ;;  %s3378_s29 = scalar_lea.vmem %s3541_s28, %s3177_s12 }
 0x37e   : > { %v1174_v12 = vpop.xlane.xlu1 %1173 }
 0x37f   : > { %v1175_v14 = vsub.f32 %v1171_v1, %v1174_v12 }
 0x381   : > { %v1176_v15 = vmul.f32 1.442695, %v1175_v14 }
 0x383   : > { %2571 = vpow2.f32 %v1176_v15 }
 0x386   : > { %v1262_v16 = vpop.xlane.xlu1 %1261 }
 0x387   : > { %2573 = vrcp.f32 %v1262_v16  ;;  %v1274_v27 = vand.u32 2147483648, %v1262_v16  ;;  %vm1268_vm8 = vweird.f32 %v1262_v16  ;;  %v1272_v28 = vand.u32 2147483647, %v1262_v16 }
 0x389   : > { %v2572_v17 = vpop.eup %2571  ;;  %v1275_v32 = vor.u32 1.1754944e-38, %v1274_v27  ;;  %vm1273_vm10 = vcmp.eq.f32.partialorder %v1272_v28, 8.507059e+37 }
 0x38a   : > { %v1178_v18 = vsel %vm1074_vm1, %v2572_v17, 0.0 }
 0x38b   : > { %1179 = vadd.xlane.f32.xlu2 %v1178_v18  ;;  %v2553_v18 = vld [vmem:[%s3609_s9] ss:$0 sm:$0xff] }
 0x38d   : > { %v2574_v19 = vpop.eup %2573 }
 0x38e   : > { %v1264_v20 = vmul.f32 %v2574_v19, %v1262_v16  ;;  %v1338_v21 = vpop.xlane.xlu0 %1337  ;;  %vm1269_vm7 = vweird.f32 %v2574_v19 }
 0x38f   : > { %v1339_v22 = vsub.f32 %v1335_v9, %v1338_v21  ;;  %vm1270_vm9 = vmor %vm1268_vm8, %vm1269_vm7  ;;  %vm1282_vm7 = vcmask 195712   ;;  %vm1364_vm8 = vcmask 261312  }
 0x390   : > { %v1265_v23 = vsub.f32 1.0, %v1264_v20 }
 0x391   : > { %v1340_v24 = vmul.f32 1.442695, %v1339_v22 }
 0x392   : > { %v1266_v25 = vmul.f32 %v2574_v19, %v1265_v23 }
 0x393   : > { %2575 = vpow2.f32 %v1340_v24  ;;  %v2912_v24 = vmov 32.0  }
 0x394   : > { %v1267_v26 = vadd.f32 %v2574_v19, %v1266_v25 }
 0x396   : > { %v1271_v30 = vsel %vm1270_vm9, %v2574_v19, %v1267_v26 }
 0x397   : > { %v1276_v33 = vsel %vm1273_vm10, %v1275_v32, %v1271_v30 }
 0x398   : > { %v3262_v36 = vmul.f32 %v2570_v5, %v1276_v33 }
 0x399   : > { %v2576_v29 = vpop.eup %2575 }
 0x39a   : > { %v1342_v31 = vsel %vm1074_vm1, %v2576_v29, 0.0  ;;  %v1284_v39 = vpack.c.bf16 %v3262_v36, %v3262_v36 }
 0x39b   : > { %1343 = vadd.xlane.f32.xlu2 %v1342_v31 }
 0x39e   : > { %v1204_v34 = vpop.permute.xlu1 %1203 }
 0x39f   : > { %v1209_v35 = vsel %vm1128_vm2, %v1204_v34, 0 }
 0x3a0   : > { %1218 = vmatpush.bf16.msrb.mxu0 %v1209_v35  ;;  %v2421_v35 = vld [vmem:[%s3527_s14 + $0x8] sm:$0xff] }
 0x3a1   : > { %v1286_v37 = vpop.permute.xlu0 %1285  ;;  %1539 = vmatpush.bf16.msrb.mxu3 %v2421_v35 }
 0x3a2   : > { %v1291_v38 = vsel %vm1128_vm2, %v1286_v37, 0  ;;  %v2420_v37 = vld [vmem:[%s3527_s14] sm:$0xff] }
 0x3a3   : > { %1300 = vmatpush.bf16.msrb.mxu2 %v1291_v38 }
 0x3a5   : > { %1540 = vmatpush.bf16.msrb.mxu3 %v2420_v37 }
 0x3a6   : > { %2335 = vmatmul.msk.bf16.vlgmr.msrb.gmra.mxu2 %vm1074_vm1, %v1284_v39 }
 0x3b3   : > { %1367 = vrot.lane.b32.xlu2 %v3207_v13, %s3555_s21  ;;  %s3608_s21 = sld [smem:[#allocation36_spill]] }
 0x3b9   : > { %v2417_v10 = vld [vmem:[%s3608_s21 + $0x8] sm:$0xff]  ;;  %v2416_v11 = vld [vmem:[%s3608_s21] sm:$0xff] }
 0x3ba   : > { %1424 = vmatpush.bf16.msra.mxu1 %v2417_v10 }
 0x3be   : > { %1425 = vmatpush.bf16.msra.mxu1 %v2416_v11 }
 0x3fe   : > { %v1180_v40 = vpop.xlane.xlu2 %1179 }
 0x3ff   : > { %2577 = vrcp.f32 %v1180_v40  ;;  %v1192_v45 = vand.u32 2147483648, %v1180_v40  ;;  %v1190_v46 = vand.u32 2147483647, %v1180_v40  ;;  %vm1186_vm12 = vweird.f32 %v1180_v40 }
 0x401   : > { %v1193_v49 = vor.u32 1.1754944e-38, %v1192_v45  ;;  %vm1191_vm14 = vcmp.eq.f32.partialorder %v1190_v46, 8.507059e+37 }
 0x405   : > { %v2578_v41 = vpop.eup %2577 }
 0x406   : > { %v1182_v42 = vmul.f32 %v2578_v41, %v1180_v40  ;;  %vm1187_vm11 = vweird.f32 %v2578_v41  ;;  %v2419_v40 = vld [vmem:[%s3611_s4 + $0x8] sm:$0xff] }
 0x407   : > { %vm1188_vm13 = vmor %vm1186_vm12, %vm1187_vm11  ;;  %1502 = vmatpush.bf16.msra.mxu2 %v2419_v40 }
 0x408   : > { %v1183_v43 = vsub.f32 1.0, %v1182_v42 }
 0x40a   : > { %v1184_v44 = vmul.f32 %v2578_v41, %v1183_v43 }
 0x40c   : > { %v1185_v47 = vadd.f32 %v2578_v41, %v1184_v44 }
 0x40e   : > { %v1189_v48 = vsel %vm1188_vm13, %v2578_v41, %v1185_v47  ;;  %v1344_v50 = vpop.xlane.xlu2 %1343  ;;  %v2418_v41 = vld [vmem:[%s3611_s4] sm:$0xff] }
 0x40f   : > { %2579 = vrcp.f32 %v1344_v50  ;;  %v1194_v51 = vsel %vm1191_vm14, %v1193_v49, %v1189_v48  ;;  %v1356_v58 = vand.u32 2147483648, %v1344_v50  ;;  %v1354_v60 = vand.u32 2147483647, %v1344_v50  ;;  %1503 = vmatpush.bf16.msra.mxu2 %v2418_v41 }
 0x410   : > { %v3270_v52 = vmul.f32 %v2572_v17, %v1194_v51  ;;  %vm1350_vm3 = vweird.f32 %v1344_v50  ;;  %2581 = vrcp.f32 %v2912_v24  ;;  %v2554_v51 = vld [vmem:[%s3612_s6] ss:$0 sm:$0xff]  ;;  %s3616_s6 = smov 104  }
 0x411   : > { %v1357_v62 = vor.u32 1.1754944e-38, %v1356_v58  ;;  %vm1355_vm5 = vcmp.eq.f32.partialorder %v1354_v60, 8.507059e+37  ;;  %v2556_v58 = vld [vmem:[%s3528_s15] ss:$0 sm:$0xff] }
 0x412   : > { %v1202_v13 = vpack.c.bf16 %v3270_v52, %v3270_v52 }
 0x414   : > { %2333 = vmatmul.msk.bf16.vlgmr.msrb.gmra.mxu0 %vm1074_vm1, %v1202_v13 }
 0x415   : > { %v2580_v53 = vpop.eup %2579 }
 0x416   : > { %v1346_v54 = vmul.f32 %v2580_v53, %v1344_v50  ;;  %v1368_v55 = vpop.permute.xlu2 %1367  ;;  %vm1351_vm15 = vweird.f32 %v2580_v53  ;;  %v2582_v25 = vpop.eup %2581 }
 0x417   : > { %v1373_v56 = vsel %vm1128_vm2, %v1368_v55, 0  ;;  %vm1352_vm4 = vmor %vm1350_vm3, %vm1351_vm15  ;;  %v1436_v26 = vmul.f32 32.0, %v2582_v25  ;;  %vm1440_vm9 = vweird.f32 %v2582_v25 }
 0x418   : > { %v1347_v57 = vsub.f32 1.0, %v1346_v54  ;;  %1382 = vmatpush.bf16.msra.mxu0 %v1373_v56 }
 0x419   : > { %v1437_v27 = vsub.f32 1.0, %v1436_v26 }
 0x41a   : > { %v1348_v59 = vmul.f32 %v2580_v53, %v1347_v57 }
 0x41b   : > { %v1438_v28 = vmul.f32 %v2582_v25, %v1437_v27 }
 0x41c   : > { %v1349_v61 = vadd.f32 %v2580_v53, %v1348_v59 }
 0x41e   : > { %v1353_v63 = vsel %vm1352_vm4, %v2580_v53, %v1349_v61 }
 0x41f   : > { %v1358_v0 = vsel %vm1355_vm5, %v1357_v62, %v1353_v63 }
 0x420   : > { %v3276_v1 = vmul.f32 %v2576_v29, %v1358_v0  ;;  %v1439_v29 = vadd.f32 %v2582_v25, %v1438_v28  ;;  %v2557_v0 = vld [vmem:[%s3526_s13] ss:$0 sm:$0xff] }
 0x422   : > { %v1366_v2 = vpack.c.bf16 %v3276_v1, %v3276_v1  ;;  %v3299_v30 = vsel %vm1440_vm9, %v2582_v25, %v1439_v29 }
 0x424   : > { %2337 = vmatmul.msk.bf16.vlgmr.msra.gmra.mxu0 %vm1074_vm1, %v1366_v2 }
 0x429   : > { %v1302_v3 = vpop.f32.mrf.mxu2 }
 0x42a   : > { %1307 = vrot.lane.b32.xlu1 %v1302_v3, %s3558_s8  ;;  %s3610_s8 = sld [smem:[#allocation29_spill]] }
 0x431   : > { %v1304_v5 = vpop.f32.mrf.mxu2 }
 0x491   : > { %v1220_v6 = vpop.f32.mrf.mxu0 }
 0x492   : > { %1225 = vrot.lane.b32.xlu0 %v1220_v6, %s3562_s11  ;;  %s3624_s11 = smov 16  }
 0x499   : > { %v1222_v7 = vpop.f32.mrf.mxu0 }
 0x49c   : > { %v1308_v14 = vpop.permute.xlu1 %1307 }
 0x4a1   : > { %v1384_v8 = vpop.f32.mrf.mxu0 }
 0x4a2   : > { %1389 = vrot.lane.b32.xlu2 %v1384_v8, %s3560_s10  ;;  %s983_s10 = scalar_lea.vmem %s3610_s8, %s3177_s12  ;;  %s3621_s12 = smov 80  }
 0x4a3   : > { %v1471_v38 = vld [vmem:[%s983_s10] sm:$0xff]  ;;  %s3613_s10 = sld [smem:[#allocation39_spill]]  ;;  %s3623_s8 = smov 24  }
 0x4a4   : > { %v1509_v39 = vpack.c.bf16 %v1471_v38, %v1471_v38 }
 0x4a6   : > { %2364 = vmatmul.msk.bf16.vlgmr.msrb.gmra.mxu3 %vm1022_vm0, %v1509_v39 }
 0x4a9   : > { %v1386_v9 = vpop.f32.mrf.mxu0  ;;  %v2555_v53 = vld [vmem:[%s3613_s10] ss:$0 sm:$0xff]  ;;  %s3617_s10 = sld [smem:[#allocation31_spill]] }
 0x4af   : > { %s986_s30 = scalar_lea.vmem %s3617_s10, %s3174_s7  ;;  %s3618_s7 = smov 88  }
 0x4fc   : > { %v1390_v15 = vpop.permute.xlu2 %1389 }
 0x504   : > { %v1226_v12 = vpop.permute.xlu0 %1225 }
 0x505   : > { %1228 = vst.msk [vmem:[#allocation2] sm:$0xff] %vm1200_vm6, %v1226_v12 }
 0x506   : > { %1310 = vst.msk [vmem:[#allocation2] sm:$0xff] %vm1282_vm7, %v1308_v14 }
 0x507   : > { %1392 = vst.msk [vmem:[#allocation2] sm:$0xff] %vm1364_vm8, %v1390_v15 }
 0x50e   : > { %v1393_v16 = vld [vmem:[#allocation2] sm:$0xff] }
 0x50f   : > { %v1394_v17 = vpack.c.bf16 %v1393_v16, %v1393_v16  ;;  %v999_v16 = vld [vmem:[%s986_s30] sm:$0x1] }
 0x511   : > { %2346 = vmatmul.msk.bf16.vlgmr.msra.gmra.mxu1 %vm1022_vm0, %v1394_v17  ;;  %v1000_v17 = vmul.f32 -1e+09, %v999_v16 }
 0x529   : > { %v1542_v59 = vpop.f32.mrf.mxu3 }
 0x52a   : > { %v1543_v60 = vadd.f32 %v2556_v58, %v1542_v59 }
 0x52c   : > { %v3335_v61 = vpack.c.bf16 %v1543_v60, %v1543_v60 }
 0x52e   : > { %1624 = vrot.lane.b32.xlu2 %v3335_v61, %s3614_s0  ;;  %v1552_v62 = vsel %vm1074_vm1, %v3335_v61, 0 }
 0x52f   : > { %1561 = vmatpush.bf16.xpose.msrb.mxu0 %v1552_v62 }
 0x531   : > { %v1544_v63 = vpop.f32.mrf.mxu3 }
 0x588   : > { %v1625_v7 = vpop.permute.xlu2 %1624 }
 0x589   : > { %v1630_v8 = vsel %vm1074_vm1, %v1625_v7, 0 }
 0x58a   : > { %1639 = vmatpush.bf16.xpose.msrb.mxu2 %v1630_v8 }
 0x58e   : > { %v1427_v19 = vpop.f32.mrf.mxu1 }
 0x58f   : > { %v1428_v20 = vadd.f32 %v2553_v18, %v1427_v19  ;;  %v1569_v19 = vperm.slane %v1000_v17, 0 }
 0x591   : > { %v1431_v21 = vadd.f32 %v1428_v20, %v3195_v4 }
 0x593   : > { %v1432_v22 = vsel %vm1022_vm0, %v1431_v21, 0.0 }
 0x594   : > { %1433 = vadd.xlane.f32.xlu0 %v1432_v22 }
 0x596   : > { %v1429_v23 = vpop.f32.mrf.mxu1 }
 0x607   : > { %v1434_v31 = vpop.xlane.xlu0 %1433 }
 0x608   : > { %v1442_v32 = vmul.f32 %v3299_v30, %v1434_v31 }
 0x60a   : > { %v1443_v33 = vsub.f32 %v1431_v21, %v1442_v32 }
 0x60c   : > { %v1444_v4 = vmul.f32 %v1443_v33, %v1443_v33 }
 0x60e   : > { %v1445_v34 = vsel %vm1022_vm0, %v1444_v4, 0.0 }
 0x60f   : > { %1446 = vadd.xlane.f32.xlu1 %v1445_v34 }
 0x682   : > { %v1447_v42 = vpop.xlane.xlu1 %1446 }
 0x683   : > { %v1448_v43 = vmul.f32 %v1447_v42, %v3299_v30 }
 0x685   : > { %v1449_v44 = vadd.f32 1e-06, %v1448_v43 }
 0x687   : > { %2583 = vrsqrt.f32 %v1449_v44  ;;  %vm1456_vm11 = vweird.f32 %v1449_v44 }
 0x68d   : > { %v2584_v45 = vpop.eup %2583 }
 0x68e   : > { %v1451_v46 = vmul.f32 %v2584_v45, %v1449_v44  ;;  %vm1457_vm10 = vweird.f32 %v2584_v45 }
 0x68f   : > { %vm1458_vm12 = vmor %vm1456_vm11, %vm1457_vm10 }
 0x690   : > { %v1452_v47 = vmul.f32 %v2584_v45, %v1451_v46 }
 0x692   : > { %v1453_v48 = vmul.f32 0.5, %v1452_v47 }
 0x694   : > { %v1454_v49 = vsub.f32 1.5, %v1453_v48 }
 0x696   : > { %v1455_v50 = vmul.f32 %v2584_v45, %v1454_v49 }
 0x698   : > { %v1459_v13 = vsel %vm1458_vm12, %v2584_v45, %v1455_v50 }
 0x699   : > { %v1460_v54 = vmul.f32 %v1459_v13, %v1443_v33 }
 0x69b   : > { %v1465_v55 = vmul.f32 %v2554_v51, %v1460_v54 }
 0x69d   : > { %v3327_v56 = vadd.f32 %v2555_v53, %v1465_v55 }
 0x69f   : > { %v1472_v57 = vpack.c.bf16 %v3327_v56, %v3327_v56 }
 0x6a1   : > { %2355 = vmatmul.msk.bf16.vlgmr.msra.gmra.mxu2 %vm1022_vm0, %v1472_v57 }
 0x724   : > { %v1505_v2 = vpop.f32.mrf.mxu2 }
 0x725   : > { %v1506_v3 = vadd.f32 %v2557_v0, %v1505_v2 }
 0x727   : > { %v1546_v5 = vpack.c.bf16 %v1506_v3, %v1506_v3 }
 0x729   : > { %1703 = vrot.lane.b32.xlu0 %v1546_v5, %s3615_s1  ;;  %1622 = vrot.lane.b32.xlu2 %v1546_v5, %s3614_s0 }
 0x72a   : > { %2365 = vmatmul.msk.bf16.vlgmr.msrb.gmra.mxu0 %vm1074_vm1, %v1546_v5 }
 0x72c   : > { %v1507_v6 = vpop.f32.mrf.mxu2 }
 0x731   : > { %1786 = vrot.lane.b32.xlu2 %v3335_v61, %s3616_s6 }
 0x739   : > { %1784 = vrot.lane.b32.xlu2 %v1546_v5, %s3616_s6  ;;  %s3622_s6 = smov 8  }
 0x741   : > { %1705 = vrot.lane.b32.xlu2 %v3335_v61, %s3615_s1  ;;  %s3620_s1 = smov 72  }
 0x783   : > { %v1623_v9 = vpop.permute.xlu2 %1622 }
 0x784   : > { %2367 = vmatmul.msk.bf16.vlgmr.msrb.gmra.mxu2 %vm1074_vm1, %v1623_v9 }
 0x78b   : > { %v1787_v10 = vpop.permute.xlu2 %1786 }
 0x78c   : > { %v1792_v11 = vsel %vm1074_vm1, %v1787_v10, 0 }
 0x78d   : > { %1801 = vmatpush.bf16.xpose.msra.mxu2 %v1792_v11 }
 0x793   : > { %v1785_v12 = vpop.permute.xlu2 %1784 }
 0x794   : > { %2371 = vmatmul.msk.bf16.vlgmr.msra.gmra.mxu2 %vm1074_vm1, %v1785_v12 }
 0x79b   : > { %v1706_v14 = vpop.permute.xlu2 %1705  ;;  %v1704_v18 = vpop.permute.xlu0 %1703 }
 0x79c   : > { %v1711_v15 = vsel %vm1074_vm1, %v1706_v14, 0 }
 0x79d   : > { %1720 = vmatpush.bf16.xpose.msra.mxu0 %v1711_v15 }
 0x7a4   : > { %2369 = vmatmul.msk.bf16.vlgmr.msra.gmra.mxu0 %vm1074_vm1, %v1704_v18 }
 0x7a7   : > { %v1563_v20 = vpop.f32.mrf.mxu0 }
 0x7a8   : > { %v1567_v21 = vmul.f32 0.35355338, %v1563_v20 }
 0x7aa   : > { %v1571_v22 = vadd.f32 %v1569_v19, %v1567_v21 }
 0x7ac   : > { %v1572_v23 = vsel %vm1074_vm1, %v1571_v22, -inf }
 0x7ad   : > { %1573 = vmax.xlane.f32.xlu2 %v1572_v23 }
 0x7af   : > { %v1565_v24 = vpop.f32.mrf.mxu0 }
 0x807   : > { %v1641_v25 = vpop.f32.mrf.mxu2 }
 0x808   : > { %v1645_v34 = vmul.f32 0.35355338, %v1641_v25 }
 0x80a   : > { %v1646_v39 = vadd.f32 %v1645_v34, %v1569_v19 }
 0x80c   : > { %v1647_v40 = vsel %vm1074_vm1, %v1646_v39, -inf }
 0x80f   : > { %v1643_v26 = vpop.f32.mrf.mxu2 }
 0x817   : > { %v1803_v27 = vpop.f32.mrf.mxu2 }
 0x818   : > { %v1807_v42 = vmul.f32 0.35355338, %v1803_v27 }
 0x81a   : > { %v1808_v44 = vadd.f32 %v1807_v42, %v1569_v19 }
 0x81c   : > { %v1809_v45 = vsel %vm1074_vm1, %v1808_v44, -inf }
 0x81f   : > { %v1805_v28 = vpop.f32.mrf.mxu2 }
 0x820   : > { %v1574_v31 = vpop.xlane.xlu2 %1573 }
 0x821   : > { %v1722_v29 = vpop.f32.mrf.mxu0  ;;  %v1575_v4 = vsub.f32 %v1571_v22, %v1574_v31 }
 0x822   : > { %v1726_v32 = vmul.f32 0.35355338, %v1722_v29 }
 0x823   : > { %v1576_v37 = vmul.f32 1.442695, %v1575_v4 }
 0x824   : > { %v1727_v33 = vadd.f32 %v1726_v32, %v1569_v19 }
 0x825   : > { %2585 = vpow2.f32 %v1576_v37 }
 0x826   : > { %v1728_v35 = vsel %vm1074_vm1, %v1727_v33, -inf }
 0x827   : > { %1729 = vmax.xlane.f32.xlu1 %v1728_v35 }
 0x829   : > { %v1724_v38 = vpop.f32.mrf.mxu0 }
 0x82b   : > { %v2586_v41 = vpop.eup %2585 }
 0x82c   : > { %v1578_v43 = vsel %vm1074_vm1, %v2586_v41, 0.0 }
 0x82f   : > { %1648 = vmax.xlane.f32.xlu1 %v1647_v40 }
 0x837   : > { %1579 = vadd.xlane.f32.xlu1 %v1578_v43 }
 0x83f   : > { %1810 = vmax.xlane.f32.xlu1 %v1809_v45 }
 0x858   : > { %1677 = vrot.lane.b32.xlu1 %v3335_v61, %s3618_s7 }
 0x89a   : > { %v1730_v46 = vpop.xlane.xlu1 %1729 }
 0x89b   : > { %v1731_v47 = vsub.f32 %v1727_v33, %v1730_v46 }
 0x89d   : > { %v1732_v48 = vmul.f32 1.442695, %v1731_v47 }
 0x89f   : > { %2587 = vpow2.f32 %v1732_v48 }
 0x8a2   : > { %v1649_v49 = vpop.xlane.xlu1 %1648 }
 0x8a3   : > { %v1650_v50 = vsub.f32 %v1646_v39, %v1649_v49 }
 0x8a5   : > { %v3369_v51 = vpop.eup %2587  ;;  %v1651_v13 = vmul.f32 1.442695, %v1650_v50 }
 0x8a6   : > { %v1734_v53 = vsel %vm1074_vm1, %v3369_v51, 0.0 }
 0x8a7   : > { %2589 = vpow2.f32 %v1651_v13  ;;  %1735 = vadd.xlane.f32.xlu2 %v1734_v53 }
 0x8aa   : > { %v1580_v54 = vpop.xlane.xlu1 %1579 }
 0x8ab   : > { %2591 = vrcp.f32 %v1580_v54  ;;  %v1592_v0 = vand.u32 2147483648, %v1580_v54  ;;  %v1590_v5 = vand.u32 2147483647, %v1580_v54  ;;  %vm1586_vm14 = vweird.f32 %v1580_v54 }
 0x8ad   : > { %v2590_v55 = vpop.eup %2589  ;;  %v1593_v7 = vor.u32 1.1754944e-38, %v1592_v0  ;;  %vm1591_vm3 = vcmp.eq.f32.partialorder %v1590_v5, 8.507059e+37 }
 0x8ae   : > { %v1653_v57 = vsel %vm1074_vm1, %v2590_v55, 0.0 }
 0x8af   : > { %1654 = vadd.xlane.f32.xlu0 %v1653_v57 }
 0x8b1   : > { %v2592_v58 = vpop.eup %2591 }
 0x8b2   : > { %v1582_v59 = vmul.f32 %v2592_v58, %v1580_v54  ;;  %v1811_v60 = vpop.xlane.xlu1 %1810  ;;  %vm1587_vm13 = vweird.f32 %v2592_v58 }
 0x8b3   : > { %v1812_v62 = vsub.f32 %v1808_v44, %v1811_v60  ;;  %vm1588_vm15 = vmor %vm1586_vm14, %vm1587_vm13 }
 0x8b4   : > { %v1583_v63 = vsub.f32 1.0, %v1582_v59 }
 0x8b5   : > { %v1813_v2 = vmul.f32 1.442695, %v1812_v62 }
 0x8b6   : > { %v1584_v3 = vmul.f32 %v2592_v58, %v1583_v63 }
 0x8b7   : > { %2593 = vpow2.f32 %v1813_v2 }
 0x8b8   : > { %v1585_v6 = vadd.f32 %v2592_v58, %v1584_v3 }
 0x8ba   : > { %v1589_v8 = vsel %vm1588_vm15, %v2592_v58, %v1585_v6 }
 0x8bb   : > { %v1594_v9 = vsel %vm1591_vm3, %v1593_v7, %v1589_v8 }
 0x8bc   : > { %v1595_v10 = vmul.f32 %v2586_v41, %v1594_v9 }
 0x8bd   : > { %v3380_v11 = vpop.eup %2593 }
 0x8be   : > { %v1815_v12 = vsel %vm1074_vm1, %v3380_v11, 0.0  ;;  %1596 = vst.msk [vmem:[%s3378_s29] sm:$0xff] %vm1074_vm1, %v1595_v10  ;;  %v1597_v20 = vpack.c.bf16 %v1595_v10, %v1595_v10  ;;  %v2423_v10 = vld [vmem:[%s3529_s16 + $0x8] sm:$0xff] }
 0x8bf   : > { %1599 = vrot.lane.b32.xlu2 %v3335_v61, %s3619_s2  ;;  %1816 = vadd.xlane.f32.xlu1 %v1815_v12 }
 0x8c0   : > { %1896 = vmatpush.bf16.msrb.mxu0 %v2423_v10 }
 0x8c3   : > { %1839 = vrot.lane.b32.xlu0 %v3335_v61, %s3620_s1 }
 0x8ca   : > { %v1678_v14 = vpop.permute.xlu1 %1677 }
 0x8cb   : > { %v1683_v15 = vsel %vm1128_vm2, %v1678_v14, 0 }
 0x8cc   : > { %1692 = vmatpush.bf16.msra.mxu3 %v1683_v15 }
 0x8d8   : > { %1758 = vrot.lane.b32.xlu1 %v3335_v61, %s3621_s12  ;;  %s2409_s12 = sshll.u32 %s3079_s3, 3 }
 0x8d9   : > { %s2081_s30 = scalar_lea.hbm %s3539_s26, %s2409_s12 }
 0x8da   : > { %s2085_s0 = sshll.u32 %s2081_s30, 4  ;;  %s2086_s0 = int_to_ptr.hbm [resolvable:$true] %s2085_s0 }
 0x8db   : > { %s2829_s2 = sshra.s32 %s2086_s0, 4  ;;  %s2830_s2 = int_to_ptr.hbm [resolvable:$true] %s2829_s2 }
 0x8dc   : > { %s2831_s1 = scalar_lea.hbm %s2830_s2, 8  ;;  %p2836_p3 = scmp.lt.s32.totalorder %s2830_s2, %s3539_s26 }
 0x8dd   : > { %p2832_p0 = scmp.ne.s32.totalorder %s2830_s2, %s2831_s1 }
 0x8df   : > { %p2833_p1 = pnand %p2832_p0, %p3096_p5 }
 0x8e1   : > { %p2834_p2 = pneg %p2833_p1 }
 0x91a   : > { %v1736_v16 = vpop.xlane.xlu2 %1735 }
 0x91b   : > { %v1748_v47 = vand.u32 2147483648, %v1736_v16  ;;  %vm1742_vm14 = vweird.f32 %v1736_v16  ;;  %v1746_v49 = vand.u32 2147483647, %v1736_v16 }
 0x922   : > { %v1600_v17 = vpop.permute.xlu2 %1599  ;;  %v1655_v18 = vpop.xlane.xlu0 %1654 }
 0x923   : > { %v1605_v19 = vsel %vm1128_vm2, %v1600_v17, 0  ;;  %2595 = vrcp.f32 %v1655_v18  ;;  %v1667_v24 = vand.u32 2147483648, %v1655_v18  ;;  %v1665_v26 = vand.u32 2147483647, %v1655_v18 }
 0x924   : > { %1614 = vmatpush.bf16.msrb.mxu1 %v1605_v19  ;;  %2597 = vrcp.f32 %v1736_v16  ;;  %vm1661_vm5 = vweird.f32 %v1655_v18 }
 0x925   : > { %v1668_v28 = vor.u32 1.1754944e-38, %v1667_v24  ;;  %vm1666_vm10 = vcmp.eq.f32.partialorder %v1665_v26, 8.507059e+37 }
 0x927   : > { %2366 = vmatmul.msk.bf16.vlgmr.msrb.gmra.mxu1 %vm1074_vm1, %v1597_v20 }
 0x929   : > { %v2596_v21 = vpop.eup %2595 }
 0x92a   : > { %v1657_v22 = vmul.f32 %v2596_v21, %v1655_v18  ;;  %vm1662_vm4 = vweird.f32 %v2596_v21  ;;  %v2598_v27 = vpop.eup %2597  ;;  %v2558_v18 = vld [vmem:[#allocation3] ss:$0 sm:$0xff] }
 0x92b   : > { %vm1663_vm9 = vmor %vm1661_vm5, %vm1662_vm4  ;;  %v1738_v32 = vmul.f32 %v2598_v27, %v1736_v16  ;;  %vm1743_vm12 = vweird.f32 %v2598_v27  ;;  %vm1747_vm5 = vcmp.eq.f32.partialorder %v1746_v49, 8.507059e+37  ;;  %v2426_v49 = vld [vmem:[%s3535_s22] sm:$0xff] }
 0x92c   : > { %v1658_v23 = vsub.f32 1.0, %v1657_v22  ;;  %vm1744_vm3 = vmor %vm1742_vm14, %vm1743_vm12 }
 0x92d   : > { %v1739_v38 = vsub.f32 1.0, %v1738_v32 }
 0x92e   : > { %v1659_v25 = vmul.f32 %v2596_v21, %v1658_v23 }
 0x92f   : > { %v1740_v41 = vmul.f32 %v2598_v27, %v1739_v38 }
 0x930   : > { %v1660_v61 = vadd.f32 %v2596_v21, %v1659_v25 }
 0x931   : > { %v1741_v46 = vadd.f32 %v2598_v27, %v1740_v41  ;;  %v2559_v41 = vld [vmem:[#allocation6] ss:$0 sm:$0xff] }
 0x932   : > { %v1664_v29 = vsel %vm1663_vm9, %v2596_v21, %v1660_v61  ;;  %v1817_v31 = vpop.xlane.xlu1 %1816 }
 0x933   : > { %v1669_v33 = vsel %vm1666_vm10, %v1668_v28, %v1664_v29  ;;  %2599 = vrcp.f32 %v1817_v31  ;;  %v1829_v43 = vand.u32 2147483648, %v1817_v31  ;;  %v1827_v45 = vand.u32 2147483647, %v1817_v31  ;;  %v2429_v28 = vld [vmem:[%s3535_s22 + $0x18] sm:$0xff] }
 0x934   : > { %v3395_v4 = vmul.f32 %v2590_v55, %v1669_v33  ;;  %vm1823_vm13 = vweird.f32 %v1817_v31  ;;  %v1745_v53 = vsel %vm1744_vm3, %v2598_v27, %v1741_v46  ;;  %v1749_v55 = vor.u32 1.1754944e-38, %v1748_v47  ;;  %2019 = vmatpush.bf16.msrb.mxu2 %v2429_v28 }
 0x935   : > { %v1840_v34 = vpop.permute.xlu0 %1839  ;;  %v1830_v50 = vor.u32 1.1754944e-38, %v1829_v43  ;;  %vm1828_vm4 = vcmp.eq.f32.partialorder %v1827_v45, 8.507059e+37  ;;  %v2560_v43 = vld [vmem:[#allocation8] ss:$0 sm:$0xff] }
 0x936   : > { %v1845_v35 = vsel %vm1128_vm2, %v1840_v34, 0  ;;  %v1676_v37 = vpack.c.bf16 %v3395_v4, %v3395_v4  ;;  %v1750_v58 = vsel %vm1747_vm5, %v1749_v55, %v1745_v53 }
 0x937   : > { %1854 = vmatpush.bf16.msrb.mxu3 %v1845_v35  ;;  %v3408_v60 = vmul.f32 %v3369_v51, %v1750_v58 }
 0x938   : > { %2368 = vmatmul.msk.bf16.vlgmr.msra.gmra.mxu3 %vm1074_vm1, %v1676_v37 }
 0x939   : > { %v2600_v39 = vpop.eup %2599  ;;  %v1757_v0 = vpack.c.bf16 %v3408_v60, %v3408_v60 }
 0x93a   : > { %v1819_v40 = vmul.f32 %v2600_v39, %v1817_v31  ;;  %vm1824_vm11 = vweird.f32 %v2600_v39  ;;  %v2428_v31 = vld [vmem:[%s3535_s22 + $0x10] sm:$0xff] }
 0x93b   : > { %vm1825_vm15 = vmor %vm1823_vm13, %vm1824_vm11  ;;  %2020 = vmatpush.bf16.msrb.mxu2 %v2428_v31 }
 0x93c   : > { %v1820_v42 = vsub.f32 1.0, %v1819_v40 }
 0x93e   : > { %v1821_v44 = vmul.f32 %v2600_v39, %v1820_v42 }
 0x940   : > { %v1822_v48 = vadd.f32 %v2600_v39, %v1821_v44 }
 0x942   : > { %v1826_v13 = vsel %vm1825_vm15, %v2600_v39, %v1822_v48  ;;  %v2427_v48 = vld [vmem:[%s3535_s22 + $0x8] sm:$0xff] }
 0x943   : > { %v1831_v54 = vsel %vm1828_vm4, %v1830_v50, %v1826_v13  ;;  %2021 = vmatpush.bf16.msrb.mxu2 %v2427_v48  ;;  %v2561_v50 = vld [vmem:[#allocation9] ss:$0 sm:$0xff] }
 0x944   : > { %v3402_v57 = vmul.f32 %v3380_v11, %v1831_v54  ;;  %v2422_v11 = vld [vmem:[%s3529_s16] sm:$0xff] }
 0x945   : > { %1897 = vmatpush.bf16.msrb.mxu0 %v2422_v11 }
 0x946   : > { %v1838_v59 = vpack.c.bf16 %v3402_v57, %v3402_v57 }
 0x947   : > { %2022 = vmatpush.bf16.msrb.mxu2 %v2426_v49 }
 0x948   : > { %2372 = vmatmul.msk.bf16.vlgmr.msrb.gmra.mxu3 %vm1074_vm1, %v1838_v59  ;;  %v2562_v59 = vld [vmem:[#allocation11] ss:$0 sm:$0xff] }
 0x94a   : > { %v1759_v62 = vpop.permute.xlu1 %1758 }
 0x94b   : > { %v1764_v63 = vsel %vm1128_vm2, %v1759_v62, 0 }
 0x94c   : > { %1773 = vmatpush.bf16.msra.mxu1 %v1764_v63 }
 0x94f   : > { %2370 = vmatmul.msk.bf16.vlgmr.msra.gmra.mxu1 %vm1074_vm1, %v1757_v0 }
 0x9a4   : > { %v1616_v2 = vpop.f32.mrf.mxu1 }
 0x9a5   : > { %1620 = vst.msk [vmem:[#allocation2] sm:$0xff] %vm1074_vm1, %v1616_v2 }
 0x9ac   : > { %v1618_v3 = vpop.f32.mrf.mxu1 }
 0x9bb   : > { %v1694_v5 = vpop.f32.mrf.mxu3 }
 0x9bc   : > { %1699 = vrot.lane.b32.xlu1 %v1694_v5, %s3622_s6 }
 0x9c3   : > { %v1696_v6 = vpop.f32.mrf.mxu3 }
 0x9cb   : > { %v1856_v7 = vpop.f32.mrf.mxu3 }
 0x9cc   : > { %1861 = vrot.lane.b32.xlu0 %v1856_v7, %s3623_s8  ;;  %v1775_v51 = vpop.f32.mrf.mxu1 }
 0x9cd   : > { %1780 = vrot.lane.b32.xlu2 %v1775_v51, %s3624_s11 }
 0x9d3   : > { %v1858_v8 = vpop.f32.mrf.mxu3 }
 0x9d4   : > { %v1777_v9 = vpop.f32.mrf.mxu1 }
 0xa27   : > { %v1781_v14 = vpop.permute.xlu2 %1780 }
 0xa2e   : > { %v1700_v12 = vpop.permute.xlu1 %1699 }
 0xa2f   : > { %1702 = vst.msk [vmem:[#allocation2] sm:$0xff] %vm1200_vm6, %v1700_v12 }
 0xa30   : > { %1783 = vst.msk [vmem:[#allocation2] sm:$0xff] %vm1282_vm7, %v1781_v14 }
 0xa3e   : > { %v1862_v15 = vpop.permute.xlu0 %1861 }
 0xa3f   : > { %1864 = vst.msk [vmem:[#allocation2] sm:$0xff] %vm1364_vm8, %v1862_v15 }
 0xa46   : > { %v1865_v16 = vld [vmem:[#allocation2] sm:$0xff] }
 0xa47   : > { %v1866_v17 = vpack.c.bf16 %v1865_v16, %v1865_v16 }
 0xa49   : > { %2381 = vmatmul.msk.bf16.vlgmr.msrb.gmra.mxu0 %vm1022_vm0, %v1866_v17 }
 0xac6   : > { %v1899_v19 = vpop.f32.mrf.mxu0 }
 0xac7   : > { %v1900_v20 = vadd.f32 %v2558_v18, %v1899_v19 }
 0xac9   : > { %v1903_v21 = vadd.f32 %v1900_v20, %v3327_v56  ;;  %v2425_v56 = vld [vmem:[%s3533_s20 + $0x8] sm:$0xff]  ;;  %v2563_v20 = vld [vmem:[#allocation12] ss:$0 sm:$0xff] }
 0xaca   : > { %1966 = vmatpush.bf16.msrb.mxu1 %v2425_v56 }
 0xacb   : > { %v1904_v22 = vsel %vm1022_vm0, %v1903_v21, 0.0 }
 0xacc   : > { %1905 = vadd.xlane.f32.xlu1 %v1904_v22 }
 0xace   : > { %v1901_v23 = vpop.f32.mrf.mxu0 }
 0xae5   : > { %1361 = vrot.lane.b32.xlu1 %v3276_v1, %s3623_s8  ;;  %v2424_v1 = vld [vmem:[%s3533_s20] sm:$0xff] }
 0xae6   : > { %1967 = vmatpush.bf16.msrb.mxu1 %v2424_v1 }
 0xb3f   : > { %v1906_v24 = vpop.xlane.xlu1 %1905 }
 0xb40   : > { %v1907_v25 = vmul.f32 %v1906_v24, %v3299_v30 }
 0xb42   : > { %v1908_v26 = vsub.f32 %v1903_v21, %v1907_v25  ;;  %v2564_v21 = vld [vmem:[#allocation14] ss:$0 sm:$0xff] }
 0xb44   : > { %v1909_v27 = vmul.f32 %v1908_v26, %v1908_v26 }
 0xb46   : > { %v1910_v61 = vsel %vm1022_vm0, %v1909_v27, 0.0 }
 0xb47   : > { %1911 = vadd.xlane.f32.xlu2 %v1910_v61 }
 0xb57   : > { %v1362_v10 = vpop.permute.xlu1 %1361 }
 0xb5f   : > { %1197 = vrot.lane.b32.xlu2 %v3270_v52, %s3622_s6 }
 0xb67   : > { %1672 = vrot.lane.b32.xlu2 %v3395_v4, %s3622_s6 }
 0xbba   : > { %v1912_v29 = vpop.xlane.xlu2 %1911 }
 0xbbb   : > { %v1913_v52 = vmul.f32 %v1912_v29, %v3299_v30 }
 0xbbd   : > { %v1914_v32 = vadd.f32 1e-06, %v1913_v52 }
 0xbbf   : > { %2601 = vrsqrt.f32 %v1914_v32  ;;  %vm1921_vm2 = vweird.f32 %v1914_v32 }
 0xbc2   : > { %v1198_v33 = vpop.permute.xlu2 %1197 }
 0xbc3   : > { %1201 = vst.msk [vmem:[%s3241_s17] sm:$0xff] %vm1200_vm6, %v1198_v33 }
 0xbc5   : > { %v2602_v4 = vpop.eup %2601 }
 0xbc6   : > { %v1916_v34 = vmul.f32 %v2602_v4, %v1914_v32  ;;  %vm1922_vm1 = vweird.f32 %v2602_v4 }
 0xbc7   : > { %vm1923_vm9 = vmor %vm1921_vm2, %vm1922_vm1 }
 0xbc8   : > { %v1917_v35 = vmul.f32 %v2602_v4, %v1916_v34 }
 0xbca   : > { %v1918_v37 = vmul.f32 0.5, %v1917_v35  ;;  %v1673_v38 = vpop.permute.xlu2 %1672 }
 0xbcb   : > { %1675 = vst.msk [vmem:[%s3378_s29] sm:$0xff] %vm1200_vm6, %v1673_v38  ;;  %vm2011_vm6 = vcmask 523264  }
 0xbcc   : > { %v1919_v39 = vsub.f32 1.5, %v1918_v37 }
 0xbce   : > { %v1920_v40 = vmul.f32 %v2602_v4, %v1919_v39 }
 0xbd0   : > { %v1924_v42 = vsel %vm1923_vm9, %v2602_v4, %v1920_v40 }
 0xbd1   : > { %v1925_v44 = vmul.f32 %v1924_v42, %v1908_v26 }
 0xbd3   : > { %v1930_v45 = vmul.f32 %v2559_v41, %v1925_v44 }
 0xbd5   : > { %v1935_v46 = vadd.f32 %v2560_v43, %v1930_v45 }
 0xbd7   : > { %v1936_v47 = vpack.c.bf16 %v1935_v46, %v1935_v46 }
 0xbd9   : > { %2390 = vmatmul.msk.bf16.vlgmr.msrb.gmra.mxu1 %vm1022_vm0, %v1936_v47 }
 0xc56   : > { %v1969_v13 = vpop.f32.mrf.mxu1 }
 0xc57   : > { %v1970_v53 = vadd.f32 %v2561_v50, %v1969_v13 }
 0xc59   : > { %v1973_v54 = vmax.f32 %v1970_v53, 0.0 }
 0xc5b   : > { %v1974_v55 = vpack.c.bf16 %v1973_v54, %v1973_v54 }
 0xc5d   : > { %2407 = vmatmul.msk.bf16.vlgmr.msrb.gmra.mxu2 %vm2011_vm6, %v1974_v55 }
 0xc5e   : > { %v1971_v58 = vpop.f32.mrf.mxu1 }
 0xce0   : > { %v2024_v62 = vpop.f32.mrf.mxu2 }
 0xce1   : > { %v2025_v63 = vadd.f32 %v2562_v59, %v2024_v62 }
 0xce3   : > { %v2028_v0 = vadd.f32 %v2025_v63, %v1935_v46 }
 0xce5   : > { %v2029_v2 = vsel %vm1022_vm0, %v2028_v0, 0.0 }
 0xce6   : > { %2030 = vadd.xlane.f32.xlu0 %v2029_v2 }
 0xce8   : > { %v2026_v3 = vpop.f32.mrf.mxu2 }
 0xcfa   : > { %1279 = vrot.lane.b32.xlu0 %v3262_v36, %s3624_s11 }
 0xd02   : > { %1753 = vrot.lane.b32.xlu0 %v3408_v60, %s3624_s11  ;;  %s961_s11 = sand.u32 1, %s2885_s5  }
 0xd03   : > { %s2063_s3 = scalar_lea.sflag [#allocation5], %s961_s11 }
 0xd59   : > { %v2031_v5 = vpop.xlane.xlu0 %2030 }
 0xd5a   : > { %v2032_v6 = vmul.f32 %v2031_v5, %v3299_v30 }
 0xd5c   : > { %v2033_v7 = vsub.f32 %v2028_v0, %v2032_v6 }
 0xd5e   : > { %v2034_v51 = vmul.f32 %v2033_v7, %v2033_v7 }
 0xd60   : > { %v2035_v8 = vsel %vm1022_vm0, %v2034_v51, 0.0 }
 0xd61   : > { %2036 = vadd.xlane.f32.xlu1 %v2035_v8 }
 0xd6c   : > { %v1280_v9 = vpop.permute.xlu0 %1279 }
 0xd6d   : > { %1283 = vst.msk [vmem:[%s3241_s17] sm:$0xff] %vm1282_vm7, %v1280_v9 }
 0xd6e   : > { %1365 = vst.msk [vmem:[%s3241_s17] sm:$0xff] %vm1364_vm8, %v1362_v10  ;;  %s2307_s17 = sshll.u32 %s961_s11, 3 }
 0xd6f   : > { %s963_s7 = scalar_lea.vmem [#allocation15], %s2307_s17 }
 0xd70   : > { %s2083_s9 = sshll.u32 %s963_s7, 4  ;;  %s2084_s9 = int_to_ptr.vmem [resolvable:$true] %s2083_s9 }
 0xd74   : > { %v1754_v36 = vpop.permute.xlu0 %1753 }
 0xd75   : > { %1756 = vst.msk [vmem:[%s3378_s29] sm:$0xff] %vm1282_vm7, %v1754_v36 }
 0xd7a   : > { %1834 = vrot.lane.b32.xlu1 %v3402_v57, %s3623_s8  ;;  %s2835_s8 = scalar_lea.hbm %s3539_s26, 16 }
 0xd7b   : > { %p2837_p4 = scmp.lt.s32.totalorder %s2835_s8, %s2831_s1 }
 0xd7d   : > { %p2838_p7 = por %p2837_p4, %p2836_p3 }
 0xd7f   : > { %p2839_p8 = pnand %p2838_p7, %p2834_p2 }
 0xdd4   : > { %v2037_v60 = vpop.xlane.xlu1 %2036 }
 0xdd5   : > { %v2038_v11 = vmul.f32 %v2037_v60, %v3299_v30 }
 0xdd7   : > { %v2039_v12 = vadd.f32 1e-06, %v2038_v11 }
 0xdd9   : > { %2603 = vrsqrt.f32 %v2039_v12  ;;  %vm2046_vm7 = vweird.f32 %v2039_v12 }
 0xddf   : > { %v2604_v14 = vpop.eup %2603 }
 0xde0   : > { %v2041_v15 = vmul.f32 %v2604_v14, %v2039_v12  ;;  %vm2047_vm10 = vweird.f32 %v2604_v14 }
 0xde1   : > { %vm2048_vm11 = vmor %vm2046_vm7, %vm2047_vm10 }
 0xde2   : > { %v2042_v16 = vmul.f32 %v2604_v14, %v2041_v15 }
 0xde4   : > { %v2043_v17 = vmul.f32 0.5, %v2042_v16 }
 0xde6   : > { %v2044_v18 = vsub.f32 1.5, %v2043_v17 }
 0xde8   : > { %v2045_v19 = vmul.f32 %v2604_v14, %v2044_v18 }
 0xdea   : > { %v2049_v30 = vsel %vm2048_vm11, %v2604_v14, %v2045_v19 }
 0xdeb   : > { %v2050_v57 = vmul.f32 %v2049_v30, %v2033_v7 }
 0xdec   : > { %v1835_v22 = vpop.permute.xlu1 %1834 }
 0xded   : > { %v2055_v23 = vmul.f32 %v2563_v20, %v2050_v57  ;;  %1837 = vst.msk [vmem:[%s3378_s29] sm:$0xff] %vm1364_vm8, %v1835_v22 }
 0xdef   : > { %v2060_v24 = vadd.f32 %v2564_v21, %v2055_v23 }
 0xdf1   : > { %2061 = vst.msk [vmem:[%s963_s7] sm:$0xff] %vm1022_vm0, %v2060_v24 }
 0xdf2   : > { %2842 = shalt.err (!%p2839_p8)
}
 0xdf3   : > { %2458 = dma.vmem_to_hbm [thread:$0]  (%p3096_p5), %s2084_s9, 128, %s2086_s0, %s2063_s3  }
 0xdf4 PF: > { %s3626_s29 = sld [smem:[#allocation23_spill]] }
 0xdf5   : > { %s3627_s11 = sld [smem:[#allocation21_spill]] }
 0xdfa   : > { %p2500_p9 = scmp.ge.s32.totalorder %s3626_s29, 2 }
 0xdfb   : > { %s2103_s4 = sand.u32 1, %s3627_s11  }
 0xdfc   : > { %p2483_p10 = pnand %p2500_p9, %p3100_p6  ;;  %s2104_s12 = scalar_lea.sflag [#allocation5], %s2103_s4 }
 0xdfe   : > { %p2484_p11 = pneg %p2483_p10 }
 0xe00   : > { %2876 = dma.done.wait (%p2484_p11), %s2104_s12, 128  }
 0xe01   : > { %2878 = vsyncadd (%p2484_p11), %s2104_s12, 4294967168  ;;  %s3629_s30 = sld [smem:[#allocation24_spill]]  ;;  %s3632_s8 = smov %s2885_s5 }
 0xe02   : > { %s3630_s2 = sld [smem:[#allocation22_spill]] }
 0xe03   : > { %s3631_s9 = sld [smem:[#allocation25_spill]] }
 0xe07   : > { %p43_p12 = scmp.ge.s32.totalorder %s3629_s30, 4  }
 0xe08   : > { %s3633_s5 = smov %s3630_s2 }
 0xe09   :  { %45 = sbr.rel (!%p43_p12) target bundleno = 24 (0x18), region = 218 }
 0xe0e   :  { %2124 = vsyncpa [#allocation4], 1 }
 0xe0f   :  { %2126 = vsyncpa [#allocation4 + $0x1], 1 }
 0xe10   :  { %2127 = vsyncpa [#allocation7], 1 }
 0xe11   :  { %2128 = vsyncpa [#allocation10], 1 }
 0xe12   :  { %2129 = vsyncpa [#allocation13], 1 }
 0xe13   :  { %2130 = vsyncpa [#allocation5], 1 }
 0xe14   :  { %2132 = vsyncpa [#allocation5 + $0x1], 1 }

// kernel: decoder_forward.2
= control target key start
LH: loop header
LB: loop body
LE: loop exit
PB: predicated region body
PF: predicated region fallthrough
CT: control target
= control target key end

     0   :  { %s2802_s0 = inlined_call_operand.vmem [shape: f32[2,8,32], index: 0, kind: input, shape index: {}]   ;;  %s2803_s1 = inlined_call_operand.vmem [shape: f32[2,8,32], index: 1, kind: input, shape index: {}]   ;;  %s2804_s2 = inlined_call_operand.vmem [shape: f32[1,8,8], index: 2, kind: input, shape index: {}]   ;;  %s2805_s3 = inlined_call_operand.vmem [shape: f32[2,1,8], index: 3, kind: input, shape index: {}]   ;;  %s2806_s4 = inlined_call_operand.vmem [shape: bf16[32,32], index: 4, kind: input, shape index: {}]   ;;  %s2807_s5 = inlined_call_operand.vmem [shape: f32[1,32], index: 5, kind: input, shape index: {}]   ;;  %s2808_s6 = inlined_call_operand.vmem [shape: bf16[32,64], index: 6, kind: input, shape index: {}]   ;;  %s2809_s7 = inlined_call_operand.vmem [shape: f32[1,64], index: 7, kind: input, shape index: {}]   ;;  %s2810_s8 = inlined_call_operand.vmem [shape: bf16[32,32], index: 8, kind: input, shape index: {}]   ;;  %s2811_s9 = inlined_call_operand.vmem [shape: f32[1,32], index: 9, kind: input, shape index: {}]   ;;  %s2812_s10 = inlined_call_operand.vmem [shape: f32[1,32], index: 10, kind: input, shape index: {}]   ;;  %s2813_s11 = inlined_call_operand.vmem [shape: f32[1,32], index: 11, kind: input, shape index: {}]   ;;  %s2814_s12 = inlined_call_operand.vmem [shape: bf16[32,32], index: 12, kind: input, shape index: {}]   ;;  %s2815_s13 = inlined_call_operand.vmem [shape: f32[1,32], index: 13, kind: input, shape index: {}]   ;;  %s2816_s14 = inlined_call_operand.vmem [shape: bf16[32,64], index: 14, kind: input, shape index: {}]   ;;  %s2817_s15 = inlined_call_operand.vmem [shape: f32[1,64], index: 15, kind: input, shape index: {}]   ;;  %s2818_s16 = inlined_call_operand.vmem [shape: bf16[32,32], index: 16, kind: input, shape index: {}]   ;;  %s2819_s17 = inlined_call_operand.vmem [shape: f32[1,32], index: 17, kind: input, shape index: {}]   ;;  %s2820_s18 = inlined_call_operand.vmem [shape: f32[1,32], index: 18, kind: input, shape index: {}]   ;;  %s2821_s19 = inlined_call_operand.vmem [shape: f32[1,32], index: 19, kind: input, shape index: {}]   ;;  %s2822_s20 = inlined_call_operand.vmem [shape: bf16[32,64], index: 20, kind: input, shape index: {}]   ;;  %s2823_s21 = inlined_call_operand.vmem [shape: f32[1,64], index: 21, kind: input, shape index: {}]   ;;  %s2824_s22 = inlined_call_operand.vmem [shape: bf16[64,32], index: 22, kind: input, shape index: {}]   ;;  %s2825_s23 = inlined_call_operand.vmem [shape: f32[1,32], index: 23, kind: input, shape index: {}]   ;;  %s2826_s24 = inlined_call_operand.vmem [shape: f32[1,32], index: 24, kind: input, shape index: {}]   ;;  %s2827_s25 = inlined_call_operand.vmem [shape: f32[1,32], index: 25, kind: input, shape index: {}]   ;;  %s2828_s26 = inlined_call_operand.vmem [shape: f32[2,8,32], index: 26, kind: output, shape index: {0}]   ;;  %s2829_s27 = inlined_call_operand.vmem [shape: f32[2,8,32], index: 27, kind: output, shape index: {1}]   ;;  %s2830_s28 = inlined_call_operand.vmem [shape: f32[2,8,32], index: 28, kind: output, shape index: {2}]  }
   0x1   :  { %2854 = sst [smem:[#allocation3_spill]] %s2802_s0 }
   0x2   :  { %2855 = sst [smem:[#allocation4_spill]] %s2803_s1 }
   0x3   :  { %2856 = sst [smem:[#allocation5_spill]] %s2804_s2 }
   0x4   :  { %2857 = sst [smem:[#allocation6_spill]] %s2805_s3 }
   0x5   :  { %2858 = sst [smem:[#allocation7_spill]] %s2806_s4 }
   0x6   :  { %2859 = sst [smem:[#allocation8_spill]] %s2807_s5 }
   0x7   :  { %2860 = sst [smem:[#allocation9_spill]] %s2808_s6 }
   0x8   :  { %2861 = sst [smem:[#allocation10_spill]] %s2809_s7 }
   0x9   :  { %2862 = sst [smem:[#allocation11_spill]] %s2810_s8  ;;  %s2459_s8 = smov 0  }
   0xa   :  { %2863 = sst [smem:[#allocation12_spill]] %s2811_s9 }
   0xb   :  { %2864 = sst [smem:[#allocation13_spill]] %s2812_s10 }
   0xc   :  { %2865 = sst [smem:[#allocation14_spill]] %s2813_s11 }
   0xd   :  { %2866 = sst [smem:[#allocation15_spill]] %s2814_s12 }
   0xe LB: > { %s2096_s5 = sadd.s32 4294967295, %s2301_s8   ;;  %p2100_p0 = scmp.ge.s32.totalorder %s2301_s8, 1  ;;  %s2301_s8 = sphi %s2459_s8, %s39_s8  }
   0xf   : > { %p783_p1 = scmp.lt.s32.totalorder %s2301_s8, 3 }
  0x11   : > { %p784_p2 = pnand %p2100_p0, %p783_p1 }
  0x12   : > { %s2867_s3 = sld [smem:[#allocation7_spill]] (!%p784_p2)  ;;  %p870_p3 = scmp.lt.s32.totalorder (!%p784_p2), %s2096_s5, 1 }
  0x13   : > { %787 = sbr.rel (%p784_p2) target bundleno = 3517 (0xdbd), region = 124  ;;  %s2868_s0 = sld [smem:[#allocation9_spill]] (!%p784_p2) }
  0x14   : > { %s2869_s9 = sld [smem:[#allocation3_spill]] (!%p784_p2)  ;;  %s2837_s1 = smov (!%p784_p2), 96  }
  0x15   : > { %s2870_s11 = sld [smem:[#allocation8_spill]] (!%p784_p2)  ;;  %s2849_s4 = smov (!%p784_p2), 120  }
  0x16   : > { %s2871_s7 = sld [smem:[#allocation10_spill]] (!%p784_p2)  ;;  %s2838_s6 = smov (!%p784_p2), 88  }
  0x17   : > { %s2835_s10 = smov (!%p784_p2), 80   ;;  %s2843_s29 = smov (!%p784_p2), 16  }
  0x18   : > { %v2205_v0 = vld [vmem:[%s2867_s3 + $0x8] sm:$0xff]  ;;  %v2204_v2 = vld [vmem:[%s2867_s3] sm:$0xff]  ;;  %s2891_s5 = smov (!%p870_p3, %s2096_s5), 1  ;;  %vm920_vm0 = vcmask 261120   ;;  %vm972_vm1 = vcmask 64512   ;;  %vm1026_vm2 = vcmask 1043456  }
  0x19   : > { %v2207_v1 = vld [vmem:[%s2868_s0 + $0x8] sm:$0xff]  ;;  %930 = vmatpush.bf16.msra.mxu0 %v2205_v0  ;;  %v2206_v3 = vld [vmem:[%s2868_s0] sm:$0xff]  ;;  %s2482_s12 = sshll.u32 %s2891_s5, 3  ;;  %s2847_s2 = smov 8  }
  0x1a   : > { %963 = vmatpush.bf16.msra.mxu1 %v2207_v1  ;;  %s873_s30 = scalar_lea.vmem %s2869_s9, %s2482_s12  ;;  %s2841_s9 = smov 112  }
  0x1b   : > { %v2488_v4 = vld [vmem:[%s873_s30] sm:$0xff]  ;;  %s2839_s30 = smov 104   ;;  %s2880_s0 = smov 112  }
  0x1c   : > { %v899_v5 = vpack.c.bf16 %v2488_v4, %v2488_v4  ;;  %v2241_v6 = vld [vmem:[%s2870_s11] ss:$0 sm:$0xff]  ;;  %s2872_s11 = sld [smem:[#allocation5_spill]]  ;;  %s2884_s3 = smov 96  }
  0x1d   : > { %931 = vmatpush.bf16.msra.mxu0 %v2204_v2  ;;  %v2242_v7 = vld [vmem:[%s2871_s7] ss:$0 sm:$0xff]  ;;  %s2534_s7 = scalar_lea.vmem %s2829_s27, %s2482_s12 }
  0x1e   : > { %964 = vmatpush.bf16.msra.mxu1 %v2206_v3 }
  0x20   : > { %2114 = vmatmul.msk.bf16.vlgmr.msra.gmra.mxu0 %vm920_vm0, %v899_v5 }
  0x21   : > { %2123 = vmatmul.msk.bf16.vlgmr.msra.gmra.mxu1 %vm920_vm0, %v899_v5 }
  0x22   : > { %v895_v25 = vld [vmem:[%s2872_s11] sm:$0xff]  ;;  %s2836_s11 = smov 72  }
  0x23   : > { %v2521_v26 = vmul.f32 -1e+09, %v895_v25 }
  0x9d   : > { %v933_v8 = vpop.f32.mrf.mxu0 }
  0x9e   : > { %v966_v9 = vpop.f32.mrf.mxu1  ;;  %v934_v10 = vadd.f32 %v2241_v6, %v933_v8 }
  0x9f   : > { %v967_v11 = vadd.f32 %v2242_v7, %v966_v9 }
  0xa0   : > { %v970_v12 = vpack.c.bf16 %v934_v10, %v934_v10 }
  0xa1   : > { %v2500_v13 = vpack.c.bf16 %v967_v11, %v967_v11 }
  0xa2   : > { %1045 = vrot.lane.b32.xlu2 %v970_v12, %s2849_s4 }
  0xa3   : > { %1021 = vrot.lane.b32.xlu1 %v2500_v13, %s2837_s1  ;;  %v977_v14 = vsel %vm972_vm1, %v2500_v13, 0  ;;  %s2671_s1 = scalar_lea.vmem %s2830_s28, %s2482_s12 }
  0xa4   : > { %986 = vmatpush.bf16.xpose.msra.mxu2 %v977_v14 }
  0xa5   : > { %v935_v15 = vpop.f32.mrf.mxu0 }
  0xa6   : > { %v968_v16 = vpop.f32.mrf.mxu1 }
  0xaa   : > { %1129 = vrot.lane.b32.xlu2 %v2500_v13, %s2841_s9 }
  0xab   : > { %1047 = vrot.lane.b32.xlu1 %v2500_v13, %s2849_s4  ;;  %2124 = vmatmul.msk.bf16.vlgmr.msra.gmra.mxu2 %vm972_vm1, %v970_v12  ;;  %s2877_s4 = sld [smem:[#allocation13_spill]] }
  0xb2   : > { %1209 = vrot.lane.b32.xlu2 %v970_v12, %s2839_s30 }
  0xb3   : > { %1127 = vrot.lane.b32.xlu1 %v970_v12, %s2841_s9 }
  0xfc   : > { %v1046_v17 = vpop.permute.xlu2 %1045 }
 0x104   : > { %v1130_v18 = vpop.permute.xlu2 %1129 }
 0x105   : > { %v1135_v19 = vsel %vm972_vm1, %v1130_v18, 0 }
 0x106   : > { %1144 = vmatpush.bf16.xpose.msrb.mxu1 %v1135_v19 }
 0x10c   : > { %v1210_v57 = vpop.permute.xlu2 %1209 }
 0x115   : > { %v1022_v20 = vpop.permute.xlu1 %1021 }
 0x116   : > { %v1028_v21 = vsel %vm1026_vm2, %v1022_v20, 0 }
 0x117   : > { %1037 = vmatpush.bf16.msra.mxu3 %v1028_v21 }
 0x11d   : > { %v1048_v22 = vpop.permute.xlu1 %1047 }
 0x11e   : > { %v1053_v23 = vsel %vm972_vm1, %v1048_v22, 0 }
 0x11f   : > { %1062 = vmatpush.bf16.xpose.msrb.mxu3 %v1053_v23 }
 0x125   : > { %v1128_v24 = vpop.permute.xlu1 %1127 }
 0x126   : > { %2128 = vmatmul.msk.bf16.vlgmr.msrb.gmra.mxu1 %vm972_vm1, %v1128_v24 }
 0x12e   : > { %v988_v27 = vpop.f32.mrf.mxu2 }
 0x12f   : > { %v992_v28 = vmul.f32 0.35355338, %v988_v27 }
 0x131   : > { %v993_v29 = vadd.f32 %v992_v28, %v2521_v26 }
 0x133   : > { %v994_v30 = vsel %vm972_vm1, %v993_v29, -inf }
 0x134   : > { %995 = vmax.xlane.f32.xlu0 %v994_v30 }
 0x136   : > { %v990_v31 = vpop.f32.mrf.mxu2 }
 0x1a3   : > { %v1146_v32 = vpop.f32.mrf.mxu1 }
 0x1a4   : > { %v1150_v33 = vmul.f32 0.35355338, %v1146_v32 }
 0x1a6   : > { %v1151_v34 = vadd.f32 %v1150_v33, %v2521_v26 }
 0x1a7   : > { %v996_v35 = vpop.xlane.xlu0 %995 }
 0x1a8   : > { %v1152_v36 = vsel %vm972_vm1, %v1151_v34, -inf  ;;  %v997_v37 = vsub.f32 %v993_v29, %v996_v35 }
 0x1a9   : > { %1153 = vmax.xlane.f32.xlu2 %v1152_v36 }
 0x1aa   : > { %v998_v38 = vmul.f32 1.442695, %v997_v37 }
 0x1ab   : > { %v1148_v39 = vpop.f32.mrf.mxu1 }
 0x1ac   : > { %2255 = vpow2.f32 %v998_v38 }
 0x1b2   : > { %v2256_v40 = vpop.eup %2255 }
 0x1b3   : > { %v1000_v41 = vsel %vm972_vm1, %v2256_v40, 0.0 }
 0x1b4   : > { %1001 = vadd.xlane.f32.xlu0 %v1000_v41 }
 0x1c8   : > { %1211 = vrot.lane.b32.xlu0 %v2500_v13, %s2839_s30  ;;  %s2874_s30 = sld [smem:[#allocation12_spill]] }
 0x21c   : > { %v1154_v60 = vpop.xlane.xlu2 %1153 }
 0x21d   : > { %v1155_v61 = vsub.f32 %v1151_v34, %v1154_v60 }
 0x21f   : > { %v1156_v62 = vmul.f32 1.442695, %v1155_v61 }
 0x227   : > { %v1002_v42 = vpop.xlane.xlu0 %1001 }
 0x228   : > { %2257 = vrcp.f32 %v1002_v42  ;;  %v1014_v46 = vand.u32 2147483648, %v1002_v42  ;;  %v1012_v48 = vand.u32 2147483647, %v1002_v42  ;;  %vm1008_vm4 = vweird.f32 %v1002_v42 }
 0x229   : > { %2259 = vpow2.f32 %v1156_v62 }
 0x22a   : > { %v1015_v50 = vor.u32 1.1754944e-38, %v1014_v46  ;;  %vm1013_vm6 = vcmp.eq.f32.partialorder %v1012_v48, 8.507059e+37 }
 0x22e   : > { %v2258_v43 = vpop.eup %2257 }
 0x22f   : > { %v1004_v44 = vmul.f32 %v2258_v43, %v1002_v42  ;;  %vm1009_vm3 = vweird.f32 %v2258_v43  ;;  %v2260_v5 = vpop.eup %2259 }
 0x230   : > { %vm1010_vm5 = vmor %vm1008_vm4, %vm1009_vm3  ;;  %v1158_v6 = vsel %vm972_vm1, %v2260_v5, 0.0 }
 0x231   : > { %v1005_v45 = vsub.f32 1.0, %v1004_v44 }
 0x233   : > { %v1006_v47 = vmul.f32 %v2258_v43, %v1005_v45 }
 0x235   : > { %v1007_v49 = vadd.f32 %v2258_v43, %v1006_v47 }
 0x237   : > { %v1011_v51 = vsel %vm1010_vm5, %v2258_v43, %v1007_v49 }
 0x238   : > { %v1016_v52 = vsel %vm1013_vm6, %v1015_v50, %v1011_v51  ;;  %vm1098_vm6 = vcmask 130112  }
 0x239   : > { %v1017_v53 = vmul.f32 %v2256_v40, %v1016_v52 }
 0x23a   : > { %v1212_v54 = vpop.permute.xlu0 %1211 }
 0x23b   : > { %v1217_v55 = vsel %vm972_vm1, %v1212_v54, 0  ;;  %v1019_v56 = vpack.c.bf16 %v1017_v53, %v1017_v53  ;;  %1018 = vst.msk [vmem:[%s2534_s7] sm:$0xff] %vm972_vm1, %v1017_v53 }
 0x23d   : > { %2125 = vmatmul.msk.bf16.vlgmr.msra.gmra.mxu3 %vm972_vm1, %v1019_v56 }
 0x23e   : > { %1226 = vmatpush.bf16.xpose.msra.mxu3 %v1217_v55 }
 0x24d   : > { %2126 = vmatmul.msk.bf16.vlgmr.msrb.gmra.mxu3 %vm972_vm1, %v1046_v17 }
 0x25d   : > { %2130 = vmatmul.msk.bf16.vlgmr.msra.gmra.mxu3 %vm972_vm1, %v1210_v57 }
 0x2c0   : > { %v1039_v58 = vpop.f32.mrf.mxu3 }
 0x2c1   : > { %1043 = vst.msk [vmem:[#allocation2] sm:$0xff] %vm972_vm1, %v1039_v58 }
 0x2c8   : > { %v1041_v59 = vpop.f32.mrf.mxu3 }
 0x2d0   : > { %v1064_v63 = vpop.f32.mrf.mxu3 }
 0x2d1   : > { %v1068_v0 = vmul.f32 0.35355338, %v1064_v63 }
 0x2d3   : > { %v1069_v1 = vadd.f32 %v1068_v0, %v2521_v26 }
 0x2d5   : > { %v1070_v2 = vsel %vm972_vm1, %v1069_v1, -inf }
 0x2d6   : > { %1071 = vmax.xlane.f32.xlu1 %v1070_v2 }
 0x2d8   : > { %v1066_v3 = vpop.f32.mrf.mxu3 }
 0x2de   : > { %1159 = vadd.xlane.f32.xlu1 %v1158_v6 }
 0x2e0   : > { %v1228_v7 = vpop.f32.mrf.mxu3 }
 0x2e1   : > { %v1232_v8 = vmul.f32 0.35355338, %v1228_v7 }
 0x2e3   : > { %v1233_v9 = vadd.f32 %v1232_v8, %v2521_v26 }
 0x2e5   : > { %v1234_v10 = vsel %vm972_vm1, %v1233_v9, -inf }
 0x2e6   : > { %1235 = vmax.xlane.f32.xlu0 %v1234_v10 }
 0x2e8   : > { %v1230_v11 = vpop.f32.mrf.mxu3 }
 0x2f7   : > { %1101 = vrot.lane.b32.xlu1 %v2500_v13, %s2838_s6  ;;  %s2873_s6 = sld [smem:[#allocation11_spill]] }
 0x2fa   : > { %1183 = vrot.lane.b32.xlu0 %v2500_v13, %s2835_s10  ;;  %s2845_s10 = smov 24  }
 0x2fd   : > { %v2209_v10 = vld [vmem:[%s2873_s6 + $0x8] sm:$0xff]  ;;  %v2208_v11 = vld [vmem:[%s2873_s6] sm:$0xff]  ;;  %s2876_s6 = sld [smem:[#allocation15_spill]] }
 0x2fe   : > { %1322 = vmatpush.bf16.msra.mxu1 %v2209_v10 }
 0x302   : > { %1323 = vmatpush.bf16.msra.mxu1 %v2208_v11 }
 0x349   : > { %v1072_v12 = vpop.xlane.xlu1 %1071 }
 0x34a   : > { %v1073_v14 = vsub.f32 %v1069_v1, %v1072_v12 }
 0x34c   : > { %v1074_v15 = vmul.f32 1.442695, %v1073_v14 }
 0x34e   : > { %2261 = vpow2.f32 %v1074_v15 }
 0x351   : > { %v1160_v16 = vpop.xlane.xlu1 %1159 }
 0x352   : > { %2263 = vrcp.f32 %v1160_v16  ;;  %v1172_v27 = vand.u32 2147483648, %v1160_v16  ;;  %vm1166_vm8 = vweird.f32 %v1160_v16  ;;  %v1170_v28 = vand.u32 2147483647, %v1160_v16 }
 0x354   : > { %v2262_v17 = vpop.eup %2261  ;;  %v1173_v32 = vor.u32 1.1754944e-38, %v1172_v27  ;;  %vm1171_vm10 = vcmp.eq.f32.partialorder %v1170_v28, 8.507059e+37 }
 0x355   : > { %v1076_v18 = vsel %vm972_vm1, %v2262_v17, 0.0 }
 0x356   : > { %1077 = vadd.xlane.f32.xlu2 %v1076_v18  ;;  %v2243_v18 = vld [vmem:[%s2874_s30] ss:$0 sm:$0xff] }
 0x358   : > { %v2264_v19 = vpop.eup %2263 }
 0x359   : > { %v1162_v20 = vmul.f32 %v2264_v19, %v1160_v16  ;;  %v1236_v21 = vpop.xlane.xlu0 %1235  ;;  %vm1167_vm7 = vweird.f32 %v2264_v19 }
 0x35a   : > { %v1237_v22 = vsub.f32 %v1233_v9, %v1236_v21  ;;  %vm1168_vm9 = vmor %vm1166_vm8, %vm1167_vm7  ;;  %vm1180_vm7 = vcmask 195712   ;;  %vm1262_vm8 = vcmask 261312  }
 0x35b   : > { %v1163_v23 = vsub.f32 1.0, %v1162_v20 }
 0x35c   : > { %v1238_v24 = vmul.f32 1.442695, %v1237_v22 }
 0x35d   : > { %v1164_v25 = vmul.f32 %v2264_v19, %v1163_v23 }
 0x35e   : > { %2265 = vpow2.f32 %v1238_v24  ;;  %v2313_v24 = vmov 32.0  }
 0x35f   : > { %v1165_v26 = vadd.f32 %v2264_v19, %v1164_v25 }
 0x361   : > { %v1169_v30 = vsel %vm1168_vm9, %v2264_v19, %v1165_v26 }
 0x362   : > { %v1174_v33 = vsel %vm1171_vm10, %v1173_v32, %v1169_v30 }
 0x363   : > { %v2555_v36 = vmul.f32 %v2260_v5, %v1174_v33 }
 0x364   : > { %v2266_v29 = vpop.eup %2265 }
 0x365   : > { %v1240_v31 = vsel %vm972_vm1, %v2266_v29, 0.0  ;;  %v1182_v39 = vpack.c.bf16 %v2555_v36, %v2555_v36 }
 0x366   : > { %1241 = vadd.xlane.f32.xlu2 %v1240_v31 }
 0x369   : > { %v1102_v34 = vpop.permute.xlu1 %1101 }
 0x36a   : > { %v1107_v35 = vsel %vm1026_vm2, %v1102_v34, 0 }
 0x36b   : > { %1116 = vmatpush.bf16.msrb.mxu0 %v1107_v35  ;;  %v2213_v35 = vld [vmem:[%s2816_s14 + $0x8] sm:$0xff] }
 0x36c   : > { %v1184_v37 = vpop.permute.xlu0 %1183  ;;  %1437 = vmatpush.bf16.msrb.mxu3 %v2213_v35 }
 0x36d   : > { %v1189_v38 = vsel %vm1026_vm2, %v1184_v37, 0  ;;  %v2212_v37 = vld [vmem:[%s2816_s14] sm:$0xff] }
 0x36e   : > { %1198 = vmatpush.bf16.msrb.mxu2 %v1189_v38 }
 0x370   : > { %1438 = vmatpush.bf16.msrb.mxu3 %v2212_v37 }
 0x371   : > { %2129 = vmatmul.msk.bf16.vlgmr.msrb.gmra.mxu2 %vm972_vm1, %v1182_v39 }
 0x37e   : > { %1265 = vrot.lane.b32.xlu2 %v2500_v13, %s2836_s11  ;;  %s2879_s11 = smov 120  }
 0x3c9   : > { %v1078_v40 = vpop.xlane.xlu2 %1077 }
 0x3ca   : > { %2267 = vrcp.f32 %v1078_v40  ;;  %v1090_v45 = vand.u32 2147483648, %v1078_v40  ;;  %v1088_v46 = vand.u32 2147483647, %v1078_v40  ;;  %vm1084_vm12 = vweird.f32 %v1078_v40 }
 0x3cc   : > { %v1091_v49 = vor.u32 1.1754944e-38, %v1090_v45  ;;  %vm1089_vm14 = vcmp.eq.f32.partialorder %v1088_v46, 8.507059e+37 }
 0x3d0   : > { %v2268_v41 = vpop.eup %2267 }
 0x3d1   : > { %v1080_v42 = vmul.f32 %v2268_v41, %v1078_v40  ;;  %vm1085_vm11 = vweird.f32 %v2268_v41  ;;  %v2211_v40 = vld [vmem:[%s2876_s6 + $0x8] sm:$0xff] }
 0x3d2   : > { %vm1086_vm13 = vmor %vm1084_vm12, %vm1085_vm11  ;;  %1400 = vmatpush.bf16.msra.mxu2 %v2211_v40 }
 0x3d3   : > { %v1081_v43 = vsub.f32 1.0, %v1080_v42 }
 0x3d5   : > { %v1082_v44 = vmul.f32 %v2268_v41, %v1081_v43 }
 0x3d7   : > { %v1083_v47 = vadd.f32 %v2268_v41, %v1082_v44 }
 0x3d9   : > { %v1087_v48 = vsel %vm1086_vm13, %v2268_v41, %v1083_v47  ;;  %v1242_v50 = vpop.xlane.xlu2 %1241  ;;  %v2210_v41 = vld [vmem:[%s2876_s6] sm:$0xff] }
 0x3da   : > { %2269 = vrcp.f32 %v1242_v50  ;;  %v1092_v51 = vsel %vm1089_vm14, %v1091_v49, %v1087_v48  ;;  %v1254_v58 = vand.u32 2147483648, %v1242_v50  ;;  %v1252_v60 = vand.u32 2147483647, %v1242_v50  ;;  %1401 = vmatpush.bf16.msra.mxu2 %v2210_v41 }
 0x3db   : > { %v2563_v52 = vmul.f32 %v2262_v17, %v1092_v51  ;;  %vm1248_vm3 = vweird.f32 %v1242_v50  ;;  %2271 = vrcp.f32 %v2313_v24  ;;  %v2244_v51 = vld [vmem:[%s2877_s4] ss:$0 sm:$0xff]  ;;  %s2881_s4 = smov 104  }
 0x3dc   : > { %v1255_v62 = vor.u32 1.1754944e-38, %v1254_v58  ;;  %vm1253_vm5 = vcmp.eq.f32.partialorder %v1252_v60, 8.507059e+37  ;;  %v2246_v58 = vld [vmem:[%s2817_s15] ss:$0 sm:$0xff] }
 0x3dd   : > { %v1100_v13 = vpack.c.bf16 %v2563_v52, %v2563_v52 }
 0x3df   : > { %2127 = vmatmul.msk.bf16.vlgmr.msrb.gmra.mxu0 %vm972_vm1, %v1100_v13 }
 0x3e0   : > { %v2270_v53 = vpop.eup %2269 }
 0x3e1   : > { %v1244_v54 = vmul.f32 %v2270_v53, %v1242_v50  ;;  %v1266_v55 = vpop.permute.xlu2 %1265  ;;  %vm1249_vm15 = vweird.f32 %v2270_v53  ;;  %v2272_v25 = vpop.eup %2271 }
 0x3e2   : > { %v1271_v56 = vsel %vm1026_vm2, %v1266_v55, 0  ;;  %vm1250_vm4 = vmor %vm1248_vm3, %vm1249_vm15  ;;  %v1334_v26 = vmul.f32 32.0, %v2272_v25  ;;  %vm1338_vm9 = vweird.f32 %v2272_v25 }
 0x3e3   : > { %v1245_v57 = vsub.f32 1.0, %v1244_v54  ;;  %1280 = vmatpush.bf16.msra.mxu0 %v1271_v56 }
 0x3e4   : > { %v1335_v27 = vsub.f32 1.0, %v1334_v26 }
 0x3e5   : > { %v1246_v59 = vmul.f32 %v2270_v53, %v1245_v57 }
 0x3e6   : > { %v1336_v28 = vmul.f32 %v2272_v25, %v1335_v27 }
 0x3e7   : > { %v1247_v61 = vadd.f32 %v2270_v53, %v1246_v59 }
 0x3e9   : > { %v1251_v63 = vsel %vm1250_vm4, %v2270_v53, %v1247_v61 }
 0x3ea   : > { %v1256_v0 = vsel %vm1253_vm5, %v1255_v62, %v1251_v63 }
 0x3eb   : > { %v2569_v1 = vmul.f32 %v2266_v29, %v1256_v0  ;;  %v1337_v29 = vadd.f32 %v2272_v25, %v1336_v28  ;;  %v2247_v0 = vld [vmem:[%s2815_s13] ss:$0 sm:$0xff] }
 0x3ed   : > { %v1264_v2 = vpack.c.bf16 %v2569_v1, %v2569_v1  ;;  %v2592_v30 = vsel %vm1338_vm9, %v2272_v25, %v1337_v29 }
 0x3ef   : > { %2131 = vmatmul.msk.bf16.vlgmr.msra.gmra.mxu0 %vm972_vm1, %v1264_v2 }
 0x3f4   : > { %v1200_v3 = vpop.f32.mrf.mxu2 }
 0x3f5   : > { %1205 = vrot.lane.b32.xlu1 %v1200_v3, %s2843_s29  ;;  %s2875_s29 = sld [smem:[#allocation4_spill]] }
 0x3fc   : > { %v1202_v5 = vpop.f32.mrf.mxu2 }
 0x45c   : > { %v1118_v6 = vpop.f32.mrf.mxu0 }
 0x45d   : > { %1123 = vrot.lane.b32.xlu0 %v1118_v6, %s2847_s2  ;;  %s2878_s2 = sld [smem:[#allocation14_spill]] }
 0x463   : > { %v2245_v53 = vld [vmem:[%s2878_s2] ss:$0 sm:$0xff]  ;;  %s2882_s2 = sld [smem:[#allocation6_spill]] }
 0x464   : > { %v1120_v7 = vpop.f32.mrf.mxu0 }
 0x467   : > { %v1206_v14 = vpop.permute.xlu1 %1205 }
 0x469   : > { %s880_s9 = scalar_lea.vmem %s2882_s2, %s2891_s5  ;;  %s2883_s5 = smov 88  }
 0x46a   : > { %s2889_s2 = smov 16  }
 0x46c   : > { %v1282_v8 = vpop.f32.mrf.mxu0 }
 0x46d   : > { %1287 = vrot.lane.b32.xlu2 %v1282_v8, %s2845_s10  ;;  %s877_s10 = scalar_lea.vmem %s2875_s29, %s2482_s12  ;;  %s2888_s29 = smov 24  }
 0x46e   : > { %v1369_v38 = vld [vmem:[%s877_s10] sm:$0xff]  ;;  %s2887_s10 = smov 8  }
 0x46f   : > { %v1407_v39 = vpack.c.bf16 %v1369_v38, %v1369_v38 }
 0x471   : > { %2158 = vmatmul.msk.bf16.vlgmr.msrb.gmra.mxu3 %vm920_vm0, %v1407_v39 }
 0x474   : > { %v1284_v9 = vpop.f32.mrf.mxu0 }
 0x4c7   : > { %v1288_v15 = vpop.permute.xlu2 %1287 }
 0x4cf   : > { %v1124_v12 = vpop.permute.xlu0 %1123 }
 0x4d0   : > { %1126 = vst.msk [vmem:[#allocation2] sm:$0xff] %vm1098_vm6, %v1124_v12 }
 0x4d1   : > { %1208 = vst.msk [vmem:[#allocation2] sm:$0xff] %vm1180_vm7, %v1206_v14 }
 0x4d2   : > { %1290 = vst.msk [vmem:[#allocation2] sm:$0xff] %vm1262_vm8, %v1288_v15 }
 0x4d9   : > { %v1291_v16 = vld [vmem:[#allocation2] sm:$0xff] }
 0x4da   : > { %v1292_v17 = vpack.c.bf16 %v1291_v16, %v1291_v16  ;;  %v897_v16 = vld [vmem:[%s880_s9] sm:$0x1] }
 0x4dc   : > { %2140 = vmatmul.msk.bf16.vlgmr.msra.gmra.mxu1 %vm920_vm0, %v1292_v17  ;;  %v898_v17 = vmul.f32 -1e+09, %v897_v16 }
 0x4f4   : > { %v1440_v59 = vpop.f32.mrf.mxu3 }
 0x4f5   : > { %v1441_v60 = vadd.f32 %v2246_v58, %v1440_v59 }
 0x4f7   : > { %v2628_v61 = vpack.c.bf16 %v1441_v60, %v1441_v60 }
 0x4f9   : > { %1522 = vrot.lane.b32.xlu2 %v2628_v61, %s2879_s11  ;;  %v1450_v62 = vsel %vm972_vm1, %v2628_v61, 0 }
 0x4fa   : > { %1459 = vmatpush.bf16.xpose.msrb.mxu0 %v1450_v62 }
 0x4fc   : > { %v1442_v63 = vpop.f32.mrf.mxu3 }
 0x553   : > { %v1523_v7 = vpop.permute.xlu2 %1522 }
 0x554   : > { %v1528_v8 = vsel %vm972_vm1, %v1523_v7, 0 }
 0x555   : > { %1537 = vmatpush.bf16.xpose.msrb.mxu2 %v1528_v8 }
 0x559   : > { %v1325_v19 = vpop.f32.mrf.mxu1 }
 0x55a   : > { %v1326_v20 = vadd.f32 %v2243_v18, %v1325_v19  ;;  %v1467_v19 = vperm.slane %v898_v17, 0 }
 0x55c   : > { %v1329_v21 = vadd.f32 %v1326_v20, %v2488_v4 }
 0x55e   : > { %v1330_v22 = vsel %vm920_vm0, %v1329_v21, 0.0 }
 0x55f   : > { %1331 = vadd.xlane.f32.xlu0 %v1330_v22 }
 0x561   : > { %v1327_v23 = vpop.f32.mrf.mxu1 }
 0x5d2   : > { %v1332_v31 = vpop.xlane.xlu0 %1331 }
 0x5d3   : > { %v1340_v32 = vmul.f32 %v2592_v30, %v1332_v31 }
 0x5d5   : > { %v1341_v33 = vsub.f32 %v1329_v21, %v1340_v32 }
 0x5d7   : > { %v1342_v4 = vmul.f32 %v1341_v33, %v1341_v33 }
 0x5d9   : > { %v1343_v34 = vsel %vm920_vm0, %v1342_v4, 0.0 }
 0x5da   : > { %1344 = vadd.xlane.f32.xlu1 %v1343_v34 }
 0x64d   : > { %v1345_v42 = vpop.xlane.xlu1 %1344 }
 0x64e   : > { %v1346_v43 = vmul.f32 %v1345_v42, %v2592_v30 }
 0x650   : > { %v1347_v44 = vadd.f32 1e-06, %v1346_v43 }
 0x652   : > { %2273 = vrsqrt.f32 %v1347_v44  ;;  %vm1354_vm11 = vweird.f32 %v1347_v44 }
 0x658   : > { %v2274_v45 = vpop.eup %2273 }
 0x659   : > { %v1349_v46 = vmul.f32 %v2274_v45, %v1347_v44  ;;  %vm1355_vm10 = vweird.f32 %v2274_v45 }
 0x65a   : > { %vm1356_vm12 = vmor %vm1354_vm11, %vm1355_vm10 }
 0x65b   : > { %v1350_v47 = vmul.f32 %v2274_v45, %v1349_v46 }
 0x65d   : > { %v1351_v48 = vmul.f32 0.5, %v1350_v47 }
 0x65f   : > { %v1352_v49 = vsub.f32 1.5, %v1351_v48 }
 0x661   : > { %v1353_v50 = vmul.f32 %v2274_v45, %v1352_v49 }
 0x663   : > { %v1357_v13 = vsel %vm1356_vm12, %v2274_v45, %v1353_v50 }
 0x664   : > { %v1358_v54 = vmul.f32 %v1357_v13, %v1341_v33 }
 0x666   : > { %v1363_v55 = vmul.f32 %v2244_v51, %v1358_v54 }
 0x668   : > { %v2620_v56 = vadd.f32 %v2245_v53, %v1363_v55 }
 0x66a   : > { %v1370_v57 = vpack.c.bf16 %v2620_v56, %v2620_v56 }
 0x66c   : > { %2149 = vmatmul.msk.bf16.vlgmr.msra.gmra.mxu2 %vm920_vm0, %v1370_v57 }
 0x6ef   : > { %v1403_v2 = vpop.f32.mrf.mxu2 }
 0x6f0   : > { %v1404_v3 = vadd.f32 %v2247_v0, %v1403_v2 }
 0x6f2   : > { %v1444_v5 = vpack.c.bf16 %v1404_v3, %v1404_v3 }
 0x6f4   : > { %1601 = vrot.lane.b32.xlu0 %v1444_v5, %s2880_s0  ;;  %1520 = vrot.lane.b32.xlu2 %v1444_v5, %s2879_s11 }
 0x6f5   : > { %2159 = vmatmul.msk.bf16.vlgmr.msrb.gmra.mxu0 %vm972_vm1, %v1444_v5 }
 0x6f7   : > { %v1405_v6 = vpop.f32.mrf.mxu2 }
 0x6fc   : > { %1684 = vrot.lane.b32.xlu2 %v2628_v61, %s2881_s4 }
 0x704   : > { %1682 = vrot.lane.b32.xlu2 %v1444_v5, %s2881_s4  ;;  %s2886_s4 = smov 80  }
 0x70c   : > { %1603 = vrot.lane.b32.xlu2 %v2628_v61, %s2880_s0  ;;  %s2885_s0 = smov 72  }
 0x74e   : > { %v1521_v9 = vpop.permute.xlu2 %1520 }
 0x74f   : > { %2161 = vmatmul.msk.bf16.vlgmr.msrb.gmra.mxu2 %vm972_vm1, %v1521_v9 }
 0x756   : > { %v1685_v10 = vpop.permute.xlu2 %1684 }
 0x757   : > { %v1690_v11 = vsel %vm972_vm1, %v1685_v10, 0 }
 0x758   : > { %1699 = vmatpush.bf16.xpose.msra.mxu2 %v1690_v11 }
 0x75e   : > { %v1683_v12 = vpop.permute.xlu2 %1682 }
 0x75f   : > { %2165 = vmatmul.msk.bf16.vlgmr.msra.gmra.mxu2 %vm972_vm1, %v1683_v12 }
 0x766   : > { %v1604_v14 = vpop.permute.xlu2 %1603  ;;  %v1602_v18 = vpop.permute.xlu0 %1601 }
 0x767   : > { %v1609_v15 = vsel %vm972_vm1, %v1604_v14, 0 }
 0x768   : > { %1618 = vmatpush.bf16.xpose.msra.mxu0 %v1609_v15 }
 0x76f   : > { %2163 = vmatmul.msk.bf16.vlgmr.msra.gmra.mxu0 %vm972_vm1, %v1602_v18 }
 0x772   : > { %v1461_v20 = vpop.f32.mrf.mxu0 }
 0x773   : > { %v1465_v21 = vmul.f32 0.35355338, %v1461_v20 }
 0x775   : > { %v1469_v22 = vadd.f32 %v1467_v19, %v1465_v21 }
 0x777   : > { %v1470_v23 = vsel %vm972_vm1, %v1469_v22, -inf }
 0x778   : > { %1471 = vmax.xlane.f32.xlu2 %v1470_v23 }
 0x77a   : > { %v1463_v24 = vpop.f32.mrf.mxu0 }
 0x7d2   : > { %v1539_v25 = vpop.f32.mrf.mxu2 }
 0x7d3   : > { %v1543_v34 = vmul.f32 0.35355338, %v1539_v25 }
 0x7d5   : > { %v1544_v39 = vadd.f32 %v1543_v34, %v1467_v19 }
 0x7d7   : > { %v1545_v40 = vsel %vm972_vm1, %v1544_v39, -inf }
 0x7da   : > { %v1541_v26 = vpop.f32.mrf.mxu2 }
 0x7e2   : > { %v1701_v27 = vpop.f32.mrf.mxu2 }
 0x7e3   : > { %v1705_v42 = vmul.f32 0.35355338, %v1701_v27 }
 0x7e5   : > { %v1706_v44 = vadd.f32 %v1705_v42, %v1467_v19 }
 0x7e7   : > { %v1707_v45 = vsel %vm972_vm1, %v1706_v44, -inf }
 0x7ea   : > { %v1703_v28 = vpop.f32.mrf.mxu2 }
 0x7eb   : > { %v1472_v31 = vpop.xlane.xlu2 %1471 }
 0x7ec   : > { %v1620_v29 = vpop.f32.mrf.mxu0  ;;  %v1473_v4 = vsub.f32 %v1469_v22, %v1472_v31 }
 0x7ed   : > { %v1624_v32 = vmul.f32 0.35355338, %v1620_v29 }
 0x7ee   : > { %v1474_v37 = vmul.f32 1.442695, %v1473_v4 }
 0x7ef   : > { %v1625_v33 = vadd.f32 %v1624_v32, %v1467_v19 }
 0x7f0   : > { %2275 = vpow2.f32 %v1474_v37 }
 0x7f1   : > { %v1626_v35 = vsel %vm972_vm1, %v1625_v33, -inf }
 0x7f2   : > { %1627 = vmax.xlane.f32.xlu1 %v1626_v35 }
 0x7f4   : > { %v1622_v38 = vpop.f32.mrf.mxu0 }
 0x7f6   : > { %v2276_v41 = vpop.eup %2275 }
 0x7f7   : > { %v1476_v43 = vsel %vm972_vm1, %v2276_v41, 0.0 }
 0x7fa   : > { %1546 = vmax.xlane.f32.xlu1 %v1545_v40 }
 0x802   : > { %1477 = vadd.xlane.f32.xlu1 %v1476_v43 }
 0x80a   : > { %1708 = vmax.xlane.f32.xlu1 %v1707_v45 }
 0x823   : > { %1575 = vrot.lane.b32.xlu1 %v2628_v61, %s2883_s5 }
 0x865   : > { %v1628_v46 = vpop.xlane.xlu1 %1627 }
 0x866   : > { %v1629_v47 = vsub.f32 %v1625_v33, %v1628_v46 }
 0x868   : > { %v1630_v48 = vmul.f32 1.442695, %v1629_v47 }
 0x86a   : > { %2277 = vpow2.f32 %v1630_v48 }
 0x86d   : > { %v1547_v49 = vpop.xlane.xlu1 %1546 }
 0x86e   : > { %v1548_v50 = vsub.f32 %v1544_v39, %v1547_v49 }
 0x870   : > { %v2662_v51 = vpop.eup %2277  ;;  %v1549_v13 = vmul.f32 1.442695, %v1548_v50 }
 0x871   : > { %v1632_v53 = vsel %vm972_vm1, %v2662_v51, 0.0 }
 0x872   : > { %2279 = vpow2.f32 %v1549_v13  ;;  %1633 = vadd.xlane.f32.xlu2 %v1632_v53 }
 0x875   : > { %v1478_v54 = vpop.xlane.xlu1 %1477 }
 0x876   : > { %2281 = vrcp.f32 %v1478_v54  ;;  %v1490_v0 = vand.u32 2147483648, %v1478_v54  ;;  %v1488_v5 = vand.u32 2147483647, %v1478_v54  ;;  %vm1484_vm14 = vweird.f32 %v1478_v54 }
 0x878   : > { %v2280_v55 = vpop.eup %2279  ;;  %v1491_v7 = vor.u32 1.1754944e-38, %v1490_v0  ;;  %vm1489_vm3 = vcmp.eq.f32.partialorder %v1488_v5, 8.507059e+37 }
 0x879   : > { %v1551_v57 = vsel %vm972_vm1, %v2280_v55, 0.0 }
 0x87a   : > { %1552 = vadd.xlane.f32.xlu0 %v1551_v57 }
 0x87c   : > { %v2282_v58 = vpop.eup %2281 }
 0x87d   : > { %v1480_v59 = vmul.f32 %v2282_v58, %v1478_v54  ;;  %v1709_v60 = vpop.xlane.xlu1 %1708  ;;  %vm1485_vm13 = vweird.f32 %v2282_v58 }
 0x87e   : > { %v1710_v62 = vsub.f32 %v1706_v44, %v1709_v60  ;;  %vm1486_vm15 = vmor %vm1484_vm14, %vm1485_vm13 }
 0x87f   : > { %v1481_v63 = vsub.f32 1.0, %v1480_v59 }
 0x880   : > { %v1711_v2 = vmul.f32 1.442695, %v1710_v62 }
 0x881   : > { %v1482_v3 = vmul.f32 %v2282_v58, %v1481_v63 }
 0x882   : > { %2283 = vpow2.f32 %v1711_v2 }
 0x883   : > { %v1483_v6 = vadd.f32 %v2282_v58, %v1482_v3 }
 0x885   : > { %v1487_v8 = vsel %vm1486_vm15, %v2282_v58, %v1483_v6 }
 0x886   : > { %v1492_v9 = vsel %vm1489_vm3, %v1491_v7, %v1487_v8 }
 0x887   : > { %v1493_v10 = vmul.f32 %v2276_v41, %v1492_v9 }
 0x888   : > { %v2673_v11 = vpop.eup %2283 }
 0x889   : > { %v1713_v12 = vsel %vm972_vm1, %v2673_v11, 0.0  ;;  %1494 = vst.msk [vmem:[%s2671_s1] sm:$0xff] %vm972_vm1, %v1493_v10  ;;  %v1495_v20 = vpack.c.bf16 %v1493_v10, %v1493_v10  ;;  %v2215_v10 = vld [vmem:[%s2818_s16 + $0x8] sm:$0xff] }
 0x88a   : > { %1497 = vrot.lane.b32.xlu2 %v2628_v61, %s2884_s3  ;;  %1714 = vadd.xlane.f32.xlu1 %v1713_v12 }
 0x88b   : > { %1794 = vmatpush.bf16.msrb.mxu0 %v2215_v10 }
 0x88e   : > { %1737 = vrot.lane.b32.xlu0 %v2628_v61, %s2885_s0  ;;  %s884_s0 = scalar_lea.vmem %s2828_s26, %s2482_s12 }
 0x895   : > { %v1576_v14 = vpop.permute.xlu1 %1575 }
 0x896   : > { %v1581_v15 = vsel %vm1026_vm2, %v1576_v14, 0 }
 0x897   : > { %1590 = vmatpush.bf16.msra.mxu3 %v1581_v15 }
 0x8a3   : > { %1656 = vrot.lane.b32.xlu1 %v2628_v61, %s2886_s4 }
 0x8e5   : > { %v1634_v16 = vpop.xlane.xlu2 %1633 }
 0x8e6   : > { %v1646_v47 = vand.u32 2147483648, %v1634_v16  ;;  %vm1640_vm14 = vweird.f32 %v1634_v16  ;;  %v1644_v49 = vand.u32 2147483647, %v1634_v16 }
 0x8ed   : > { %v1498_v17 = vpop.permute.xlu2 %1497  ;;  %v1553_v18 = vpop.xlane.xlu0 %1552 }
 0x8ee   : > { %v1503_v19 = vsel %vm1026_vm2, %v1498_v17, 0  ;;  %2285 = vrcp.f32 %v1553_v18  ;;  %v1565_v24 = vand.u32 2147483648, %v1553_v18  ;;  %v1563_v26 = vand.u32 2147483647, %v1553_v18 }
 0x8ef   : > { %1512 = vmatpush.bf16.msrb.mxu1 %v1503_v19  ;;  %2287 = vrcp.f32 %v1634_v16  ;;  %vm1559_vm5 = vweird.f32 %v1553_v18 }
 0x8f0   : > { %v1566_v28 = vor.u32 1.1754944e-38, %v1565_v24  ;;  %vm1564_vm10 = vcmp.eq.f32.partialorder %v1563_v26, 8.507059e+37 }
 0x8f2   : > { %2160 = vmatmul.msk.bf16.vlgmr.msrb.gmra.mxu1 %vm972_vm1, %v1495_v20 }
 0x8f4   : > { %v2286_v21 = vpop.eup %2285 }
 0x8f5   : > { %v1555_v22 = vmul.f32 %v2286_v21, %v1553_v18  ;;  %vm1560_vm4 = vweird.f32 %v2286_v21  ;;  %v2288_v27 = vpop.eup %2287  ;;  %v2248_v18 = vld [vmem:[%s2819_s17] ss:$0 sm:$0xff] }
 0x8f6   : > { %vm1561_vm9 = vmor %vm1559_vm5, %vm1560_vm4  ;;  %v1636_v32 = vmul.f32 %v2288_v27, %v1634_v16  ;;  %vm1641_vm12 = vweird.f32 %v2288_v27  ;;  %vm1645_vm5 = vcmp.eq.f32.partialorder %v1644_v49, 8.507059e+37  ;;  %v2218_v49 = vld [vmem:[%s2824_s22] sm:$0xff] }
 0x8f7   : > { %v1556_v23 = vsub.f32 1.0, %v1555_v22  ;;  %vm1642_vm3 = vmor %vm1640_vm14, %vm1641_vm12 }
 0x8f8   : > { %v1637_v38 = vsub.f32 1.0, %v1636_v32 }
 0x8f9   : > { %v1557_v25 = vmul.f32 %v2286_v21, %v1556_v23 }
 0x8fa   : > { %v1638_v41 = vmul.f32 %v2288_v27, %v1637_v38 }
 0x8fb   : > { %v1558_v61 = vadd.f32 %v2286_v21, %v1557_v25 }
 0x8fc   : > { %v1639_v46 = vadd.f32 %v2288_v27, %v1638_v41  ;;  %v2249_v41 = vld [vmem:[%s2820_s18] ss:$0 sm:$0xff] }
 0x8fd   : > { %v1562_v29 = vsel %vm1561_vm9, %v2286_v21, %v1558_v61  ;;  %v1715_v31 = vpop.xlane.xlu1 %1714 }
 0x8fe   : > { %v1567_v33 = vsel %vm1564_vm10, %v1566_v28, %v1562_v29  ;;  %2289 = vrcp.f32 %v1715_v31  ;;  %v1727_v43 = vand.u32 2147483648, %v1715_v31  ;;  %v1725_v45 = vand.u32 2147483647, %v1715_v31  ;;  %v2221_v28 = vld [vmem:[%s2824_s22 + $0x18] sm:$0xff] }
 0x8ff   : > { %v2688_v4 = vmul.f32 %v2280_v55, %v1567_v33  ;;  %vm1721_vm13 = vweird.f32 %v1715_v31  ;;  %v1643_v53 = vsel %vm1642_vm3, %v2288_v27, %v1639_v46  ;;  %v1647_v55 = vor.u32 1.1754944e-38, %v1646_v47  ;;  %1917 = vmatpush.bf16.msrb.mxu2 %v2221_v28 }
 0x900   : > { %v1738_v34 = vpop.permute.xlu0 %1737  ;;  %v1728_v50 = vor.u32 1.1754944e-38, %v1727_v43  ;;  %vm1726_vm4 = vcmp.eq.f32.partialorder %v1725_v45, 8.507059e+37  ;;  %v2250_v43 = vld [vmem:[%s2821_s19] ss:$0 sm:$0xff] }
 0x901   : > { %v1743_v35 = vsel %vm1026_vm2, %v1738_v34, 0  ;;  %v1574_v37 = vpack.c.bf16 %v2688_v4, %v2688_v4  ;;  %v1648_v58 = vsel %vm1645_vm5, %v1647_v55, %v1643_v53 }
 0x902   : > { %1752 = vmatpush.bf16.msrb.mxu3 %v1743_v35  ;;  %v2701_v60 = vmul.f32 %v2662_v51, %v1648_v58 }
 0x903   : > { %2162 = vmatmul.msk.bf16.vlgmr.msra.gmra.mxu3 %vm972_vm1, %v1574_v37 }
 0x904   : > { %v2290_v39 = vpop.eup %2289  ;;  %v1655_v0 = vpack.c.bf16 %v2701_v60, %v2701_v60 }
 0x905   : > { %v1717_v40 = vmul.f32 %v2290_v39, %v1715_v31  ;;  %vm1722_vm11 = vweird.f32 %v2290_v39  ;;  %v2220_v31 = vld [vmem:[%s2824_s22 + $0x10] sm:$0xff] }
 0x906   : > { %vm1723_vm15 = vmor %vm1721_vm13, %vm1722_vm11  ;;  %1918 = vmatpush.bf16.msrb.mxu2 %v2220_v31 }
 0x907   : > { %v1718_v42 = vsub.f32 1.0, %v1717_v40 }
 0x909   : > { %v1719_v44 = vmul.f32 %v2290_v39, %v1718_v42 }
 0x90b   : > { %v1720_v48 = vadd.f32 %v2290_v39, %v1719_v44 }
 0x90d   : > { %v1724_v13 = vsel %vm1723_vm15, %v2290_v39, %v1720_v48  ;;  %v2219_v48 = vld [vmem:[%s2824_s22 + $0x8] sm:$0xff] }
 0x90e   : > { %v1729_v54 = vsel %vm1726_vm4, %v1728_v50, %v1724_v13  ;;  %1919 = vmatpush.bf16.msrb.mxu2 %v2219_v48  ;;  %v2251_v50 = vld [vmem:[%s2823_s21] ss:$0 sm:$0xff] }
 0x90f   : > { %v2695_v57 = vmul.f32 %v2673_v11, %v1729_v54  ;;  %v2214_v11 = vld [vmem:[%s2818_s16] sm:$0xff] }
 0x910   : > { %1795 = vmatpush.bf16.msrb.mxu0 %v2214_v11 }
 0x911   : > { %v1736_v59 = vpack.c.bf16 %v2695_v57, %v2695_v57 }
 0x912   : > { %1920 = vmatpush.bf16.msrb.mxu2 %v2218_v49 }
 0x913   : > { %2166 = vmatmul.msk.bf16.vlgmr.msrb.gmra.mxu3 %vm972_vm1, %v1736_v59  ;;  %v2252_v59 = vld [vmem:[%s2825_s23] ss:$0 sm:$0xff] }
 0x915   : > { %v1657_v62 = vpop.permute.xlu1 %1656 }
 0x916   : > { %v1662_v63 = vsel %vm1026_vm2, %v1657_v62, 0 }
 0x917   : > { %1671 = vmatpush.bf16.msra.mxu1 %v1662_v63 }
 0x91a   : > { %2164 = vmatmul.msk.bf16.vlgmr.msra.gmra.mxu1 %vm972_vm1, %v1655_v0 }
 0x96f   : > { %v1514_v2 = vpop.f32.mrf.mxu1 }
 0x970   : > { %1518 = vst.msk [vmem:[#allocation2] sm:$0xff] %vm972_vm1, %v1514_v2 }
 0x977   : > { %v1516_v3 = vpop.f32.mrf.mxu1 }
 0x986   : > { %v1592_v5 = vpop.f32.mrf.mxu3 }
 0x987   : > { %1597 = vrot.lane.b32.xlu1 %v1592_v5, %s2887_s10 }
 0x98e   : > { %v1594_v6 = vpop.f32.mrf.mxu3 }
 0x996   : > { %v1754_v7 = vpop.f32.mrf.mxu3 }
 0x997   : > { %1759 = vrot.lane.b32.xlu0 %v1754_v7, %s2888_s29  ;;  %v1673_v51 = vpop.f32.mrf.mxu1 }
 0x998   : > { %1678 = vrot.lane.b32.xlu2 %v1673_v51, %s2889_s2 }
 0x99e   : > { %v1756_v8 = vpop.f32.mrf.mxu3 }
 0x99f   : > { %v1675_v9 = vpop.f32.mrf.mxu1 }
 0x9f2   : > { %v1679_v14 = vpop.permute.xlu2 %1678 }
 0x9f9   : > { %v1598_v12 = vpop.permute.xlu1 %1597 }
 0x9fa   : > { %1600 = vst.msk [vmem:[#allocation2] sm:$0xff] %vm1098_vm6, %v1598_v12 }
 0x9fb   : > { %1681 = vst.msk [vmem:[#allocation2] sm:$0xff] %vm1180_vm7, %v1679_v14 }
 0xa09   : > { %v1760_v15 = vpop.permute.xlu0 %1759 }
 0xa0a   : > { %1762 = vst.msk [vmem:[#allocation2] sm:$0xff] %vm1262_vm8, %v1760_v15 }
 0xa11   : > { %v1763_v16 = vld [vmem:[#allocation2] sm:$0xff] }
 0xa12   : > { %v1764_v17 = vpack.c.bf16 %v1763_v16, %v1763_v16 }
 0xa14   : > { %2175 = vmatmul.msk.bf16.vlgmr.msrb.gmra.mxu0 %vm920_vm0, %v1764_v17 }
 0xa91   : > { %v1797_v19 = vpop.f32.mrf.mxu0 }
 0xa92   : > { %v1798_v20 = vadd.f32 %v2248_v18, %v1797_v19 }
 0xa94   : > { %v1801_v21 = vadd.f32 %v1798_v20, %v2620_v56  ;;  %v2217_v56 = vld [vmem:[%s2822_s20 + $0x8] sm:$0xff]  ;;  %v2253_v20 = vld [vmem:[%s2826_s24] ss:$0 sm:$0xff] }
 0xa95   : > { %1864 = vmatpush.bf16.msrb.mxu1 %v2217_v56 }
 0xa96   : > { %v1802_v22 = vsel %vm920_vm0, %v1801_v21, 0.0 }
 0xa97   : > { %1803 = vadd.xlane.f32.xlu1 %v1802_v22 }
 0xa99   : > { %v1799_v23 = vpop.f32.mrf.mxu0 }
 0xab0   : > { %1259 = vrot.lane.b32.xlu1 %v2569_v1, %s2888_s29  ;;  %v2216_v1 = vld [vmem:[%s2822_s20] sm:$0xff] }
 0xab1   : > { %1865 = vmatpush.bf16.msrb.mxu1 %v2216_v1 }
 0xb0a   : > { %v1804_v24 = vpop.xlane.xlu1 %1803 }
 0xb0b   : > { %v1805_v25 = vmul.f32 %v1804_v24, %v2592_v30 }
 0xb0d   : > { %v1806_v26 = vsub.f32 %v1801_v21, %v1805_v25 }
 0xb0f   : > { %v1807_v27 = vmul.f32 %v1806_v26, %v1806_v26 }
 0xb11   : > { %v1808_v61 = vsel %vm920_vm0, %v1807_v27, 0.0 }
 0xb12   : > { %1809 = vadd.xlane.f32.xlu2 %v1808_v61 }
 0xb22   : > { %v1260_v10 = vpop.permute.xlu1 %1259 }
 0xb2a   : > { %1095 = vrot.lane.b32.xlu2 %v2563_v52, %s2887_s10 }
 0xb32   : > { %1570 = vrot.lane.b32.xlu2 %v2688_v4, %s2887_s10 }
 0xb85   : > { %v1810_v29 = vpop.xlane.xlu2 %1809 }
 0xb86   : > { %v1811_v52 = vmul.f32 %v1810_v29, %v2592_v30 }
 0xb88   : > { %v1812_v32 = vadd.f32 1e-06, %v1811_v52 }
 0xb8a   : > { %2291 = vrsqrt.f32 %v1812_v32  ;;  %vm1819_vm2 = vweird.f32 %v1812_v32 }
 0xb8d   : > { %v1096_v33 = vpop.permute.xlu2 %1095 }
 0xb8e   : > { %1099 = vst.msk [vmem:[%s2534_s7] sm:$0xff] %vm1098_vm6, %v1096_v33 }
 0xb90   : > { %v2292_v4 = vpop.eup %2291 }
 0xb91   : > { %v1814_v34 = vmul.f32 %v2292_v4, %v1812_v32  ;;  %vm1820_vm1 = vweird.f32 %v2292_v4 }
 0xb92   : > { %vm1821_vm9 = vmor %vm1819_vm2, %vm1820_vm1 }
 0xb93   : > { %v1815_v35 = vmul.f32 %v2292_v4, %v1814_v34 }
 0xb95   : > { %v1816_v37 = vmul.f32 0.5, %v1815_v35  ;;  %v1571_v38 = vpop.permute.xlu2 %1570 }
 0xb96   : > { %1573 = vst.msk [vmem:[%s2671_s1] sm:$0xff] %vm1098_vm6, %v1571_v38  ;;  %vm1909_vm6 = vcmask 523264  }
 0xb97   : > { %v1817_v39 = vsub.f32 1.5, %v1816_v37 }
 0xb99   : > { %v1818_v40 = vmul.f32 %v2292_v4, %v1817_v39 }
 0xb9b   : > { %v1822_v42 = vsel %vm1821_vm9, %v2292_v4, %v1818_v40 }
 0xb9c   : > { %v1823_v44 = vmul.f32 %v1822_v42, %v1806_v26 }
 0xb9e   : > { %v1828_v45 = vmul.f32 %v2249_v41, %v1823_v44 }
 0xba0   : > { %v1833_v46 = vadd.f32 %v2250_v43, %v1828_v45 }
 0xba2   : > { %v1834_v47 = vpack.c.bf16 %v1833_v46, %v1833_v46 }
 0xba4   : > { %2184 = vmatmul.msk.bf16.vlgmr.msrb.gmra.mxu1 %vm920_vm0, %v1834_v47 }
 0xc21   : > { %v1867_v13 = vpop.f32.mrf.mxu1 }
 0xc22   : > { %v1868_v53 = vadd.f32 %v2251_v50, %v1867_v13 }
 0xc24   : > { %v1871_v54 = vmax.f32 %v1868_v53, 0.0 }
 0xc26   : > { %v1872_v55 = vpack.c.bf16 %v1871_v54, %v1871_v54 }
 0xc28   : > { %2201 = vmatmul.msk.bf16.vlgmr.msrb.gmra.mxu2 %vm1909_vm6, %v1872_v55 }
 0xc29   : > { %v1869_v58 = vpop.f32.mrf.mxu1 }
 0xcab   : > { %v1922_v62 = vpop.f32.mrf.mxu2 }
 0xcac   : > { %v1923_v63 = vadd.f32 %v2252_v59, %v1922_v62 }
 0xcae   : > { %v1926_v0 = vadd.f32 %v1923_v63, %v1833_v46 }
 0xcb0   : > { %v1927_v2 = vsel %vm920_vm0, %v1926_v0, 0.0 }
 0xcb1   : > { %1928 = vadd.xlane.f32.xlu0 %v1927_v2 }
 0xcb3   : > { %v1924_v3 = vpop.f32.mrf.mxu2 }
 0xcc5   : > { %1177 = vrot.lane.b32.xlu0 %v2555_v36, %s2889_s2 }
 0xccd   : > { %1651 = vrot.lane.b32.xlu0 %v2701_v60, %s2889_s2 }
 0xd24   : > { %v1929_v5 = vpop.xlane.xlu0 %1928 }
 0xd25   : > { %v1930_v6 = vmul.f32 %v1929_v5, %v2592_v30 }
 0xd27   : > { %v1931_v7 = vsub.f32 %v1926_v0, %v1930_v6 }
 0xd29   : > { %v1932_v51 = vmul.f32 %v1931_v7, %v1931_v7 }
 0xd2b   : > { %v1933_v8 = vsel %vm920_vm0, %v1932_v51, 0.0 }
 0xd2c   : > { %1934 = vadd.xlane.f32.xlu1 %v1933_v8 }
 0xd37   : > { %v1178_v9 = vpop.permute.xlu0 %1177 }
 0xd38   : > { %1181 = vst.msk [vmem:[%s2534_s7] sm:$0xff] %vm1180_vm7, %v1178_v9 }
 0xd39   : > { %1263 = vst.msk [vmem:[%s2534_s7] sm:$0xff] %vm1262_vm8, %v1260_v10 }
 0xd3f   : > { %v1652_v11 = vpop.permute.xlu0 %1651 }
 0xd40   : > { %1654 = vst.msk [vmem:[%s2671_s1] sm:$0xff] %vm1180_vm7, %v1652_v11 }
 0xd45   : > { %1732 = vrot.lane.b32.xlu1 %v2695_v57, %s2888_s29 }
 0xd9f   : > { %v1935_v36 = vpop.xlane.xlu1 %1934 }
 0xda0   : > { %v1936_v60 = vmul.f32 %v1935_v36, %v2592_v30  ;;  %v2254_v30 = vld [vmem:[%s2827_s25] ss:$0 sm:$0xff] }
 0xda2   : > { %v1937_v12 = vadd.f32 1e-06, %v1936_v60 }
 0xda4   : > { %2293 = vrsqrt.f32 %v1937_v12  ;;  %vm1944_vm11 = vweird.f32 %v1937_v12 }
 0xdaa   : > { %v2294_v14 = vpop.eup %2293 }
 0xdab   : > { %v1939_v15 = vmul.f32 %v2294_v14, %v1937_v12  ;;  %vm1945_vm10 = vweird.f32 %v2294_v14 }
 0xdac   : > { %vm1946_vm7 = vmor %vm1944_vm11, %vm1945_vm10 }
 0xdad   : > { %v1940_v16 = vmul.f32 %v2294_v14, %v1939_v15 }
 0xdaf   : > { %v1941_v17 = vmul.f32 0.5, %v1940_v16 }
 0xdb1   : > { %v1942_v18 = vsub.f32 1.5, %v1941_v17 }
 0xdb3   : > { %v1943_v19 = vmul.f32 %v2294_v14, %v1942_v18 }
 0xdb5   : > { %v1947_v57 = vsel %vm1946_vm7, %v2294_v14, %v1943_v19 }
 0xdb6   : > { %v1948_v21 = vmul.f32 %v1947_v57, %v1931_v7 }
 0xdb7   : > { %v1733_v22 = vpop.permute.xlu1 %1732 }
 0xdb8   : > { %v1953_v23 = vmul.f32 %v2253_v20, %v1948_v21  ;;  %1735 = vst.msk [vmem:[%s2671_s1] sm:$0xff] %vm1262_vm8, %v1733_v22 }
 0xdba   : > { %v1958_v24 = vadd.f32 %v2254_v30, %v1953_v23 }
 0xdbc   : > { %1959 = vst.msk [vmem:[%s884_s0] sm:$0xff] %vm920_vm0, %v1958_v24 }
 0xdbd PF: > { %s39_s8 = sadd.s32 1, %s2301_s8  }
 0xdbe   : > { %p36_p4 = scmp.ge.s32.totalorder %s39_s8, 4  }
 0xdc0   :  { %38 = sbr.rel (!%p36_p4) target bundleno = 14 (0xe), region = 184 }

</bundles_post_ra>
